<compile_context>
chip_gen: v7x
topology: tpu7x:2x2x1
jax: 0.10.0
libtpu: 0.0.40
codegen_flags: <defaults>
</compile_context>

<pallas_src>
import math

import jax
import jax.numpy as jnp
import numpy as np
from jax.experimental import pallas as pl
from jax.experimental.pallas import tpu as pltpu

D_MODEL = 32
NUM_HEADS = 4
D_K = D_MODEL // NUM_HEADS
D_FF = 64
NUM_LAYERS = 2
LN_EPS = 1e-5


# ----------------------------- helpers traced inside the kernel -------------

def _layer_norm(z, gamma, beta):
    mu = jnp.mean(z, axis=-1, keepdims=True)
    c = z - mu
    var = jnp.mean(c * c, axis=-1, keepdims=True)
    return c * jax.lax.rsqrt(var + LN_EPS) * gamma + beta


def _attention(q2d, k2d, v2d, s_q, s_kv, batch):
    """Head-batched scaled-dot-product attention.

    q2d: (B*s_q, D), k2d/v2d: (B*s_kv, D).  The 1/sqrt(d_k) scale is already
    folded into W_q / b_q, so the scores are a plain contraction.
    """
    q3 = q2d.reshape(batch, s_q, D_MODEL)
    k3 = k2d.reshape(batch, s_kv, D_MODEL)
    v3 = v2d.reshape(batch, s_kv, D_MODEL)

    def split_heads(x3):
        # (B, S, D) -> (H*B, S, D_K): one lane slice per head, stacked on a new
        # leading axis + a free leading-dim merge (no per-(batch,head) slices).
        return jnp.stack(
            [x3[:, :, h * D_K:(h + 1) * D_K] for h in range(NUM_HEADS)],
            axis=0).reshape(NUM_HEADS * batch, x3.shape[1], D_K)

    qh = split_heads(q3)
    kh = split_heads(k3)
    vh = split_heads(v3)

    scores = jnp.einsum('gqd,gkd->gqk', qh, kh,
                        preferred_element_type=jnp.float32)
    m = jnp.max(scores, axis=-1, keepdims=True)
    e = jnp.exp(scores - m)
    inv = pl.reciprocal(jnp.sum(e, axis=-1, keepdims=True), approx=True)
    o = jnp.einsum('gqk,gkd->gqd', e * inv, vh,
                   preferred_element_type=jnp.float32)           # (H*B, s_q, D_K)

    # combine heads: free leading split, 4 major-index slices, one lane concat.
    o4 = o.reshape(NUM_HEADS, batch, s_q, D_K)
    out = jnp.concatenate([o4[h] for h in range(NUM_HEADS)], axis=-1)  # (B, s_q, D)
    return out.reshape(batch * s_q, D_MODEL)


# ----------------------------- Pallas kernel: full decoder stack ------------

def decoder_stack_kernel(x_ref, enc_ref, pe_ref,
                         wqkv_self_ref, wq_cross_ref, wkv_cross_ref,
                         bkv_cross_ref, wo_ref, wff1_ref, wff2_ref, vec_ref,
                         o_ref):
    B, S, D = x_ref.shape
    Skv = enc_ref.shape[1]

    # PositionalEncoding (+ dropout == identity), then flatten batch & seq.
    x = (x_ref[...] + pe_ref[...][None]).reshape(B * S, D)
    enc = enc_ref[...].reshape(B * Skv, D)

    # Layer-invariant cross-attention K/V projections of the encoder output:
    # ONE 128-lane-wide, lane-dense MXU dot covering all layers, hoisted out
    # of the layer loop.
    kv_all = jnp.dot(enc, wkv_cross_ref[...],
                     preferred_element_type=jnp.float32) + bkv_cross_ref[...]

    for l in range(NUM_LAYERS):                 # static unroll over layers
        vec = vec_ref[l]                        # (5, 128) bias / LN slab

        # ---- self-attention: fused, 128-lane-padded QKV projection ----
        qkv = jnp.dot(x, wqkv_self_ref[l],
                      preferred_element_type=jnp.float32) + vec[0:1, :]
        sa = _attention(qkv[:, 0:D], qkv[:, D:2 * D], qkv[:, 2 * D:3 * D],
                        S, S, B)
        wo = wo_ref[l]                          # (2, D, D) [self, cross]
        sa = jnp.dot(sa, wo[0], preferred_element_type=jnp.float32) \
            + vec[1:2, D:2 * D]
        x = _layer_norm(x + sa, vec[3:4, 0:D], vec[4:5, 0:D])

        # ---- cross-attention: Q from x; K/V pre-computed above ----
        q = jnp.dot(x, wq_cross_ref[l], preferred_element_type=jnp.float32) \
            + vec[1:2, 0:D]
        k = kv_all[:, l * 2 * D:l * 2 * D + D]
        v = kv_all[:, l * 2 * D + D:l * 2 * D + 2 * D]
        ca = _attention(q, k, v, S, Skv, B)
        ca = jnp.dot(ca, wo[1], preferred_element_type=jnp.float32) \
            + vec[1:2, 2 * D:3 * D]
        x = _layer_norm(x + ca, vec[3:4, D:2 * D], vec[4:5, D:2 * D])

        # ---- position-wise feed-forward ----
        h = jnp.maximum(
            jnp.dot(x, wff1_ref[l], preferred_element_type=jnp.float32)
            + vec[2:3, 0:D_FF], 0.0)
        ff = jnp.dot(h, wff2_ref[l], preferred_element_type=jnp.float32) \
            + vec[2:3, D_FF:D_FF + D]
        x = _layer_norm(x + ff, vec[3:4, 2 * D:3 * D], vec[4:5, 2 * D:3 * D])

    o_ref[...] = x                               # flat (B*S, D) store


def decoder_forward(x, enc, packed):
    B, S, D = x.shape
    pe = positional_encoding(S, D)
    (wqkv_self, wq_cross, wkv_cross, bkv_cross, wo, wff1, wff2, vecs) = packed
    n_in = 11
    vmem_spec = pl.BlockSpec(memory_space=pltpu.MemorySpace.VMEM)
    # No grid: whole (tiny) problem resident in VMEM, single kernel invocation.
    out2d = pl.pallas_call(
        decoder_stack_kernel,
        out_shape=jax.ShapeDtypeStruct((B * S, D), jnp.float32),
        in_specs=[vmem_spec] * n_in,
        out_specs=vmem_spec,
    )(x, enc, pe, wqkv_self, wq_cross, wkv_cross, bkv_cross,
      wo, wff1, wff2, vecs)
    return out2d.reshape(B, S, D)


# ----------------------------- parameter prep (outside the timed path) ------

def positional_encoding(seq_len, d_model):
    pos = np.arange(seq_len, dtype=np.float32)[:, None]
    div = np.exp(np.arange(0, d_model, 2, dtype=np.float32)
                 * (-math.log(10000.0) / d_model))
    pe = np.zeros((seq_len, d_model), np.float32)
    pe[:, 0::2] = np.sin(pos * div)
    pe[:, 1::2] = np.cos(pos * div)
    return jnp.asarray(pe)


def init_params(key, num_layers):
    """Natural (torch-like) parameters: per layer
    (wsa, bsa, wca, bca, w1, b1, w2, b2, lng, lnb), weights in (in, out) layout."""
    def lin(k, fan_in, shape):
        bound = 1.0 / math.sqrt(fan_in)
        return jax.random.uniform(k, shape, jnp.float32, -bound, bound)

    params = []
    for l in range(num_layers):
        keys = jax.random.split(jax.random.fold_in(key, l), 8)
        wsa = lin(keys[0], D_MODEL, (4, D_MODEL, D_MODEL))   # [Wq,Wk,Wv,Wo]
        bsa = lin(keys[1], D_MODEL, (4, D_MODEL))
        wca = lin(keys[2], D_MODEL, (4, D_MODEL, D_MODEL))
        bca = lin(keys[3], D_MODEL, (4, D_MODEL))
        w1 = lin(keys[4], D_MODEL, (D_MODEL, D_FF))
        b1 = lin(keys[5], D_MODEL, (1, D_FF))
        w2 = lin(keys[6], D_FF, (D_FF, D_MODEL))
        b2 = lin(keys[7], D_FF, (1, D_MODEL))
        lng = jnp.ones((3, D_MODEL), jnp.float32)            # LayerNorm gammas
        lnb = jnp.zeros((3, D_MODEL), jnp.float32)           # LayerNorm betas
        params.append((wsa, bsa, wca, bca, w1, b1, w2, b2, lng, lnb))
    return params


def pack_decoder_params(params):
    """Pack per-layer params into a few contiguous, lane-friendly arrays:
       wqkv_self (L,D,128)        [Wq*scale | Wk | Wv | 0]   (self-attn, padded)
       wq_cross  (L,D,D)          cross-attn Wq*scale
       wkv_cross (D,L*2*D)=(32,128) all layers' cross [Wk|Wv] (hoisted dot)
       bkv_cross (1,L*2*D)        matching biases
       wo        (L,2,D,D)        output projections [self, cross]
       wff1 (L,D,D_FF), wff2 (L,D_FF,D)
       vecs (L,5,128)             biases + LayerNorm params, lane-dense rows."""
    scale = 1.0 / math.sqrt(D_K)
    pad32 = jnp.zeros((32,), jnp.float32)
    wqkv_self_l, wq_cross_l, wo_l, wff1_l, wff2_l, vec_l = [], [], [], [], [], []
    wkv_cols, bkv_cols = [], []
    for (wsa, bsa, wca, bca, w1, b1, w2, b2, lng, lnb) in params:
        # self-attn fused QKV, padded to 128 lanes
        wqkv = jnp.concatenate(
            [wsa[0] * scale, wsa[1], wsa[2],
             jnp.zeros((D_MODEL, 128 - 3 * D_MODEL), jnp.float32)], axis=1)
        bqkv = jnp.concatenate([bsa[0] * scale, bsa[1], bsa[2], pad32], axis=0)
        wqkv_self_l.append(wqkv)
        # cross-attn Q (scale folded)
        wq_cross_l.append(wca[0] * scale)
        # cross-attn K|V columns for this layer (hoisted; enc is layer-invariant)
        wkv_cols.append(jnp.concatenate([wca[1], wca[2]], axis=1))     # (D, 2D)
        bkv_cols.append(jnp.concatenate([bca[1], bca[2]], axis=0))     # (2D,)
        # output projections
        wo_l.append(jnp.stack([wsa[3], wca[3]], axis=0))
        wff1_l.append(w1)
        wff2_l.append(w2)
        # bias / LayerNorm slab (lane-dense rows of 128)
        row0 = bqkv                                                      # (128,)
        row1 = jnp.concatenate([bca[0] * scale, bsa[3], bca[3], pad32], 0)
        row2 = jnp.concatenate([b1.reshape(-1), b2.reshape(-1), pad32], 0)
        row3 = jnp.concatenate([lng[0], lng[1], lng[2], pad32], axis=0)
        row4 = jnp.concatenate([lnb[0], lnb[1], lnb[2], pad32], axis=0)
        vec_l.append(jnp.stack([row0, row1, row2, row3, row4], axis=0))
    wkv_cross = jnp.concatenate(wkv_cols, axis=1)            # (D, L*2*D)
    bkv_cross = jnp.concatenate(bkv_cols, axis=0)[None, :]   # (1, L*2*D)
    return (jnp.stack(wqkv_self_l), jnp.stack(wq_cross_l), wkv_cross, bkv_cross,
            jnp.stack(wo_l), jnp.stack(wff1_l), jnp.stack(wff2_l),
            jnp.stack(vec_l))


# ----------------------------- pure-JAX reference for validation ------------

def _ref_layer(x, enc, p):
    wsa, bsa, wca, bca, w1, b1, w2, b2, lng, lnb = p

    def mha(qin, kvin, w, b):
        q = qin @ w[0] + b[0]
        k = kvin @ w[1] + b[1]
        v = kvin @ w[2] + b[2]
        B, Sq, _ = q.shape
        Skv = k.shape[1]
        qh = q.reshape(B, Sq, NUM_HEADS, D_K).transpose(0, 2, 1, 3)
        kh = k.reshape(B, Skv, NUM_HEADS, D_K).transpose(0, 2, 1, 3)
        vh = v.reshape(B, Skv, NUM_HEADS, D_K).transpose(0, 2, 1, 3)
        scores = (qh @ kh.transpose(0, 1, 3, 2)) / math.sqrt(D_K)
        probs = jax.nn.softmax(scores, axis=-1)
        out = (probs @ vh).transpose(0, 2, 1, 3).reshape(B, Sq, D_MODEL)
        return out @ w[3] + b[3]

    def ln(z, g, bt):
        mu = z.mean(-1, keepdims=True)
        var = ((z - mu) ** 2).mean(-1, keepdims=True)
        return (z - mu) / jnp.sqrt(var + LN_EPS) * g + bt

    x = ln(x + mha(x, x, wsa, bsa), lng[0], lnb[0])
    x = ln(x + mha(x, enc, wca, bca), lng[1], lnb[1])
    h = jnp.maximum(x @ w1 + b1, 0.0)
    x = ln(x + h @ w2 + b2, lng[2], lnb[2])
    return x


if __name__ == "__main__":
    key = jax.random.PRNGKey(0)
    kx, ke, kp = jax.random.split(key, 3)

    B, S, S_KV = 2, 8, 8
    x = jax.random.normal(kx, (B, S, D_MODEL), jnp.float32)
    enc_output = jax.random.normal(ke, (B, S_KV, D_MODEL), jnp.float32)
    params = init_params(kp, NUM_LAYERS)
    packed = pack_decoder_params(params)                  # one-time packing

    fwd = jax.jit(decoder_forward)
    out = fwd(x, enc_output, packed)
    out = jax.block_until_ready(out)

    # numerical check against a plain-JAX reference of the same math
    ref = x + positional_encoding(S, D_MODEL)[None]
    for p in params:
        ref = _ref_layer(ref, enc_output, p)
    # tolerance accounts for the EUP approximate reciprocal in softmax
    np.testing.assert_allclose(np.asarray(out), np.asarray(ref),
                               rtol=2e-3, atol=2e-3)

    print("KERNEL_OK")
</pallas_src>

<mosaic_0001>
module attributes {stable_mosaic.version = 11 : i64} {
  func.func @decoder_stack_kernel(%arg0: memref<2x8x32xf32, #tpu.memory_space<vmem>>, %arg1: memref<2x8x32xf32, #tpu.memory_space<vmem>>, %arg2: memref<8x32xf32, #tpu.memory_space<vmem>>, %arg3: memref<2x32x128xf32, #tpu.memory_space<vmem>>, %arg4: memref<2x32x32xf32, #tpu.memory_space<vmem>>, %arg5: memref<32x128xf32, #tpu.memory_space<vmem>>, %arg6: memref<1x128xf32, #tpu.memory_space<vmem>>, %arg7: memref<2x2x32x32xf32, #tpu.memory_space<vmem>>, %arg8: memref<2x32x64xf32, #tpu.memory_space<vmem>>, %arg9: memref<2x64x32xf32, #tpu.memory_space<vmem>>, %arg10: memref<2x5x128xf32, #tpu.memory_space<vmem>>, %arg11: memref<16x32xf32, #tpu.memory_space<vmem>>) attributes {dimension_semantics = [], scalar_prefetch = 0 : i64, scratch_operands = 0 : i64, tpu.core_type = #tpu.core_type<tc>} {
    %c0 = arith.constant 0 : index
    %c0_0 = arith.constant 0 : index
    %c0_1 = arith.constant 0 : index
    %0 = vector.load %arg0[%c0, %c0_0, %c0_1] : memref<2x8x32xf32, #tpu.memory_space<vmem>>, vector<2x8x32xf32>
    %c0_2 = arith.constant 0 : index
    %c0_3 = arith.constant 0 : index
    %1 = vector.load %arg2[%c0_2, %c0_3] : memref<8x32xf32, #tpu.memory_space<vmem>>, vector<8x32xf32>
    %2 = vector.shape_cast %1 : vector<8x32xf32> to vector<1x8x32xf32>
    %3 = vector.broadcast %2 : vector<1x8x32xf32> to vector<2x8x32xf32>
    %4 = arith.addf %0, %3 : vector<2x8x32xf32>
    %5 = vector.shape_cast %4 : vector<2x8x32xf32> to vector<16x32xf32>
    %c0_4 = arith.constant 0 : index
    %c0_5 = arith.constant 0 : index
    %c0_6 = arith.constant 0 : index
    %6 = vector.load %arg1[%c0_4, %c0_5, %c0_6] : memref<2x8x32xf32, #tpu.memory_space<vmem>>, vector<2x8x32xf32>
    %7 = vector.shape_cast %6 : vector<2x8x32xf32> to vector<16x32xf32>
    %c0_7 = arith.constant 0 : index
    %c0_8 = arith.constant 0 : index
    %8 = vector.load %arg5[%c0_7, %c0_8] : memref<32x128xf32, #tpu.memory_space<vmem>>, vector<32x128xf32>
    %cst = arith.constant dense<0.000000e+00> : vector<16x128xf32>
    %9 = tpu.matmul %7, %8, %cst {dimension_numbers = #tpu.dot_dimension_numbers<[1], [0], [0], [1], [0, 0, 1, 1], [], []>} : vector<16x32xf32>, vector<32x128xf32>, vector<16x128xf32> -> vector<16x128xf32>
    %c0_9 = arith.constant 0 : index
    %c0_10 = arith.constant 0 : index
    %10 = vector.load %arg6[%c0_9, %c0_10] : memref<1x128xf32, #tpu.memory_space<vmem>>, vector<1x128xf32>
    %11 = vector.broadcast %10 : vector<1x128xf32> to vector<16x128xf32>
    %12 = arith.addf %9, %11 : vector<16x128xf32>
    %c0_11 = arith.constant 0 : index
    %c0_12 = arith.constant 0 : index
    %c0_13 = arith.constant 0 : index
    %13 = vector.load %arg10[%c0_11, %c0_12, %c0_13] : memref<2x5x128xf32, #tpu.memory_space<vmem>>, vector<1x5x128xf32>
    %14 = vector.shape_cast %13 : vector<1x5x128xf32> to vector<5x128xf32>
    %c0_14 = arith.constant 0 : index
    %c0_15 = arith.constant 0 : index
    %c0_16 = arith.constant 0 : index
    %15 = vector.load %arg3[%c0_14, %c0_15, %c0_16] : memref<2x32x128xf32, #tpu.memory_space<vmem>>, vector<1x32x128xf32>
    %16 = vector.shape_cast %15 : vector<1x32x128xf32> to vector<32x128xf32>
    %cst_17 = arith.constant dense<0.000000e+00> : vector<16x128xf32>
    %17 = tpu.matmul %5, %16, %cst_17 {dimension_numbers = #tpu.dot_dimension_numbers<[1], [0], [0], [1], [0, 0, 1, 1], [], []>} : vector<16x32xf32>, vector<32x128xf32>, vector<16x128xf32> -> vector<16x128xf32>
    %18 = vector.extract_strided_slice %14 {offsets = [0, 0], sizes = [1, 128], strides = [1, 1]} : vector<5x128xf32> to vector<1x128xf32>
    %19 = vector.broadcast %18 : vector<1x128xf32> to vector<16x128xf32>
    %20 = arith.addf %17, %19 : vector<16x128xf32>
    %21 = vector.extract_strided_slice %20 {offsets = [0, 0], sizes = [16, 32], strides = [1, 1]} : vector<16x128xf32> to vector<16x32xf32>
    %22 = vector.extract_strided_slice %20 {offsets = [0, 32], sizes = [16, 32], strides = [1, 1]} : vector<16x128xf32> to vector<16x32xf32>
    %23 = vector.extract_strided_slice %20 {offsets = [0, 64], sizes = [16, 32], strides = [1, 1]} : vector<16x128xf32> to vector<16x32xf32>
    %24 = vector.shape_cast %21 : vector<16x32xf32> to vector<2x8x32xf32>
    %25 = vector.shape_cast %22 : vector<16x32xf32> to vector<2x8x32xf32>
    %26 = vector.shape_cast %23 : vector<16x32xf32> to vector<2x8x32xf32>
    %27 = vector.extract_strided_slice %24 {offsets = [0, 0, 0], sizes = [2, 8, 8], strides = [1, 1, 1]} : vector<2x8x32xf32> to vector<2x8x8xf32>
    %28 = vector.extract_strided_slice %24 {offsets = [0, 0, 8], sizes = [2, 8, 8], strides = [1, 1, 1]} : vector<2x8x32xf32> to vector<2x8x8xf32>
    %29 = vector.extract_strided_slice %24 {offsets = [0, 0, 16], sizes = [2, 8, 8], strides = [1, 1, 1]} : vector<2x8x32xf32> to vector<2x8x8xf32>
    %30 = vector.extract_strided_slice %24 {offsets = [0, 0, 24], sizes = [2, 8, 8], strides = [1, 1, 1]} : vector<2x8x32xf32> to vector<2x8x8xf32>
    %31 = vector.shape_cast %27 : vector<2x8x8xf32> to vector<1x2x8x8xf32>
    %32 = vector.shape_cast %28 : vector<2x8x8xf32> to vector<1x2x8x8xf32>
    %33 = vector.shape_cast %29 : vector<2x8x8xf32> to vector<1x2x8x8xf32>
    %34 = vector.shape_cast %30 : vector<2x8x8xf32> to vector<1x2x8x8xf32>
    %35 = tpu.concatenate %31, %32, %33, %34 in 0 : vector<1x2x8x8xf32>, vector<1x2x8x8xf32>, vector<1x2x8x8xf32>, vector<1x2x8x8xf32> -> vector<4x2x8x8xf32>
    %36 = vector.shape_cast %35 : vector<4x2x8x8xf32> to vector<8x8x8xf32>
    %37 = vector.extract_strided_slice %25 {offsets = [0, 0, 0], sizes = [2, 8, 8], strides = [1, 1, 1]} : vector<2x8x32xf32> to vector<2x8x8xf32>
    %38 = vector.extract_strided_slice %25 {offsets = [0, 0, 8], sizes = [2, 8, 8], strides = [1, 1, 1]} : vector<2x8x32xf32> to vector<2x8x8xf32>
    %39 = vector.extract_strided_slice %25 {offsets = [0, 0, 16], sizes = [2, 8, 8], strides = [1, 1, 1]} : vector<2x8x32xf32> to vector<2x8x8xf32>
    %40 = vector.extract_strided_slice %25 {offsets = [0, 0, 24], sizes = [2, 8, 8], strides = [1, 1, 1]} : vector<2x8x32xf32> to vector<2x8x8xf32>
    %41 = vector.shape_cast %37 : vector<2x8x8xf32> to vector<1x2x8x8xf32>
    %42 = vector.shape_cast %38 : vector<2x8x8xf32> to vector<1x2x8x8xf32>
    %43 = vector.shape_cast %39 : vector<2x8x8xf32> to vector<1x2x8x8xf32>
    %44 = vector.shape_cast %40 : vector<2x8x8xf32> to vector<1x2x8x8xf32>
    %45 = tpu.concatenate %41, %42, %43, %44 in 0 : vector<1x2x8x8xf32>, vector<1x2x8x8xf32>, vector<1x2x8x8xf32>, vector<1x2x8x8xf32> -> vector<4x2x8x8xf32>
    %46 = vector.shape_cast %45 : vector<4x2x8x8xf32> to vector<8x8x8xf32>
    %47 = vector.extract_strided_slice %26 {offsets = [0, 0, 0], sizes = [2, 8, 8], strides = [1, 1, 1]} : vector<2x8x32xf32> to vector<2x8x8xf32>
    %48 = vector.extract_strided_slice %26 {offsets = [0, 0, 8], sizes = [2, 8, 8], strides = [1, 1, 1]} : vector<2x8x32xf32> to vector<2x8x8xf32>
    %49 = vector.extract_strided_slice %26 {offsets = [0, 0, 16], sizes = [2, 8, 8], strides = [1, 1, 1]} : vector<2x8x32xf32> to vector<2x8x8xf32>
    %50 = vector.extract_strided_slice %26 {offsets = [0, 0, 24], sizes = [2, 8, 8], strides = [1, 1, 1]} : vector<2x8x32xf32> to vector<2x8x8xf32>
    %51 = vector.shape_cast %47 : vector<2x8x8xf32> to vector<1x2x8x8xf32>
    %52 = vector.shape_cast %48 : vector<2x8x8xf32> to vector<1x2x8x8xf32>
    %53 = vector.shape_cast %49 : vector<2x8x8xf32> to vector<1x2x8x8xf32>
    %54 = vector.shape_cast %50 : vector<2x8x8xf32> to vector<1x2x8x8xf32>
    %55 = tpu.concatenate %51, %52, %53, %54 in 0 : vector<1x2x8x8xf32>, vector<1x2x8x8xf32>, vector<1x2x8x8xf32>, vector<1x2x8x8xf32> -> vector<4x2x8x8xf32>
    %56 = vector.shape_cast %55 : vector<4x2x8x8xf32> to vector<8x8x8xf32>
    "tpu.trace_start"() <{level = 10 : i32, message = "gqd,gkd->gqk"}> : () -> ()
    %cst_18 = arith.constant dense<0.000000e+00> : vector<8x8x8xf32>
    %57 = tpu.matmul %36, %46, %cst_18 {dimension_numbers = #tpu.dot_dimension_numbers<[2], [2], [1], [1], [0, 0, 0, 1, 1, 1], [0], [0]>} : vector<8x8x8xf32>, vector<8x8x8xf32>, vector<8x8x8xf32> -> vector<8x8x8xf32>
    "tpu.trace_stop"() : () -> ()
    %cst_19 = arith.constant dense<0xFF800000> : vector<8x8xf32>
    %58 = vector.multi_reduction <maximumf>, %57, %cst_19 [2] : vector<8x8x8xf32> to vector<8x8xf32>
    %59 = vector.shape_cast %58 : vector<8x8xf32> to vector<8x8x1xf32>
    %60 = vector.broadcast %59 : vector<8x8x1xf32> to vector<8x8x8xf32>
    %61 = arith.subf %57, %60 : vector<8x8x8xf32>
    %62 = math.exp %61 : vector<8x8x8xf32>
    %cst_20 = arith.constant dense<0.000000e+00> : vector<8x8xf32>
    %63 = vector.multi_reduction <add>, %62, %cst_20 [2] : vector<8x8x8xf32> to vector<8x8xf32>
    %64 = vector.shape_cast %63 : vector<8x8xf32> to vector<8x8x1xf32>
    %65 = tpu.reciprocal %64 {approx = true} : vector<8x8x1xf32> -> vector<8x8x1xf32>
    %66 = vector.broadcast %65 : vector<8x8x1xf32> to vector<8x8x8xf32>
    %67 = arith.mulf %62, %66 : vector<8x8x8xf32>
    "tpu.trace_start"() <{level = 10 : i32, message = "gqk,gkd->gqd"}> : () -> ()
    %cst_21 = arith.constant dense<0.000000e+00> : vector<8x8x8xf32>
    %68 = tpu.matmul %67, %56, %cst_21 {dimension_numbers = #tpu.dot_dimension_numbers<[2], [1], [1], [2], [0, 0, 0, 1, 1, 2], [0], [0]>} : vector<8x8x8xf32>, vector<8x8x8xf32>, vector<8x8x8xf32> -> vector<8x8x8xf32>
    "tpu.trace_stop"() : () -> ()
    %69 = vector.shape_cast %68 : vector<8x8x8xf32> to vector<4x2x8x8xf32>
    %70 = vector.extract_strided_slice %69 {offsets = [0, 0, 0, 0], sizes = [1, 2, 8, 8], strides = [1, 1, 1, 1]} : vector<4x2x8x8xf32> to vector<1x2x8x8xf32>
    %71 = vector.shape_cast %70 : vector<1x2x8x8xf32> to vector<2x8x8xf32>
    %72 = vector.extract_strided_slice %69 {offsets = [1, 0, 0, 0], sizes = [1, 2, 8, 8], strides = [1, 1, 1, 1]} : vector<4x2x8x8xf32> to vector<1x2x8x8xf32>
    %73 = vector.shape_cast %72 : vector<1x2x8x8xf32> to vector<2x8x8xf32>
    %74 = vector.extract_strided_slice %69 {offsets = [2, 0, 0, 0], sizes = [1, 2, 8, 8], strides = [1, 1, 1, 1]} : vector<4x2x8x8xf32> to vector<1x2x8x8xf32>
    %75 = vector.shape_cast %74 : vector<1x2x8x8xf32> to vector<2x8x8xf32>
    %76 = vector.extract_strided_slice %69 {offsets = [3, 0, 0, 0], sizes = [1, 2, 8, 8], strides = [1, 1, 1, 1]} : vector<4x2x8x8xf32> to vector<1x2x8x8xf32>
    %77 = vector.shape_cast %76 : vector<1x2x8x8xf32> to vector<2x8x8xf32>
    %78 = tpu.concatenate %71, %73, %75, %77 in 2 : vector<2x8x8xf32>, vector<2x8x8xf32>, vector<2x8x8xf32>, vector<2x8x8xf32> -> vector<2x8x32xf32>
    %79 = vector.shape_cast %78 : vector<2x8x32xf32> to vector<16x32xf32>
    %c0_22 = arith.constant 0 : index
    %c0_23 = arith.constant 0 : index
    %c0_24 = arith.constant 0 : index
    %c0_25 = arith.constant 0 : index
    %80 = vector.load %arg7[%c0_22, %c0_23, %c0_24, %c0_25] : memref<2x2x32x32xf32, #tpu.memory_space<vmem>>, vector<1x2x32x32xf32>
    %81 = vector.shape_cast %80 : vector<1x2x32x32xf32> to vector<2x32x32xf32>
    %82 = vector.extract_strided_slice %81 {offsets = [0, 0, 0], sizes = [1, 32, 32], strides = [1, 1, 1]} : vector<2x32x32xf32> to vector<1x32x32xf32>
    %83 = vector.shape_cast %82 : vector<1x32x32xf32> to vector<32x32xf32>
    %cst_26 = arith.constant dense<0.000000e+00> : vector<16x32xf32>
    %84 = tpu.matmul %79, %83, %cst_26 {dimension_numbers = #tpu.dot_dimension_numbers<[1], [0], [0], [1], [0, 0, 1, 1], [], []>} : vector<16x32xf32>, vector<32x32xf32>, vector<16x32xf32> -> vector<16x32xf32>
    %85 = vector.extract_strided_slice %14 {offsets = [1, 32], sizes = [1, 32], strides = [1, 1]} : vector<5x128xf32> to vector<1x32xf32>
    %86 = vector.broadcast %85 : vector<1x32xf32> to vector<16x32xf32>
    %87 = arith.addf %84, %86 : vector<16x32xf32>
    %88 = arith.addf %5, %87 : vector<16x32xf32>
    %89 = vector.extract_strided_slice %14 {offsets = [3, 0], sizes = [1, 32], strides = [1, 1]} : vector<5x128xf32> to vector<1x32xf32>
    %90 = vector.extract_strided_slice %14 {offsets = [4, 0], sizes = [1, 32], strides = [1, 1]} : vector<5x128xf32> to vector<1x32xf32>
    %cst_27 = arith.constant dense<0.000000e+00> : vector<16xf32>
    %91 = vector.multi_reduction <add>, %88, %cst_27 [1] : vector<16x32xf32> to vector<16xf32>
    %92 = vector.shape_cast %91 : vector<16xf32> to vector<16x1xf32>
    %cst_28 = arith.constant 3.200000e+01 : f32
    %93 = vector.broadcast %cst_28 : f32 to vector<16x1xf32>
    %94 = arith.divf %92, %93 : vector<16x1xf32>
    %95 = vector.broadcast %94 : vector<16x1xf32> to vector<16x32xf32>
    %96 = arith.subf %88, %95 : vector<16x32xf32>
    %97 = arith.mulf %96, %96 : vector<16x32xf32>
    %cst_29 = arith.constant dense<0.000000e+00> : vector<16xf32>
    %98 = vector.multi_reduction <add>, %97, %cst_29 [1] : vector<16x32xf32> to vector<16xf32>
    %99 = vector.shape_cast %98 : vector<16xf32> to vector<16x1xf32>
    %cst_30 = arith.constant 3.200000e+01 : f32
    %100 = vector.broadcast %cst_30 : f32 to vector<16x1xf32>
    %101 = arith.divf %99, %100 : vector<16x1xf32>
    %cst_31 = arith.constant 9.99999974E-6 : f32
    %102 = vector.broadcast %cst_31 : f32 to vector<16x1xf32>
    %103 = arith.addf %101, %102 : vector<16x1xf32>
    %104 = math.rsqrt %103 : vector<16x1xf32>
    %105 = vector.broadcast %104 : vector<16x1xf32> to vector<16x32xf32>
    %106 = arith.mulf %96, %105 : vector<16x32xf32>
    %107 = vector.broadcast %89 : vector<1x32xf32> to vector<16x32xf32>
    %108 = arith.mulf %106, %107 : vector<16x32xf32>
    %109 = vector.broadcast %90 : vector<1x32xf32> to vector<16x32xf32>
    %110 = arith.addf %108, %109 : vector<16x32xf32>
    %c0_32 = arith.constant 0 : index
    %c0_33 = arith.constant 0 : index
    %c0_34 = arith.constant 0 : index
    %111 = vector.load %arg4[%c0_32, %c0_33, %c0_34] : memref<2x32x32xf32, #tpu.memory_space<vmem>>, vector<1x32x32xf32>
    %112 = vector.shape_cast %111 : vector<1x32x32xf32> to vector<32x32xf32>
    %cst_35 = arith.constant dense<0.000000e+00> : vector<16x32xf32>
    %113 = tpu.matmul %110, %112, %cst_35 {dimension_numbers = #tpu.dot_dimension_numbers<[1], [0], [0], [1], [0, 0, 1, 1], [], []>} : vector<16x32xf32>, vector<32x32xf32>, vector<16x32xf32> -> vector<16x32xf32>
    %114 = vector.extract_strided_slice %14 {offsets = [1, 0], sizes = [1, 32], strides = [1, 1]} : vector<5x128xf32> to vector<1x32xf32>
    %115 = vector.broadcast %114 : vector<1x32xf32> to vector<16x32xf32>
    %116 = arith.addf %113, %115 : vector<16x32xf32>
    %117 = vector.extract_strided_slice %12 {offsets = [0, 0], sizes = [16, 32], strides = [1, 1]} : vector<16x128xf32> to vector<16x32xf32>
    %118 = vector.extract_strided_slice %12 {offsets = [0, 32], sizes = [16, 32], strides = [1, 1]} : vector<16x128xf32> to vector<16x32xf32>
    %119 = vector.shape_cast %116 : vector<16x32xf32> to vector<2x8x32xf32>
    %120 = vector.shape_cast %117 : vector<16x32xf32> to vector<2x8x32xf32>
    %121 = vector.shape_cast %118 : vector<16x32xf32> to vector<2x8x32xf32>
    %122 = vector.extract_strided_slice %119 {offsets = [0, 0, 0], sizes = [2, 8, 8], strides = [1, 1, 1]} : vector<2x8x32xf32> to vector<2x8x8xf32>
    %123 = vector.extract_strided_slice %119 {offsets = [0, 0, 8], sizes = [2, 8, 8], strides = [1, 1, 1]} : vector<2x8x32xf32> to vector<2x8x8xf32>
    %124 = vector.extract_strided_slice %119 {offsets = [0, 0, 16], sizes = [2, 8, 8], strides = [1, 1, 1]} : vector<2x8x32xf32> to vector<2x8x8xf32>
    %125 = vector.extract_strided_slice %119 {offsets = [0, 0, 24], sizes = [2, 8, 8], strides = [1, 1, 1]} : vector<2x8x32xf32> to vector<2x8x8xf32>
    %126 = vector.shape_cast %122 : vector<2x8x8xf32> to vector<1x2x8x8xf32>
    %127 = vector.shape_cast %123 : vector<2x8x8xf32> to vector<1x2x8x8xf32>
    %128 = vector.shape_cast %124 : vector<2x8x8xf32> to vector<1x2x8x8xf32>
    %129 = vector.shape_cast %125 : vector<2x8x8xf32> to vector<1x2x8x8xf32>
    %130 = tpu.concatenate %126, %127, %128, %129 in 0 : vector<1x2x8x8xf32>, vector<1x2x8x8xf32>, vector<1x2x8x8xf32>, vector<1x2x8x8xf32> -> vector<4x2x8x8xf32>
    %131 = vector.shape_cast %130 : vector<4x2x8x8xf32> to vector<8x8x8xf32>
    %132 = vector.extract_strided_slice %120 {offsets = [0, 0, 0], sizes = [2, 8, 8], strides = [1, 1, 1]} : vector<2x8x32xf32> to vector<2x8x8xf32>
    %133 = vector.extract_strided_slice %120 {offsets = [0, 0, 8], sizes = [2, 8, 8], strides = [1, 1, 1]} : vector<2x8x32xf32> to vector<2x8x8xf32>
    %134 = vector.extract_strided_slice %120 {offsets = [0, 0, 16], sizes = [2, 8, 8], strides = [1, 1, 1]} : vector<2x8x32xf32> to vector<2x8x8xf32>
    %135 = vector.extract_strided_slice %120 {offsets = [0, 0, 24], sizes = [2, 8, 8], strides = [1, 1, 1]} : vector<2x8x32xf32> to vector<2x8x8xf32>
    %136 = vector.shape_cast %132 : vector<2x8x8xf32> to vector<1x2x8x8xf32>
    %137 = vector.shape_cast %133 : vector<2x8x8xf32> to vector<1x2x8x8xf32>
    %138 = vector.shape_cast %134 : vector<2x8x8xf32> to vector<1x2x8x8xf32>
    %139 = vector.shape_cast %135 : vector<2x8x8xf32> to vector<1x2x8x8xf32>
    %140 = tpu.concatenate %136, %137, %138, %139 in 0 : vector<1x2x8x8xf32>, vector<1x2x8x8xf32>, vector<1x2x8x8xf32>, vector<1x2x8x8xf32> -> vector<4x2x8x8xf32>
    %141 = vector.shape_cast %140 : vector<4x2x8x8xf32> to vector<8x8x8xf32>
    %142 = vector.extract_strided_slice %121 {offsets = [0, 0, 0], sizes = [2, 8, 8], strides = [1, 1, 1]} : vector<2x8x32xf32> to vector<2x8x8xf32>
    %143 = vector.extract_strided_slice %121 {offsets = [0, 0, 8], sizes = [2, 8, 8], strides = [1, 1, 1]} : vector<2x8x32xf32> to vector<2x8x8xf32>
    %144 = vector.extract_strided_slice %121 {offsets = [0, 0, 16], sizes = [2, 8, 8], strides = [1, 1, 1]} : vector<2x8x32xf32> to vector<2x8x8xf32>
    %145 = vector.extract_strided_slice %121 {offsets = [0, 0, 24], sizes = [2, 8, 8], strides = [1, 1, 1]} : vector<2x8x32xf32> to vector<2x8x8xf32>
    %146 = vector.shape_cast %142 : vector<2x8x8xf32> to vector<1x2x8x8xf32>
    %147 = vector.shape_cast %143 : vector<2x8x8xf32> to vector<1x2x8x8xf32>
    %148 = vector.shape_cast %144 : vector<2x8x8xf32> to vector<1x2x8x8xf32>
    %149 = vector.shape_cast %145 : vector<2x8x8xf32> to vector<1x2x8x8xf32>
    %150 = tpu.concatenate %146, %147, %148, %149 in 0 : vector<1x2x8x8xf32>, vector<1x2x8x8xf32>, vector<1x2x8x8xf32>, vector<1x2x8x8xf32> -> vector<4x2x8x8xf32>
    %151 = vector.shape_cast %150 : vector<4x2x8x8xf32> to vector<8x8x8xf32>
    "tpu.trace_start"() <{level = 10 : i32, message = "gqd,gkd->gqk"}> : () -> ()
    %cst_36 = arith.constant dense<0.000000e+00> : vector<8x8x8xf32>
    %152 = tpu.matmul %131, %141, %cst_36 {dimension_numbers = #tpu.dot_dimension_numbers<[2], [2], [1], [1], [0, 0, 0, 1, 1, 1], [0], [0]>} : vector<8x8x8xf32>, vector<8x8x8xf32>, vector<8x8x8xf32> -> vector<8x8x8xf32>
    "tpu.trace_stop"() : () -> ()
    %cst_37 = arith.constant dense<0xFF800000> : vector<8x8xf32>
    %153 = vector.multi_reduction <maximumf>, %152, %cst_37 [2] : vector<8x8x8xf32> to vector<8x8xf32>
    %154 = vector.shape_cast %153 : vector<8x8xf32> to vector<8x8x1xf32>
    %155 = vector.broadcast %154 : vector<8x8x1xf32> to vector<8x8x8xf32>
    %156 = arith.subf %152, %155 : vector<8x8x8xf32>
    %157 = math.exp %156 : vector<8x8x8xf32>
    %cst_38 = arith.constant dense<0.000000e+00> : vector<8x8xf32>
    %158 = vector.multi_reduction <add>, %157, %cst_38 [2] : vector<8x8x8xf32> to vector<8x8xf32>
    %159 = vector.shape_cast %158 : vector<8x8xf32> to vector<8x8x1xf32>
    %160 = tpu.reciprocal %159 {approx = true} : vector<8x8x1xf32> -> vector<8x8x1xf32>
    %161 = vector.broadcast %160 : vector<8x8x1xf32> to vector<8x8x8xf32>
    %162 = arith.mulf %157, %161 : vector<8x8x8xf32>
    "tpu.trace_start"() <{level = 10 : i32, message = "gqk,gkd->gqd"}> : () -> ()
    %cst_39 = arith.constant dense<0.000000e+00> : vector<8x8x8xf32>
    %163 = tpu.matmul %162, %151, %cst_39 {dimension_numbers = #tpu.dot_dimension_numbers<[2], [1], [1], [2], [0, 0, 0, 1, 1, 2], [0], [0]>} : vector<8x8x8xf32>, vector<8x8x8xf32>, vector<8x8x8xf32> -> vector<8x8x8xf32>
    "tpu.trace_stop"() : () -> ()
    %164 = vector.shape_cast %163 : vector<8x8x8xf32> to vector<4x2x8x8xf32>
    %165 = vector.extract_strided_slice %164 {offsets = [0, 0, 0, 0], sizes = [1, 2, 8, 8], strides = [1, 1, 1, 1]} : vector<4x2x8x8xf32> to vector<1x2x8x8xf32>
    %166 = vector.shape_cast %165 : vector<1x2x8x8xf32> to vector<2x8x8xf32>
    %167 = vector.extract_strided_slice %164 {offsets = [1, 0, 0, 0], sizes = [1, 2, 8, 8], strides = [1, 1, 1, 1]} : vector<4x2x8x8xf32> to vector<1x2x8x8xf32>
    %168 = vector.shape_cast %167 : vector<1x2x8x8xf32> to vector<2x8x8xf32>
    %169 = vector.extract_strided_slice %164 {offsets = [2, 0, 0, 0], sizes = [1, 2, 8, 8], strides = [1, 1, 1, 1]} : vector<4x2x8x8xf32> to vector<1x2x8x8xf32>
    %170 = vector.shape_cast %169 : vector<1x2x8x8xf32> to vector<2x8x8xf32>
    %171 = vector.extract_strided_slice %164 {offsets = [3, 0, 0, 0], sizes = [1, 2, 8, 8], strides = [1, 1, 1, 1]} : vector<4x2x8x8xf32> to vector<1x2x8x8xf32>
    %172 = vector.shape_cast %171 : vector<1x2x8x8xf32> to vector<2x8x8xf32>
    %173 = tpu.concatenate %166, %168, %170, %172 in 2 : vector<2x8x8xf32>, vector<2x8x8xf32>, vector<2x8x8xf32>, vector<2x8x8xf32> -> vector<2x8x32xf32>
    %174 = vector.shape_cast %173 : vector<2x8x32xf32> to vector<16x32xf32>
    %175 = vector.extract_strided_slice %81 {offsets = [1, 0, 0], sizes = [1, 32, 32], strides = [1, 1, 1]} : vector<2x32x32xf32> to vector<1x32x32xf32>
    %176 = vector.shape_cast %175 : vector<1x32x32xf32> to vector<32x32xf32>
    %cst_40 = arith.constant dense<0.000000e+00> : vector<16x32xf32>
    %177 = tpu.matmul %174, %176, %cst_40 {dimension_numbers = #tpu.dot_dimension_numbers<[1], [0], [0], [1], [0, 0, 1, 1], [], []>} : vector<16x32xf32>, vector<32x32xf32>, vector<16x32xf32> -> vector<16x32xf32>
    %178 = vector.extract_strided_slice %14 {offsets = [1, 64], sizes = [1, 32], strides = [1, 1]} : vector<5x128xf32> to vector<1x32xf32>
    %179 = vector.broadcast %178 : vector<1x32xf32> to vector<16x32xf32>
    %180 = arith.addf %177, %179 : vector<16x32xf32>
    %181 = arith.addf %110, %180 : vector<16x32xf32>
    %182 = vector.extract_strided_slice %14 {offsets = [3, 32], sizes = [1, 32], strides = [1, 1]} : vector<5x128xf32> to vector<1x32xf32>
    %183 = vector.extract_strided_slice %14 {offsets = [4, 32], sizes = [1, 32], strides = [1, 1]} : vector<5x128xf32> to vector<1x32xf32>
    %cst_41 = arith.constant dense<0.000000e+00> : vector<16xf32>
    %184 = vector.multi_reduction <add>, %181, %cst_41 [1] : vector<16x32xf32> to vector<16xf32>
    %185 = vector.shape_cast %184 : vector<16xf32> to vector<16x1xf32>
    %cst_42 = arith.constant 3.200000e+01 : f32
    %186 = vector.broadcast %cst_42 : f32 to vector<16x1xf32>
    %187 = arith.divf %185, %186 : vector<16x1xf32>
    %188 = vector.broadcast %187 : vector<16x1xf32> to vector<16x32xf32>
    %189 = arith.subf %181, %188 : vector<16x32xf32>
    %190 = arith.mulf %189, %189 : vector<16x32xf32>
    %cst_43 = arith.constant dense<0.000000e+00> : vector<16xf32>
    %191 = vector.multi_reduction <add>, %190, %cst_43 [1] : vector<16x32xf32> to vector<16xf32>
    %192 = vector.shape_cast %191 : vector<16xf32> to vector<16x1xf32>
    %cst_44 = arith.constant 3.200000e+01 : f32
    %193 = vector.broadcast %cst_44 : f32 to vector<16x1xf32>
    %194 = arith.divf %192, %193 : vector<16x1xf32>
    %cst_45 = arith.constant 9.99999974E-6 : f32
    %195 = vector.broadcast %cst_45 : f32 to vector<16x1xf32>
    %196 = arith.addf %194, %195 : vector<16x1xf32>
    %197 = math.rsqrt %196 : vector<16x1xf32>
    %198 = vector.broadcast %197 : vector<16x1xf32> to vector<16x32xf32>
    %199 = arith.mulf %189, %198 : vector<16x32xf32>
    %200 = vector.broadcast %182 : vector<1x32xf32> to vector<16x32xf32>
    %201 = arith.mulf %199, %200 : vector<16x32xf32>
    %202 = vector.broadcast %183 : vector<1x32xf32> to vector<16x32xf32>
    %203 = arith.addf %201, %202 : vector<16x32xf32>
    %c0_46 = arith.constant 0 : index
    %c0_47 = arith.constant 0 : index
    %c0_48 = arith.constant 0 : index
    %204 = vector.load %arg8[%c0_46, %c0_47, %c0_48] : memref<2x32x64xf32, #tpu.memory_space<vmem>>, vector<1x32x64xf32>
    %205 = vector.shape_cast %204 : vector<1x32x64xf32> to vector<32x64xf32>
    %cst_49 = arith.constant dense<0.000000e+00> : vector<16x64xf32>
    %206 = tpu.matmul %203, %205, %cst_49 {dimension_numbers = #tpu.dot_dimension_numbers<[1], [0], [0], [1], [0, 0, 1, 1], [], []>} : vector<16x32xf32>, vector<32x64xf32>, vector<16x64xf32> -> vector<16x64xf32>
    %207 = vector.extract_strided_slice %14 {offsets = [2, 0], sizes = [1, 64], strides = [1, 1]} : vector<5x128xf32> to vector<1x64xf32>
    %208 = vector.broadcast %207 : vector<1x64xf32> to vector<16x64xf32>
    %209 = arith.addf %206, %208 : vector<16x64xf32>
    %cst_50 = arith.constant 0.000000e+00 : f32
    %210 = vector.broadcast %cst_50 : f32 to vector<16x64xf32>
    %211 = arith.maximumf %209, %210 : vector<16x64xf32>
    %c0_51 = arith.constant 0 : index
    %c0_52 = arith.constant 0 : index
    %c0_53 = arith.constant 0 : index
    %212 = vector.load %arg9[%c0_51, %c0_52, %c0_53] : memref<2x64x32xf32, #tpu.memory_space<vmem>>, vector<1x64x32xf32>
    %213 = vector.shape_cast %212 : vector<1x64x32xf32> to vector<64x32xf32>
    %cst_54 = arith.constant dense<0.000000e+00> : vector<16x32xf32>
    %214 = tpu.matmul %211, %213, %cst_54 {dimension_numbers = #tpu.dot_dimension_numbers<[1], [0], [0], [1], [0, 0, 1, 1], [], []>} : vector<16x64xf32>, vector<64x32xf32>, vector<16x32xf32> -> vector<16x32xf32>
    %215 = vector.extract_strided_slice %14 {offsets = [2, 64], sizes = [1, 32], strides = [1, 1]} : vector<5x128xf32> to vector<1x32xf32>
    %216 = vector.broadcast %215 : vector<1x32xf32> to vector<16x32xf32>
    %217 = arith.addf %214, %216 : vector<16x32xf32>
    %218 = arith.addf %203, %217 : vector<16x32xf32>
    %219 = vector.extract_strided_slice %14 {offsets = [3, 64], sizes = [1, 32], strides = [1, 1]} : vector<5x128xf32> to vector<1x32xf32>
    %220 = vector.extract_strided_slice %14 {offsets = [4, 64], sizes = [1, 32], strides = [1, 1]} : vector<5x128xf32> to vector<1x32xf32>
    %cst_55 = arith.constant dense<0.000000e+00> : vector<16xf32>
    %221 = vector.multi_reduction <add>, %218, %cst_55 [1] : vector<16x32xf32> to vector<16xf32>
    %222 = vector.shape_cast %221 : vector<16xf32> to vector<16x1xf32>
    %cst_56 = arith.constant 3.200000e+01 : f32
    %223 = vector.broadcast %cst_56 : f32 to vector<16x1xf32>
    %224 = arith.divf %222, %223 : vector<16x1xf32>
    %225 = vector.broadcast %224 : vector<16x1xf32> to vector<16x32xf32>
    %226 = arith.subf %218, %225 : vector<16x32xf32>
    %227 = arith.mulf %226, %226 : vector<16x32xf32>
    %cst_57 = arith.constant dense<0.000000e+00> : vector<16xf32>
    %228 = vector.multi_reduction <add>, %227, %cst_57 [1] : vector<16x32xf32> to vector<16xf32>
    %229 = vector.shape_cast %228 : vector<16xf32> to vector<16x1xf32>
    %cst_58 = arith.constant 3.200000e+01 : f32
    %230 = vector.broadcast %cst_58 : f32 to vector<16x1xf32>
    %231 = arith.divf %229, %230 : vector<16x1xf32>
    %cst_59 = arith.constant 9.99999974E-6 : f32
    %232 = vector.broadcast %cst_59 : f32 to vector<16x1xf32>
    %233 = arith.addf %231, %232 : vector<16x1xf32>
    %234 = math.rsqrt %233 : vector<16x1xf32>
    %235 = vector.broadcast %234 : vector<16x1xf32> to vector<16x32xf32>
    %236 = arith.mulf %226, %235 : vector<16x32xf32>
    %237 = vector.broadcast %219 : vector<1x32xf32> to vector<16x32xf32>
    %238 = arith.mulf %236, %237 : vector<16x32xf32>
    %239 = vector.broadcast %220 : vector<1x32xf32> to vector<16x32xf32>
    %240 = arith.addf %238, %239 : vector<16x32xf32>
    %c1 = arith.constant 1 : index
    %c0_60 = arith.constant 0 : index
    %c0_61 = arith.constant 0 : index
    %241 = vector.load %arg10[%c1, %c0_60, %c0_61] : memref<2x5x128xf32, #tpu.memory_space<vmem>>, vector<1x5x128xf32>
    %242 = vector.shape_cast %241 : vector<1x5x128xf32> to vector<5x128xf32>
    %c1_62 = arith.constant 1 : index
    %c0_63 = arith.constant 0 : index
    %c0_64 = arith.constant 0 : index
    %243 = vector.load %arg3[%c1_62, %c0_63, %c0_64] : memref<2x32x128xf32, #tpu.memory_space<vmem>>, vector<1x32x128xf32>
    %244 = vector.shape_cast %243 : vector<1x32x128xf32> to vector<32x128xf32>
    %cst_65 = arith.constant dense<0.000000e+00> : vector<16x128xf32>
    %245 = tpu.matmul %240, %244, %cst_65 {dimension_numbers = #tpu.dot_dimension_numbers<[1], [0], [0], [1], [0, 0, 1, 1], [], []>} : vector<16x32xf32>, vector<32x128xf32>, vector<16x128xf32> -> vector<16x128xf32>
    %246 = vector.extract_strided_slice %242 {offsets = [0, 0], sizes = [1, 128], strides = [1, 1]} : vector<5x128xf32> to vector<1x128xf32>
    %247 = vector.broadcast %246 : vector<1x128xf32> to vector<16x128xf32>
    %248 = arith.addf %245, %247 : vector<16x128xf32>
    %249 = vector.extract_strided_slice %248 {offsets = [0, 0], sizes = [16, 32], strides = [1, 1]} : vector<16x128xf32> to vector<16x32xf32>
    %250 = vector.extract_strided_slice %248 {offsets = [0, 32], sizes = [16, 32], strides = [1, 1]} : vector<16x128xf32> to vector<16x32xf32>
    %251 = vector.extract_strided_slice %248 {offsets = [0, 64], sizes = [16, 32], strides = [1, 1]} : vector<16x128xf32> to vector<16x32xf32>
    %252 = vector.shape_cast %249 : vector<16x32xf32> to vector<2x8x32xf32>
    %253 = vector.shape_cast %250 : vector<16x32xf32> to vector<2x8x32xf32>
    %254 = vector.shape_cast %251 : vector<16x32xf32> to vector<2x8x32xf32>
    %255 = vector.extract_strided_slice %252 {offsets = [0, 0, 0], sizes = [2, 8, 8], strides = [1, 1, 1]} : vector<2x8x32xf32> to vector<2x8x8xf32>
    %256 = vector.extract_strided_slice %252 {offsets = [0, 0, 8], sizes = [2, 8, 8], strides = [1, 1, 1]} : vector<2x8x32xf32> to vector<2x8x8xf32>
    %257 = vector.extract_strided_slice %252 {offsets = [0, 0, 16], sizes = [2, 8, 8], strides = [1, 1, 1]} : vector<2x8x32xf32> to vector<2x8x8xf32>
    %258 = vector.extract_strided_slice %252 {offsets = [0, 0, 24], sizes = [2, 8, 8], strides = [1, 1, 1]} : vector<2x8x32xf32> to vector<2x8x8xf32>
    %259 = vector.shape_cast %255 : vector<2x8x8xf32> to vector<1x2x8x8xf32>
    %260 = vector.shape_cast %256 : vector<2x8x8xf32> to vector<1x2x8x8xf32>
    %261 = vector.shape_cast %257 : vector<2x8x8xf32> to vector<1x2x8x8xf32>
    %262 = vector.shape_cast %258 : vector<2x8x8xf32> to vector<1x2x8x8xf32>
    %263 = tpu.concatenate %259, %260, %261, %262 in 0 : vector<1x2x8x8xf32>, vector<1x2x8x8xf32>, vector<1x2x8x8xf32>, vector<1x2x8x8xf32> -> vector<4x2x8x8xf32>
    %264 = vector.shape_cast %263 : vector<4x2x8x8xf32> to vector<8x8x8xf32>
    %265 = vector.extract_strided_slice %253 {offsets = [0, 0, 0], sizes = [2, 8, 8], strides = [1, 1, 1]} : vector<2x8x32xf32> to vector<2x8x8xf32>
    %266 = vector.extract_strided_slice %253 {offsets = [0, 0, 8], sizes = [2, 8, 8], strides = [1, 1, 1]} : vector<2x8x32xf32> to vector<2x8x8xf32>
    %267 = vector.extract_strided_slice %253 {offsets = [0, 0, 16], sizes = [2, 8, 8], strides = [1, 1, 1]} : vector<2x8x32xf32> to vector<2x8x8xf32>
    %268 = vector.extract_strided_slice %253 {offsets = [0, 0, 24], sizes = [2, 8, 8], strides = [1, 1, 1]} : vector<2x8x32xf32> to vector<2x8x8xf32>
    %269 = vector.shape_cast %265 : vector<2x8x8xf32> to vector<1x2x8x8xf32>
    %270 = vector.shape_cast %266 : vector<2x8x8xf32> to vector<1x2x8x8xf32>
    %271 = vector.shape_cast %267 : vector<2x8x8xf32> to vector<1x2x8x8xf32>
    %272 = vector.shape_cast %268 : vector<2x8x8xf32> to vector<1x2x8x8xf32>
    %273 = tpu.concatenate %269, %270, %271, %272 in 0 : vector<1x2x8x8xf32>, vector<1x2x8x8xf32>, vector<1x2x8x8xf32>, vector<1x2x8x8xf32> -> vector<4x2x8x8xf32>
    %274 = vector.shape_cast %273 : vector<4x2x8x8xf32> to vector<8x8x8xf32>
    %275 = vector.extract_strided_slice %254 {offsets = [0, 0, 0], sizes = [2, 8, 8], strides = [1, 1, 1]} : vector<2x8x32xf32> to vector<2x8x8xf32>
    %276 = vector.extract_strided_slice %254 {offsets = [0, 0, 8], sizes = [2, 8, 8], strides = [1, 1, 1]} : vector<2x8x32xf32> to vector<2x8x8xf32>
    %277 = vector.extract_strided_slice %254 {offsets = [0, 0, 16], sizes = [2, 8, 8], strides = [1, 1, 1]} : vector<2x8x32xf32> to vector<2x8x8xf32>
    %278 = vector.extract_strided_slice %254 {offsets = [0, 0, 24], sizes = [2, 8, 8], strides = [1, 1, 1]} : vector<2x8x32xf32> to vector<2x8x8xf32>
    %279 = vector.shape_cast %275 : vector<2x8x8xf32> to vector<1x2x8x8xf32>
    %280 = vector.shape_cast %276 : vector<2x8x8xf32> to vector<1x2x8x8xf32>
    %281 = vector.shape_cast %277 : vector<2x8x8xf32> to vector<1x2x8x8xf32>
    %282 = vector.shape_cast %278 : vector<2x8x8xf32> to vector<1x2x8x8xf32>
    %283 = tpu.concatenate %279, %280, %281, %282 in 0 : vector<1x2x8x8xf32>, vector<1x2x8x8xf32>, vector<1x2x8x8xf32>, vector<1x2x8x8xf32> -> vector<4x2x8x8xf32>
    %284 = vector.shape_cast %283 : vector<4x2x8x8xf32> to vector<8x8x8xf32>
    "tpu.trace_start"() <{level = 10 : i32, message = "gqd,gkd->gqk"}> : () -> ()
    %cst_66 = arith.constant dense<0.000000e+00> : vector<8x8x8xf32>
    %285 = tpu.matmul %264, %274, %cst_66 {dimension_numbers = #tpu.dot_dimension_numbers<[2], [2], [1], [1], [0, 0, 0, 1, 1, 1], [0], [0]>} : vector<8x8x8xf32>, vector<8x8x8xf32>, vector<8x8x8xf32> -> vector<8x8x8xf32>
    "tpu.trace_stop"() : () -> ()
    %cst_67 = arith.constant dense<0xFF800000> : vector<8x8xf32>
    %286 = vector.multi_reduction <maximumf>, %285, %cst_67 [2] : vector<8x8x8xf32> to vector<8x8xf32>
    %287 = vector.shape_cast %286 : vector<8x8xf32> to vector<8x8x1xf32>
    %288 = vector.broadcast %287 : vector<8x8x1xf32> to vector<8x8x8xf32>
    %289 = arith.subf %285, %288 : vector<8x8x8xf32>
    %290 = math.exp %289 : vector<8x8x8xf32>
    %cst_68 = arith.constant dense<0.000000e+00> : vector<8x8xf32>
    %291 = vector.multi_reduction <add>, %290, %cst_68 [2] : vector<8x8x8xf32> to vector<8x8xf32>
    %292 = vector.shape_cast %291 : vector<8x8xf32> to vector<8x8x1xf32>
    %293 = tpu.reciprocal %292 {approx = true} : vector<8x8x1xf32> -> vector<8x8x1xf32>
    %294 = vector.broadcast %293 : vector<8x8x1xf32> to vector<8x8x8xf32>
    %295 = arith.mulf %290, %294 : vector<8x8x8xf32>
    "tpu.trace_start"() <{level = 10 : i32, message = "gqk,gkd->gqd"}> : () -> ()
    %cst_69 = arith.constant dense<0.000000e+00> : vector<8x8x8xf32>
    %296 = tpu.matmul %295, %284, %cst_69 {dimension_numbers = #tpu.dot_dimension_numbers<[2], [1], [1], [2], [0, 0, 0, 1, 1, 2], [0], [0]>} : vector<8x8x8xf32>, vector<8x8x8xf32>, vector<8x8x8xf32> -> vector<8x8x8xf32>
    "tpu.trace_stop"() : () -> ()
    %297 = vector.shape_cast %296 : vector<8x8x8xf32> to vector<4x2x8x8xf32>
    %298 = vector.extract_strided_slice %297 {offsets = [0, 0, 0, 0], sizes = [1, 2, 8, 8], strides = [1, 1, 1, 1]} : vector<4x2x8x8xf32> to vector<1x2x8x8xf32>
    %299 = vector.shape_cast %298 : vector<1x2x8x8xf32> to vector<2x8x8xf32>
    %300 = vector.extract_strided_slice %297 {offsets = [1, 0, 0, 0], sizes = [1, 2, 8, 8], strides = [1, 1, 1, 1]} : vector<4x2x8x8xf32> to vector<1x2x8x8xf32>
    %301 = vector.shape_cast %300 : vector<1x2x8x8xf32> to vector<2x8x8xf32>
    %302 = vector.extract_strided_slice %297 {offsets = [2, 0, 0, 0], sizes = [1, 2, 8, 8], strides = [1, 1, 1, 1]} : vector<4x2x8x8xf32> to vector<1x2x8x8xf32>
    %303 = vector.shape_cast %302 : vector<1x2x8x8xf32> to vector<2x8x8xf32>
    %304 = vector.extract_strided_slice %297 {offsets = [3, 0, 0, 0], sizes = [1, 2, 8, 8], strides = [1, 1, 1, 1]} : vector<4x2x8x8xf32> to vector<1x2x8x8xf32>
    %305 = vector.shape_cast %304 : vector<1x2x8x8xf32> to vector<2x8x8xf32>
    %306 = tpu.concatenate %299, %301, %303, %305 in 2 : vector<2x8x8xf32>, vector<2x8x8xf32>, vector<2x8x8xf32>, vector<2x8x8xf32> -> vector<2x8x32xf32>
    %307 = vector.shape_cast %306 : vector<2x8x32xf32> to vector<16x32xf32>
    %c1_70 = arith.constant 1 : index
    %c0_71 = arith.constant 0 : index
    %c0_72 = arith.constant 0 : index
    %c0_73 = arith.constant 0 : index
    %308 = vector.load %arg7[%c1_70, %c0_71, %c0_72, %c0_73] : memref<2x2x32x32xf32, #tpu.memory_space<vmem>>, vector<1x2x32x32xf32>
    %309 = vector.shape_cast %308 : vector<1x2x32x32xf32> to vector<2x32x32xf32>
    %310 = vector.extract_strided_slice %309 {offsets = [0, 0, 0], sizes = [1, 32, 32], strides = [1, 1, 1]} : vector<2x32x32xf32> to vector<1x32x32xf32>
    %311 = vector.shape_cast %310 : vector<1x32x32xf32> to vector<32x32xf32>
    %cst_74 = arith.constant dense<0.000000e+00> : vector<16x32xf32>
    %312 = tpu.matmul %307, %311, %cst_74 {dimension_numbers = #tpu.dot_dimension_numbers<[1], [0], [0], [1], [0, 0, 1, 1], [], []>} : vector<16x32xf32>, vector<32x32xf32>, vector<16x32xf32> -> vector<16x32xf32>
    %313 = vector.extract_strided_slice %242 {offsets = [1, 32], sizes = [1, 32], strides = [1, 1]} : vector<5x128xf32> to vector<1x32xf32>
    %314 = vector.broadcast %313 : vector<1x32xf32> to vector<16x32xf32>
    %315 = arith.addf %312, %314 : vector<16x32xf32>
    %316 = arith.addf %240, %315 : vector<16x32xf32>
    %317 = vector.extract_strided_slice %242 {offsets = [3, 0], sizes = [1, 32], strides = [1, 1]} : vector<5x128xf32> to vector<1x32xf32>
    %318 = vector.extract_strided_slice %242 {offsets = [4, 0], sizes = [1, 32], strides = [1, 1]} : vector<5x128xf32> to vector<1x32xf32>
    %cst_75 = arith.constant dense<0.000000e+00> : vector<16xf32>
    %319 = vector.multi_reduction <add>, %316, %cst_75 [1] : vector<16x32xf32> to vector<16xf32>
    %320 = vector.shape_cast %319 : vector<16xf32> to vector<16x1xf32>
    %cst_76 = arith.constant 3.200000e+01 : f32
    %321 = vector.broadcast %cst_76 : f32 to vector<16x1xf32>
    %322 = arith.divf %320, %321 : vector<16x1xf32>
    %323 = vector.broadcast %322 : vector<16x1xf32> to vector<16x32xf32>
    %324 = arith.subf %316, %323 : vector<16x32xf32>
    %325 = arith.mulf %324, %324 : vector<16x32xf32>
    %cst_77 = arith.constant dense<0.000000e+00> : vector<16xf32>
    %326 = vector.multi_reduction <add>, %325, %cst_77 [1] : vector<16x32xf32> to vector<16xf32>
    %327 = vector.shape_cast %326 : vector<16xf32> to vector<16x1xf32>
    %cst_78 = arith.constant 3.200000e+01 : f32
    %328 = vector.broadcast %cst_78 : f32 to vector<16x1xf32>
    %329 = arith.divf %327, %328 : vector<16x1xf32>
    %cst_79 = arith.constant 9.99999974E-6 : f32
    %330 = vector.broadcast %cst_79 : f32 to vector<16x1xf32>
    %331 = arith.addf %329, %330 : vector<16x1xf32>
    %332 = math.rsqrt %331 : vector<16x1xf32>
    %333 = vector.broadcast %332 : vector<16x1xf32> to vector<16x32xf32>
    %334 = arith.mulf %324, %333 : vector<16x32xf32>
    %335 = vector.broadcast %317 : vector<1x32xf32> to vector<16x32xf32>
    %336 = arith.mulf %334, %335 : vector<16x32xf32>
    %337 = vector.broadcast %318 : vector<1x32xf32> to vector<16x32xf32>
    %338 = arith.addf %336, %337 : vector<16x32xf32>
    %c1_80 = arith.constant 1 : index
    %c0_81 = arith.constant 0 : index
    %c0_82 = arith.constant 0 : index
    %339 = vector.load %arg4[%c1_80, %c0_81, %c0_82] : memref<2x32x32xf32, #tpu.memory_space<vmem>>, vector<1x32x32xf32>
    %340 = vector.shape_cast %339 : vector<1x32x32xf32> to vector<32x32xf32>
    %cst_83 = arith.constant dense<0.000000e+00> : vector<16x32xf32>
    %341 = tpu.matmul %338, %340, %cst_83 {dimension_numbers = #tpu.dot_dimension_numbers<[1], [0], [0], [1], [0, 0, 1, 1], [], []>} : vector<16x32xf32>, vector<32x32xf32>, vector<16x32xf32> -> vector<16x32xf32>
    %342 = vector.extract_strided_slice %242 {offsets = [1, 0], sizes = [1, 32], strides = [1, 1]} : vector<5x128xf32> to vector<1x32xf32>
    %343 = vector.broadcast %342 : vector<1x32xf32> to vector<16x32xf32>
    %344 = arith.addf %341, %343 : vector<16x32xf32>
    %345 = vector.extract_strided_slice %12 {offsets = [0, 64], sizes = [16, 32], strides = [1, 1]} : vector<16x128xf32> to vector<16x32xf32>
    %346 = vector.extract_strided_slice %12 {offsets = [0, 96], sizes = [16, 32], strides = [1, 1]} : vector<16x128xf32> to vector<16x32xf32>
    %347 = vector.shape_cast %344 : vector<16x32xf32> to vector<2x8x32xf32>
    %348 = vector.shape_cast %345 : vector<16x32xf32> to vector<2x8x32xf32>
    %349 = vector.shape_cast %346 : vector<16x32xf32> to vector<2x8x32xf32>
    %350 = vector.extract_strided_slice %347 {offsets = [0, 0, 0], sizes = [2, 8, 8], strides = [1, 1, 1]} : vector<2x8x32xf32> to vector<2x8x8xf32>
    %351 = vector.extract_strided_slice %347 {offsets = [0, 0, 8], sizes = [2, 8, 8], strides = [1, 1, 1]} : vector<2x8x32xf32> to vector<2x8x8xf32>
    %352 = vector.extract_strided_slice %347 {offsets = [0, 0, 16], sizes = [2, 8, 8], strides = [1, 1, 1]} : vector<2x8x32xf32> to vector<2x8x8xf32>
    %353 = vector.extract_strided_slice %347 {offsets = [0, 0, 24], sizes = [2, 8, 8], strides = [1, 1, 1]} : vector<2x8x32xf32> to vector<2x8x8xf32>
    %354 = vector.shape_cast %350 : vector<2x8x8xf32> to vector<1x2x8x8xf32>
    %355 = vector.shape_cast %351 : vector<2x8x8xf32> to vector<1x2x8x8xf32>
    %356 = vector.shape_cast %352 : vector<2x8x8xf32> to vector<1x2x8x8xf32>
    %357 = vector.shape_cast %353 : vector<2x8x8xf32> to vector<1x2x8x8xf32>
    %358 = tpu.concatenate %354, %355, %356, %357 in 0 : vector<1x2x8x8xf32>, vector<1x2x8x8xf32>, vector<1x2x8x8xf32>, vector<1x2x8x8xf32> -> vector<4x2x8x8xf32>
    %359 = vector.shape_cast %358 : vector<4x2x8x8xf32> to vector<8x8x8xf32>
    %360 = vector.extract_strided_slice %348 {offsets = [0, 0, 0], sizes = [2, 8, 8], strides = [1, 1, 1]} : vector<2x8x32xf32> to vector<2x8x8xf32>
    %361 = vector.extract_strided_slice %348 {offsets = [0, 0, 8], sizes = [2, 8, 8], strides = [1, 1, 1]} : vector<2x8x32xf32> to vector<2x8x8xf32>
    %362 = vector.extract_strided_slice %348 {offsets = [0, 0, 16], sizes = [2, 8, 8], strides = [1, 1, 1]} : vector<2x8x32xf32> to vector<2x8x8xf32>
    %363 = vector.extract_strided_slice %348 {offsets = [0, 0, 24], sizes = [2, 8, 8], strides = [1, 1, 1]} : vector<2x8x32xf32> to vector<2x8x8xf32>
    %364 = vector.shape_cast %360 : vector<2x8x8xf32> to vector<1x2x8x8xf32>
    %365 = vector.shape_cast %361 : vector<2x8x8xf32> to vector<1x2x8x8xf32>
    %366 = vector.shape_cast %362 : vector<2x8x8xf32> to vector<1x2x8x8xf32>
    %367 = vector.shape_cast %363 : vector<2x8x8xf32> to vector<1x2x8x8xf32>
    %368 = tpu.concatenate %364, %365, %366, %367 in 0 : vector<1x2x8x8xf32>, vector<1x2x8x8xf32>, vector<1x2x8x8xf32>, vector<1x2x8x8xf32> -> vector<4x2x8x8xf32>
    %369 = vector.shape_cast %368 : vector<4x2x8x8xf32> to vector<8x8x8xf32>
    %370 = vector.extract_strided_slice %349 {offsets = [0, 0, 0], sizes = [2, 8, 8], strides = [1, 1, 1]} : vector<2x8x32xf32> to vector<2x8x8xf32>
    %371 = vector.extract_strided_slice %349 {offsets = [0, 0, 8], sizes = [2, 8, 8], strides = [1, 1, 1]} : vector<2x8x32xf32> to vector<2x8x8xf32>
    %372 = vector.extract_strided_slice %349 {offsets = [0, 0, 16], sizes = [2, 8, 8], strides = [1, 1, 1]} : vector<2x8x32xf32> to vector<2x8x8xf32>
    %373 = vector.extract_strided_slice %349 {offsets = [0, 0, 24], sizes = [2, 8, 8], strides = [1, 1, 1]} : vector<2x8x32xf32> to vector<2x8x8xf32>
    %374 = vector.shape_cast %370 : vector<2x8x8xf32> to vector<1x2x8x8xf32>
    %375 = vector.shape_cast %371 : vector<2x8x8xf32> to vector<1x2x8x8xf32>
    %376 = vector.shape_cast %372 : vector<2x8x8xf32> to vector<1x2x8x8xf32>
    %377 = vector.shape_cast %373 : vector<2x8x8xf32> to vector<1x2x8x8xf32>
    %378 = tpu.concatenate %374, %375, %376, %377 in 0 : vector<1x2x8x8xf32>, vector<1x2x8x8xf32>, vector<1x2x8x8xf32>, vector<1x2x8x8xf32> -> vector<4x2x8x8xf32>
    %379 = vector.shape_cast %378 : vector<4x2x8x8xf32> to vector<8x8x8xf32>
    "tpu.trace_start"() <{level = 10 : i32, message = "gqd,gkd->gqk"}> : () -> ()
    %cst_84 = arith.constant dense<0.000000e+00> : vector<8x8x8xf32>
    %380 = tpu.matmul %359, %369, %cst_84 {dimension_numbers = #tpu.dot_dimension_numbers<[2], [2], [1], [1], [0, 0, 0, 1, 1, 1], [0], [0]>} : vector<8x8x8xf32>, vector<8x8x8xf32>, vector<8x8x8xf32> -> vector<8x8x8xf32>
    "tpu.trace_stop"() : () -> ()
    %cst_85 = arith.constant dense<0xFF800000> : vector<8x8xf32>
    %381 = vector.multi_reduction <maximumf>, %380, %cst_85 [2] : vector<8x8x8xf32> to vector<8x8xf32>
    %382 = vector.shape_cast %381 : vector<8x8xf32> to vector<8x8x1xf32>
    %383 = vector.broadcast %382 : vector<8x8x1xf32> to vector<8x8x8xf32>
    %384 = arith.subf %380, %383 : vector<8x8x8xf32>
    %385 = math.exp %384 : vector<8x8x8xf32>
    %cst_86 = arith.constant dense<0.000000e+00> : vector<8x8xf32>
    %386 = vector.multi_reduction <add>, %385, %cst_86 [2] : vector<8x8x8xf32> to vector<8x8xf32>
    %387 = vector.shape_cast %386 : vector<8x8xf32> to vector<8x8x1xf32>
    %388 = tpu.reciprocal %387 {approx = true} : vector<8x8x1xf32> -> vector<8x8x1xf32>
    %389 = vector.broadcast %388 : vector<8x8x1xf32> to vector<8x8x8xf32>
    %390 = arith.mulf %385, %389 : vector<8x8x8xf32>
    "tpu.trace_start"() <{level = 10 : i32, message = "gqk,gkd->gqd"}> : () -> ()
    %cst_87 = arith.constant dense<0.000000e+00> : vector<8x8x8xf32>
    %391 = tpu.matmul %390, %379, %cst_87 {dimension_numbers = #tpu.dot_dimension_numbers<[2], [1], [1], [2], [0, 0, 0, 1, 1, 2], [0], [0]>} : vector<8x8x8xf32>, vector<8x8x8xf32>, vector<8x8x8xf32> -> vector<8x8x8xf32>
    "tpu.trace_stop"() : () -> ()
    %392 = vector.shape_cast %391 : vector<8x8x8xf32> to vector<4x2x8x8xf32>
    %393 = vector.extract_strided_slice %392 {offsets = [0, 0, 0, 0], sizes = [1, 2, 8, 8], strides = [1, 1, 1, 1]} : vector<4x2x8x8xf32> to vector<1x2x8x8xf32>
    %394 = vector.shape_cast %393 : vector<1x2x8x8xf32> to vector<2x8x8xf32>
    %395 = vector.extract_strided_slice %392 {offsets = [1, 0, 0, 0], sizes = [1, 2, 8, 8], strides = [1, 1, 1, 1]} : vector<4x2x8x8xf32> to vector<1x2x8x8xf32>
    %396 = vector.shape_cast %395 : vector<1x2x8x8xf32> to vector<2x8x8xf32>
    %397 = vector.extract_strided_slice %392 {offsets = [2, 0, 0, 0], sizes = [1, 2, 8, 8], strides = [1, 1, 1, 1]} : vector<4x2x8x8xf32> to vector<1x2x8x8xf32>
    %398 = vector.shape_cast %397 : vector<1x2x8x8xf32> to vector<2x8x8xf32>
    %399 = vector.extract_strided_slice %392 {offsets = [3, 0, 0, 0], sizes = [1, 2, 8, 8], strides = [1, 1, 1, 1]} : vector<4x2x8x8xf32> to vector<1x2x8x8xf32>
    %400 = vector.shape_cast %399 : vector<1x2x8x8xf32> to vector<2x8x8xf32>
    %401 = tpu.concatenate %394, %396, %398, %400 in 2 : vector<2x8x8xf32>, vector<2x8x8xf32>, vector<2x8x8xf32>, vector<2x8x8xf32> -> vector<2x8x32xf32>
    %402 = vector.shape_cast %401 : vector<2x8x32xf32> to vector<16x32xf32>
    %403 = vector.extract_strided_slice %309 {offsets = [1, 0, 0], sizes = [1, 32, 32], strides = [1, 1, 1]} : vector<2x32x32xf32> to vector<1x32x32xf32>
    %404 = vector.shape_cast %403 : vector<1x32x32xf32> to vector<32x32xf32>
    %cst_88 = arith.constant dense<0.000000e+00> : vector<16x32xf32>
    %405 = tpu.matmul %402, %404, %cst_88 {dimension_numbers = #tpu.dot_dimension_numbers<[1], [0], [0], [1], [0, 0, 1, 1], [], []>} : vector<16x32xf32>, vector<32x32xf32>, vector<16x32xf32> -> vector<16x32xf32>
    %406 = vector.extract_strided_slice %242 {offsets = [1, 64], sizes = [1, 32], strides = [1, 1]} : vector<5x128xf32> to vector<1x32xf32>
    %407 = vector.broadcast %406 : vector<1x32xf32> to vector<16x32xf32>
    %408 = arith.addf %405, %407 : vector<16x32xf32>
    %409 = arith.addf %338, %408 : vector<16x32xf32>
    %410 = vector.extract_strided_slice %242 {offsets = [3, 32], sizes = [1, 32], strides = [1, 1]} : vector<5x128xf32> to vector<1x32xf32>
    %411 = vector.extract_strided_slice %242 {offsets = [4, 32], sizes = [1, 32], strides = [1, 1]} : vector<5x128xf32> to vector<1x32xf32>
    %cst_89 = arith.constant dense<0.000000e+00> : vector<16xf32>
    %412 = vector.multi_reduction <add>, %409, %cst_89 [1] : vector<16x32xf32> to vector<16xf32>
    %413 = vector.shape_cast %412 : vector<16xf32> to vector<16x1xf32>
    %cst_90 = arith.constant 3.200000e+01 : f32
    %414 = vector.broadcast %cst_90 : f32 to vector<16x1xf32>
    %415 = arith.divf %413, %414 : vector<16x1xf32>
    %416 = vector.broadcast %415 : vector<16x1xf32> to vector<16x32xf32>
    %417 = arith.subf %409, %416 : vector<16x32xf32>
    %418 = arith.mulf %417, %417 : vector<16x32xf32>
    %cst_91 = arith.constant dense<0.000000e+00> : vector<16xf32>
    %419 = vector.multi_reduction <add>, %418, %cst_91 [1] : vector<16x32xf32> to vector<16xf32>
    %420 = vector.shape_cast %419 : vector<16xf32> to vector<16x1xf32>
    %cst_92 = arith.constant 3.200000e+01 : f32
    %421 = vector.broadcast %cst_92 : f32 to vector<16x1xf32>
    %422 = arith.divf %420, %421 : vector<16x1xf32>
    %cst_93 = arith.constant 9.99999974E-6 : f32
    %423 = vector.broadcast %cst_93 : f32 to vector<16x1xf32>
    %424 = arith.addf %422, %423 : vector<16x1xf32>
    %425 = math.rsqrt %424 : vector<16x1xf32>
    %426 = vector.broadcast %425 : vector<16x1xf32> to vector<16x32xf32>
    %427 = arith.mulf %417, %426 : vector<16x32xf32>
    %428 = vector.broadcast %410 : vector<1x32xf32> to vector<16x32xf32>
    %429 = arith.mulf %427, %428 : vector<16x32xf32>
    %430 = vector.broadcast %411 : vector<1x32xf32> to vector<16x32xf32>
    %431 = arith.addf %429, %430 : vector<16x32xf32>
    %c1_94 = arith.constant 1 : index
    %c0_95 = arith.constant 0 : index
    %c0_96 = arith.constant 0 : index
    %432 = vector.load %arg8[%c1_94, %c0_95, %c0_96] : memref<2x32x64xf32, #tpu.memory_space<vmem>>, vector<1x32x64xf32>
    %433 = vector.shape_cast %432 : vector<1x32x64xf32> to vector<32x64xf32>
    %cst_97 = arith.constant dense<0.000000e+00> : vector<16x64xf32>
    %434 = tpu.matmul %431, %433, %cst_97 {dimension_numbers = #tpu.dot_dimension_numbers<[1], [0], [0], [1], [0, 0, 1, 1], [], []>} : vector<16x32xf32>, vector<32x64xf32>, vector<16x64xf32> -> vector<16x64xf32>
    %435 = vector.extract_strided_slice %242 {offsets = [2, 0], sizes = [1, 64], strides = [1, 1]} : vector<5x128xf32> to vector<1x64xf32>
    %436 = vector.broadcast %435 : vector<1x64xf32> to vector<16x64xf32>
    %437 = arith.addf %434, %436 : vector<16x64xf32>
    %cst_98 = arith.constant 0.000000e+00 : f32
    %438 = vector.broadcast %cst_98 : f32 to vector<16x64xf32>
    %439 = arith.maximumf %437, %438 : vector<16x64xf32>
    %c1_99 = arith.constant 1 : index
    %c0_100 = arith.constant 0 : index
    %c0_101 = arith.constant 0 : index
    %440 = vector.load %arg9[%c1_99, %c0_100, %c0_101] : memref<2x64x32xf32, #tpu.memory_space<vmem>>, vector<1x64x32xf32>
    %441 = vector.shape_cast %440 : vector<1x64x32xf32> to vector<64x32xf32>
    %cst_102 = arith.constant dense<0.000000e+00> : vector<16x32xf32>
    %442 = tpu.matmul %439, %441, %cst_102 {dimension_numbers = #tpu.dot_dimension_numbers<[1], [0], [0], [1], [0, 0, 1, 1], [], []>} : vector<16x64xf32>, vector<64x32xf32>, vector<16x32xf32> -> vector<16x32xf32>
    %443 = vector.extract_strided_slice %242 {offsets = [2, 64], sizes = [1, 32], strides = [1, 1]} : vector<5x128xf32> to vector<1x32xf32>
    %444 = vector.broadcast %443 : vector<1x32xf32> to vector<16x32xf32>
    %445 = arith.addf %442, %444 : vector<16x32xf32>
    %446 = arith.addf %431, %445 : vector<16x32xf32>
    %447 = vector.extract_strided_slice %242 {offsets = [3, 64], sizes = [1, 32], strides = [1, 1]} : vector<5x128xf32> to vector<1x32xf32>
    %448 = vector.extract_strided_slice %242 {offsets = [4, 64], sizes = [1, 32], strides = [1, 1]} : vector<5x128xf32> to vector<1x32xf32>
    %cst_103 = arith.constant dense<0.000000e+00> : vector<16xf32>
    %449 = vector.multi_reduction <add>, %446, %cst_103 [1] : vector<16x32xf32> to vector<16xf32>
    %450 = vector.shape_cast %449 : vector<16xf32> to vector<16x1xf32>
    %cst_104 = arith.constant 3.200000e+01 : f32
    %451 = vector.broadcast %cst_104 : f32 to vector<16x1xf32>
    %452 = arith.divf %450, %451 : vector<16x1xf32>
    %453 = vector.broadcast %452 : vector<16x1xf32> to vector<16x32xf32>
    %454 = arith.subf %446, %453 : vector<16x32xf32>
    %455 = arith.mulf %454, %454 : vector<16x32xf32>
    %cst_105 = arith.constant dense<0.000000e+00> : vector<16xf32>
    %456 = vector.multi_reduction <add>, %455, %cst_105 [1] : vector<16x32xf32> to vector<16xf32>
    %457 = vector.shape_cast %456 : vector<16xf32> to vector<16x1xf32>
    %cst_106 = arith.constant 3.200000e+01 : f32
    %458 = vector.broadcast %cst_106 : f32 to vector<16x1xf32>
    %459 = arith.divf %457, %458 : vector<16x1xf32>
    %cst_107 = arith.constant 9.99999974E-6 : f32
    %460 = vector.broadcast %cst_107 : f32 to vector<16x1xf32>
    %461 = arith.addf %459, %460 : vector<16x1xf32>
    %462 = math.rsqrt %461 : vector<16x1xf32>
    %463 = vector.broadcast %462 : vector<16x1xf32> to vector<16x32xf32>
    %464 = arith.mulf %454, %463 : vector<16x32xf32>
    %465 = vector.broadcast %447 : vector<1x32xf32> to vector<16x32xf32>
    %466 = arith.mulf %464, %465 : vector<16x32xf32>
    %467 = vector.broadcast %448 : vector<1x32xf32> to vector<16x32xf32>
    %468 = arith.addf %466, %467 : vector<16x32xf32>
    %c0_108 = arith.constant 0 : index
    %c0_109 = arith.constant 0 : index
    %469 = vector.load %arg11[%c0_108, %c0_109] : memref<16x32xf32, #tpu.memory_space<vmem>>, vector<16x32xf32>
    tpu.vector_store %arg11[%c0_108, %c0_109], %468 {strides = array<i32>} : memref<16x32xf32, #tpu.memory_space<vmem>>, vector<16x32xf32>,
    return
  }
}

</mosaic_0001>

<bundles_post_ra>
// kernel: decoder_forward.1
= control target key start
LH: loop header
LB: loop body
LE: loop exit
PB: predicated region body
PF: predicated region fallthrough
CT: control target
= control target key end

     0   :  { %16 = vsyncpa [#allocation3], 0  ;;  %s9394_s0 = inlined_call_operand.vmem [shape: f32[2,8,32], index: 0, kind: input, shape index: {}]   ;;  %s9395_s1 = inlined_call_operand.hbm [shape: f32[2,8,32], index: 1, kind: input, shape index: {}]   ;;  %s9396_s2 = inlined_call_operand.hbm [shape: f32[8,32], index: 2, kind: input, shape index: {}]   ;;  %s9397_s3 = inlined_call_operand.vmem [shape: f32[2,32,128], index: 3, kind: input, shape index: {}]   ;;  %s9398_s4 = inlined_call_operand.hbm [shape: f32[2,32,32], index: 4, kind: input, shape index: {}]   ;;  %s9399_s5 = inlined_call_operand.vmem [shape: f32[32,128], index: 5, kind: input, shape index: {}]   ;;  %s9400_s6 = inlined_call_operand.hbm [shape: f32[1,128], index: 6, kind: input, shape index: {}]   ;;  %s9401_s7 = inlined_call_operand.vmem [shape: f32[2,2,32,32], index: 7, kind: input, shape index: {}]   ;;  %s9402_s8 = inlined_call_operand.hbm [shape: f32[2,32,64], index: 8, kind: input, shape index: {}]   ;;  %s9403_s9 = inlined_call_operand.vmem [shape: f32[2,64,32], index: 9, kind: input, shape index: {}]   ;;  %s9404_s10 = inlined_call_operand.vmem [shape: f32[2,5,128], index: 10, kind: input, shape index: {}]   ;;  %s9405_s11 = inlined_call_operand.hbm [shape: f32[16,32], index: 11, kind: output, shape index: {}]  }
   0x1   :  { %17 = vsyncpa [#allocation6], 0 }
   0x2   :  { %18 = vsyncpa [#allocation9], 0 }
   0x3   :  { %19 = vsyncpa [#allocation4], 0  ;;  %s8210_s17 = smov [#allocation5]   ;;  %s8211_s19 = smov [#allocation8]  }
   0x4   :  { %s40_s18 = sshll.u32 %s8210_s17, 4  ;;  %s66_s20 = sshll.u32 %s8211_s19, 4  ;;  %s41_s18 = int_to_ptr.vmem [resolvable:$true] %s40_s18  ;;  %s67_s20 = int_to_ptr.vmem [resolvable:$true] %s66_s20 }
   0x5   :  { %s8070_s23 = scalar_lea.hbm %s9396_s2, 128 }
   0x6   :  { %p8071_p0 = scmp.ne.s32.totalorder %s9396_s2, %s8070_s23  ;;  %p8074_p1 = scmp.lt.u32.totalorder %s8070_s23, %s9396_s2 }
   0x8   :  { %p8076_p2 = pnand %p8074_p1, %p8071_p0 }
   0xa   :  { %8079 = shalt.err (!%p8076_p2)
}
   0xb   :  { %s8080_s28 = scalar_lea.vmem %s41_s18, 128  ;;  %p8085_p4 = scmp.lt.s32.totalorder %s41_s18, %s41_s18 }
   0xc   :  { %p8081_p3 = scmp.ne.s32.totalorder %s41_s18, %s8080_s28  ;;  %p8086_p5 = scmp.lt.s32.totalorder %s8080_s28, %s8080_s28 }
   0xe   :  { %p8087_p6 = por %p8086_p5, %p8085_p4 }
  0x10   :  { %p8088_p7 = pnand %p8087_p6, %p8081_p3 }
  0x12   :  { %8091 = shalt.err (!%p8088_p7)
}
  0x13   :  { %43 = dma.hbm_to_vmem [thread:$0]  %s9396_s2, 128, %s41_s18, [#allocation6]  }
  0x14   :  { %s8092_s14 = scalar_lea.hbm %s9400_s6, 16 }
  0x15   :  { %p8093_p8 = scmp.ne.s32.totalorder %s9400_s6, %s8092_s14  ;;  %p8096_p9 = scmp.lt.u32.totalorder %s8092_s14, %s9400_s6 }
  0x17   :  { %p8098_p10 = pnand %p8096_p9, %p8093_p8 }
  0x19   :  { %8101 = shalt.err (!%p8098_p10)
}
  0x1a   :  { %s8102_s21 = scalar_lea.vmem %s67_s20, 16  ;;  %s8106_s22 = scalar_lea.vmem %s67_s20, 32 }
  0x1b   :  { %p8103_p11 = scmp.ne.s32.totalorder %s67_s20, %s8102_s21  ;;  %p8107_p12 = scmp.lt.s32.totalorder %s67_s20, %s67_s20 }
  0x1c   :  { %p8108_p13 = scmp.lt.s32.totalorder %s8106_s22, %s8102_s21 }
  0x1e   :  { %p8109_p0 = por %p8108_p13, %p8107_p12 }
  0x20   :  { %p8110_p1 = pnand %p8109_p0, %p8103_p11 }
  0x22   :  { %8113 = shalt.err (!%p8110_p1)
}
  0x23   :  { %69 = dma.hbm_to_vmem [thread:$0]  %s9400_s6, 16, %s67_s20, [#allocation9]  }
  0x24   :  { %s8212_s23 = smov [#allocation2]   ;;  %s8114_s27 = scalar_lea.hbm %s9395_s1, 256 }
  0x25   :  { %s27_s24 = sshll.u32 %s8212_s23, 4  ;;  %p8115_p2 = scmp.ne.s32.totalorder %s9395_s1, %s8114_s27  ;;  %s28_s24 = int_to_ptr.vmem [resolvable:$true] %s27_s24 }
  0x26   :  { %p8118_p3 = scmp.lt.u32.totalorder %s8114_s27, %s9395_s1 }
  0x28   :  { %p8120_p4 = pnand %p8118_p3, %p8115_p2 }
  0x2a   :  { %8123 = shalt.err (!%p8120_p4)
}
  0x2b   :  { %s8124_s13 = scalar_lea.vmem %s28_s24, 256  ;;  %p8129_p6 = scmp.lt.s32.totalorder %s28_s24, %s28_s24 }
  0x2c   :  { %p8125_p5 = scmp.ne.s32.totalorder %s28_s24, %s8124_s13  ;;  %p8130_p7 = scmp.lt.s32.totalorder %s8124_s13, %s8124_s13 }
  0x2e   :  { %p8131_p8 = por %p8130_p7, %p8129_p6 }
  0x30   :  { %p8132_p9 = pnand %p8131_p8, %p8125_p5 }
  0x32   :  { %8135 = shalt.err (!%p8132_p9)
}
  0x33   :  { %s8213_s6 = smov 128   ;;  %s8214_s20 = smov 8  }
  0x34   :  { %33 = dma.hbm_to_vmem [thread:$0]  %s9395_s1, 256, %s28_s24, [#allocation3], %s8213_s6, %s8213_s6, %s8214_s20  }
  0x35   :  { %s8215_s16 = smov [#allocation7]   ;;  %s8216_s19 = smov [#allocation10]  }
  0x36   :  { %s51_s17 = sshll.u32 %s8215_s16, 4  ;;  %s77_s21 = sshll.u32 %s8216_s19, 4  ;;  %s52_s17 = int_to_ptr.vmem [resolvable:$true] %s51_s17  ;;  %s78_s21 = int_to_ptr.vmem [resolvable:$true] %s77_s21 }
  0x37   :  { %s8136_s18 = scalar_lea.hbm %s9398_s4, 1024 }
  0x38   :  { %p8137_p10 = scmp.ne.s32.totalorder %s9398_s4, %s8136_s18  ;;  %p8140_p11 = scmp.lt.u32.totalorder %s8136_s18, %s9398_s4 }
  0x3a   :  { %p8142_p12 = pnand %p8140_p11, %p8137_p10 }
  0x3c   :  { %8145 = shalt.err (!%p8142_p12)
}
  0x3d   :  { %s8146_s1 = scalar_lea.vmem %s52_s17, 1024  ;;  %p8151_p0 = scmp.lt.s32.totalorder %s52_s17, %s52_s17 }
  0x3e   :  { %p8147_p13 = scmp.ne.s32.totalorder %s52_s17, %s8146_s1  ;;  %p8152_p1 = scmp.lt.s32.totalorder %s8146_s1, %s8146_s1 }
  0x40   :  { %p8153_p2 = por %p8152_p1, %p8151_p0 }
  0x42   :  { %p8154_p3 = pnand %p8153_p2, %p8147_p13 }
  0x44   :  { %8157 = shalt.err (!%p8154_p3)
}
  0x45   :  { %57 = dma.hbm_to_vmem [thread:$0]  %s9398_s4, 1024, %s52_s17, [#allocation6], %s8213_s6, %s8213_s6, %s8214_s20  }
  0x46   :  { %s8158_s12 = scalar_lea.hbm %s9402_s8, 1024 }
  0x47   :  { %p8159_p4 = scmp.ne.s32.totalorder %s9402_s8, %s8158_s12  ;;  %p8162_p5 = scmp.lt.u32.totalorder %s8158_s12, %s9402_s8 }
  0x49   :  { %p8164_p6 = pnand %p8162_p5, %p8159_p4 }
  0x4b   :  { %8167 = shalt.err (!%p8164_p6)
}
  0x4c   :  { %s8168_s19 = scalar_lea.vmem %s78_s21, 1024  ;;  %p8173_p8 = scmp.lt.s32.totalorder %s78_s21, %s78_s21 }
  0x4d   :  { %p8169_p7 = scmp.ne.s32.totalorder %s78_s21, %s8168_s19  ;;  %p8174_p9 = scmp.lt.s32.totalorder %s8168_s19, %s8168_s19 }
  0x4f   :  { %p8175_p10 = por %p8174_p9, %p8173_p8 }
  0x51   :  { %p8176_p11 = pnand %p8175_p10, %p8169_p7 }
  0x53   :  { %8179 = shalt.err (!%p8176_p11)
}
  0x54   :  { %83 = dma.hbm_to_vmem [thread:$0]  %s9402_s8, 1024, %s78_s21, [#allocation9], %s8213_s6, %s8213_s6, %s8214_s20  }
  0x55   :  { %8202 = dma.done.wait [#allocation3], 256  }
  0x56   :  { %8203 = vsyncadd [#allocation3], 4294967040 }
  0x57   :  { %8204 = dma.done.wait [#allocation6], 1152  }
  0x58   :  { %8205 = vsyncadd [#allocation6], 4294966144 }
  0x59   :  { %8206 = dma.done.wait [#allocation9], 1040  }
  0x5a   :  { %8207 = vsyncadd [#allocation9], 4294966256  ;;  %vm121_vm0 = vcmask 261120   ;;  %v110_v0 = vld [vmem:[%s9399_s5] sm:$0xff]  ;;  %v111_v1 = vld [vmem:[%s9399_s5 + $0x8] sm:$0xff]  ;;  %v208_v19 = vlaneseq  ;;  %v8217_v29 = vmov 0.0  }
  0x5b   :  { %v112_v2 = vld [vmem:[%s9399_s5 + $0x10] sm:$0xff]  ;;  %v7778_v3 = vpack.c.bf16 %v111_v1, %v110_v0  ;;  %v113_v4 = vld [vmem:[%s9399_s5 + $0x18] sm:$0xff]  ;;  %v108_v5 = vld [vmem:[#allocation2] sm:$0xff]  ;;  %7321 = vmatprep.subr.mxu0 %v8217_v29  ;;  %s8218_s4 = smov 112   ;;  %s8219_s17 = smov 120   ;;  %vm8220_vm1 = vmmov 0  }
  0x5c   :  { %v7782_v6 = vpack.c.bf16 %v113_v4, %v112_v2  ;;  %7307 = vmatprep.mubr.msk.f32.mxu1 %vm121_vm0, %v108_v5  ;;  %v204_v7 = vld [vmem:[%s9397_s3] sm:$0xff]  ;;  %v205_v8 = vld [vmem:[%s9397_s3 + $0x8] sm:$0xff]  ;;  %v105_v11 = vld [vmem:[#allocation5] sm:$0xff]  ;;  %v8399_v21 = vshrl.u32 %v208_v19, 7  ;;  %7323 = vmatprep.mubr.msk.f32.mxu0 %vm8220_vm1, %v8217_v29  ;;  %s8221_s22 = smov 104   ;;  %s8222_s2 = smov 96  }
  0x5d   :  { %7779 = vmatprep.subr.bf16.mxu1 %v7778_v3  ;;  %v7786_v9 = vpack.c.bf16 %v205_v8, %v204_v7  ;;  %v103_v10 = vld [vmem:[%s9394_s0] sm:$0xff]  ;;  %v206_v12 = vld [vmem:[%s9397_s3 + $0x10] sm:$0xff]  ;;  %v207_v13 = vld [vmem:[%s9397_s3 + $0x18] sm:$0xff]  ;;  %vm309_vm2 = vcmask 64512   ;;  %s8223_s18 = smov 64   ;;  %s8224_s28 = smov 16  }
  0x5e   :  { %7781 = vmatpush3.bf16.msra.mxu1 %v7778_v3  ;;  %v109_v14 = vld [vmem:[#allocation2 + $0x8] sm:$0xff]  ;;  %v8385_v15 = vadd.f32 %v105_v11, %v103_v10  ;;  %v7790_v16 = vpack.c.bf16 %v207_v13, %v206_v12  ;;  %v8397_v20 = vld [vmem:[#allocation8] ss:$0 sm:$0xff]  ;;  %v210_v25 = vsub.s32 0, %v8399_v21  ;;  %v8410_v26 = vld [vmem:[%s9404_s10] sm:$0x1f] }
  0x5f   :  { %7783 = vmatprep.subr.bf16.mxu1 %v7782_v6  ;;  %v104_v17 = vld [vmem:[%s9394_s0 + $0x8] sm:$0xff]  ;;  %s8225_s29 = smov 24   ;;  %vm1638_vm3 = vcmask 130048   ;;  %vm1641_vm4 = vcmask 195584   ;;  %vm3440_vm5 = vcmask 523264  }
  0x60   :  { %v8393_v18 = vadd.f32 %v105_v11, %v104_v17  ;;  %v211_v27 = vrot.slane %v8410_v26, %v210_v25 }
  0x62   :  { %7785 = vmatpush3.bf16.msra.mxu1 %v7782_v6 }
  0x63   :  { %7787 = vmatprep.subr.bf16.mxu1 %v7786_v9 }
  0x65   :  { %7308 = vmatmul.mubr.msk.f32.vlgmr.msra.gmra.mrb[0].mxu1 %vm121_vm0, %v109_v14 }
  0x66   :  { %7789 = vmatpush3.bf16.msra.mxu1 %v7786_v9  ;;  %7318 = vmatprep.mubr.msk.f32.mxu1 %vm121_vm0, %v8385_v15 }
  0x67   :  { %7791 = vmatprep.subr.bf16.mxu1 %v7790_v16 }
  0x6a   :  { %7793 = vmatpush3.bf16.msra.mxu1 %v7790_v16 }
  0x6b   :  { %7326 = vmatprep.subr.mxu1 %v8217_v29 }
  0x6d   :  { %7319 = vmatmul.mubr.msk.f32.vlgmr.msra.gmra.mrb[2].mxu1 %vm121_vm0, %v8393_v18 }
  0x6e   :  { %7328 = vmatprep.mubr.msk.f32.mxu1 %vm8220_vm1, %v8217_v29 }
 0x138   :  { %v7309_v22 = vpop.f32.mrb[0].mxu1 }
 0x139   :  { %v8402_v23 = vadd.f32 %v7309_v22, %v8397_v20  ;;  %v8404_v24 = vpop.f32.mrb[1].mxu1 }
 0x140   :  { %v7320_v28 = vpop.f32.mrb[2].mxu1 }
 0x141   :  { %v284_v30 = vpop.f32.mrb[3].mxu1  ;;  %v8427_v32 = vadd.f32 %v7320_v28, %v211_v27 }
 0x142   :  { %v8417_v31 = vadd.f32 %v284_v30, %v211_v27 }
 0x144   :  { %299 = vrot.lane.b32.xlu1 %v8417_v31, %s8218_s4  ;;  %295 = vrot.lane.b32.xlu0 %v8417_v31, %s8219_s17 }
 0x148   :  { %301 = vrot.lane.b32.xlu1 %v8427_v32, %s8218_s4  ;;  %297 = vrot.lane.b32.xlu0 %v8427_v32, %s8219_s17 }
 0x14c   :  { %305 = vrot.lane.b32.xlu1 %v8427_v32, %s8221_s22  ;;  %303 = vrot.lane.b32.xlu0 %v8417_v31, %s8221_s22 }
 0x150   :  { %384 = vrot.lane.b32.xlu1 %v8427_v32, %s8222_s2  ;;  %307 = vrot.lane.b32.xlu0 %v8417_v31, %s8222_s2 }
 0x1b6   :  { %v8441_v33 = vpop.permute.xlu1 %299  ;;  %v8443_v34 = vpop.permute.xlu0 %295 }
 0x1b7   :  { %460 = vrot.lane.b32.xlu0 %v8443_v34, %s8222_s2 }
 0x1ba   :  { %v8447_v35 = vpop.permute.xlu1 %301  ;;  %v8449_v36 = vpop.permute.xlu0 %297 }
 0x1bb   :  { %612 = vrot.lane.b32.xlu0 %v8441_v33, %s8222_s2  ;;  %536 = vrot.lane.b32.xlu1 %v8449_v36, %s8222_s2 }
 0x1be   :  { %v8455_v37 = vpop.permute.xlu1 %305  ;;  %v8457_v38 = vpop.permute.xlu0 %303 }
 0x1bf   :  { %688 = vrot.lane.b32.xlu1 %v8447_v35, %s8222_s2  ;;  %764 = vrot.lane.b32.xlu0 %v8457_v38, %s8222_s2 }
 0x1c2   :  { %v385_v39 = vpop.permute.xlu1 %384  ;;  %v308_v40 = vpop.permute.xlu0 %307 }
 0x1c3   :  { %7327 = vmatpush3.xpose.msk.msra.mxu1 %vm309_vm2, %v385_v39  ;;  %840 = vrot.lane.b32.xlu1 %v8455_v37, %s8222_s2 }
 0x1c4   :  { %7322 = vmatpush3.xpose.msk.msra.mxu0 %vm309_vm2, %v308_v40  ;;  %7336 = vmatprep.subr.mxu1 %v8217_v29 }
 0x1c5   :  { %7331 = vmatprep.subr.mxu0 %v8217_v29 }
 0x1c6   :  { %7329 = vmatmul.mubr.msk.f32.vlgmr.msra.gmra.mrb[4].mxu1 %vm309_vm2, %v8427_v32 }
 0x1c7   :  { %7324 = vmatmul.mubr.msk.f32.vlgmr.msra.gmra.mrb[0].mxu0 %vm309_vm2, %v8417_v31  ;;  %7338 = vmatprep.mubr.msk.f32.mxu1 %vm8220_vm1, %v8217_v29 }
 0x1c8   :  { %7333 = vmatprep.mubr.msk.f32.mxu0 %vm8220_vm1, %v8217_v29 }
 0x229   :  { %v461_v41 = vpop.permute.xlu0 %460 }
 0x22a   :  { %7332 = vmatpush3.xpose.msk.msra.mxu0 %vm309_vm2, %v461_v41 }
 0x22b   :  { %7341 = vmatprep.subr.mxu0 %v8217_v29 }
 0x22d   :  { %v537_v42 = vpop.permute.xlu1 %536  ;;  %7334 = vmatmul.mubr.msk.f32.vlgmr.msra.gmra.mrb[2].mxu0 %vm309_vm2, %v8443_v34  ;;  %v613_v43 = vpop.permute.xlu0 %612 }
 0x22e   :  { %7337 = vmatpush3.xpose.msk.msra.mxu1 %vm309_vm2, %v537_v42  ;;  %7342 = vmatpush3.xpose.msk.msra.mxu0 %vm309_vm2, %v613_v43 }
 0x22f   :  { %7343 = vmatprep.mubr.msk.f32.mxu0 %vm8220_vm1, %v8217_v29  ;;  %7346 = vmatprep.subr.mxu1 %v8217_v29 }
 0x230   :  { %7351 = vmatprep.subr.mxu0 %v8217_v29 }
 0x231   :  { %7339 = vmatmul.mubr.msk.f32.vlgmr.msra.gmra.mrb[6].mxu1 %vm309_vm2, %v8449_v36  ;;  %v689_v44 = vpop.permute.xlu1 %688  ;;  %7344 = vmatmul.mubr.msk.f32.vlgmr.msra.gmra.mrb[4].mxu0 %vm309_vm2, %v8441_v33  ;;  %v765_v45 = vpop.permute.xlu0 %764 }
 0x232   :  { %7347 = vmatpush3.xpose.msk.msra.mxu1 %vm309_vm2, %v689_v44  ;;  %7352 = vmatpush3.xpose.msk.msra.mxu0 %vm309_vm2, %v765_v45 }
 0x233   :  { %7348 = vmatprep.mubr.msk.f32.mxu1 %vm8220_vm1, %v8217_v29  ;;  %7353 = vmatprep.mubr.msk.f32.mxu0 %vm8220_vm1, %v8217_v29 }
 0x234   :  { %7356 = vmatprep.subr.mxu1 %v8217_v29  ;;  %7361 = vmatprep.subr.mxu0 %v8217_v29 }
 0x235   :  { %7349 = vmatmul.mubr.msk.f32.vlgmr.msra.gmra.mrb[8].mxu1 %vm309_vm2, %v8447_v35  ;;  %v841_v46 = vpop.permute.xlu1 %840  ;;  %7354 = vmatmul.mubr.msk.f32.vlgmr.msra.gmra.mrb[6].mxu0 %vm309_vm2, %v8457_v38 }
 0x236   :  { %7357 = vmatpush3.xpose.msk.msra.mxu1 %vm309_vm2, %v841_v46  ;;  %7358 = vmatprep.mubr.msk.f32.mxu1 %vm8220_vm1, %v8217_v29 }
 0x237   :  { %7366 = vmatprep.subr.mxu1 %v8217_v29  ;;  %7363 = vmatprep.mubr.msk.f32.mxu0 %vm8220_vm1, %v8217_v29 }
 0x239   :  { %7359 = vmatmul.mubr.msk.f32.vlgmr.msra.gmra.mrb[10].mxu1 %vm309_vm2, %v8455_v37 }
 0x23a   :  { %7368 = vmatprep.mubr.msk.f32.mxu1 %vm8220_vm1, %v8217_v29 }
 0x299   :  { %v456_v47 = vpop.f32.mrb[4].mxu1 }
 0x29a   :  { %v380_v48 = vpop.f32.mrb[0].mxu0  ;;  %v7330_v49 = vpop.f32.mrb[5].mxu1  ;;  %v919_v50 = vsel %vm309_vm2, %v456_v47, -inf }
 0x29b   :  { %v7325_v51 = vpop.f32.mrb[1].mxu0  ;;  %920 = vmax.xlane.f32.xlu1 %v919_v50  ;;  %v916_v52 = vsel %vm309_vm2, %v380_v48, -inf }
 0x29c   :  { %917 = vmax.xlane.f32.xlu0 %v916_v52 }
 0x300   :  { %v532_v53 = vpop.f32.mrb[2].mxu0 }
 0x301   :  { %v7335_v54 = vpop.f32.mrb[3].mxu0  ;;  %v922_v55 = vsel %vm309_vm2, %v532_v53, -inf }
 0x302   :  { %923 = vmax.xlane.f32.xlu0 %v922_v55 }
 0x304   :  { %v608_v56 = vpop.f32.mrb[6].mxu1  ;;  %v684_v57 = vpop.f32.mrb[4].mxu0 }
 0x305   :  { %v7340_v58 = vpop.f32.mrb[7].mxu1  ;;  %v7345_v59 = vpop.f32.mrb[5].mxu0  ;;  %v925_v60 = vsel %vm309_vm2, %v608_v56, -inf  ;;  %v928_v61 = vsel %vm309_vm2, %v684_v57, -inf }
 0x306   :  { %926 = vmax.xlane.f32.xlu0 %v925_v60  ;;  %929 = vmax.xlane.f32.xlu1 %v928_v61 }
 0x308   :  { %v760_v62 = vpop.f32.mrb[8].mxu1  ;;  %v836_v63 = vpop.f32.mrb[6].mxu0 }
 0x309   :  { %v7350_v0 = vpop.f32.mrb[9].mxu1  ;;  %v7355_v1 = vpop.f32.mrb[7].mxu0  ;;  %v931_v2 = vsel %vm309_vm2, %v760_v62, -inf  ;;  %v934_v3 = vsel %vm309_vm2, %v836_v63, -inf }
 0x30a   :  { %932 = vmax.xlane.f32.xlu0 %v931_v2  ;;  %935 = vmax.xlane.f32.xlu1 %v934_v3 }
 0x30c   :  { %v912_v4 = vpop.f32.mrb[10].mxu1 }
 0x30d   :  { %v7360_v5 = vpop.f32.mrb[11].mxu1  ;;  %v937_v6 = vsel %vm309_vm2, %v912_v4, -inf }
 0x30e   :  { %938 = vmax.xlane.f32.xlu0 %v937_v6 }
 0x31b   :  { %1004 = vrot.lane.b32.xlu1 %v8417_v31, %s8223_s18 }
 0x31f   :  { %1156 = vrot.lane.b32.xlu1 %v8443_v34, %s8223_s18 }
 0x323   :  { %1232 = vrot.lane.b32.xlu1 %v8449_v36, %s8223_s18 }
 0x324   :  { %1080 = vrot.lane.b32.xlu0 %v8427_v32, %s8223_s18 }
 0x327   :  { %1384 = vrot.lane.b32.xlu1 %v8447_v35, %s8223_s18 }
 0x328   :  { %1308 = vrot.lane.b32.xlu0 %v8441_v33, %s8223_s18  ;;  %v921_v7 = vpop.xlane.xlu1 %920 }
 0x329   :  { %v941_v8 = vsub.f32 %v456_v47, %v921_v7  ;;  %v918_v9 = vpop.xlane.xlu0 %917 }
 0x32a   :  { %v940_v11 = vsub.f32 %v380_v48, %v918_v9 }
 0x32b   :  { %v950_v10 = vmul.f32 1.442695, %v941_v8 }
 0x32c   :  { %v948_v12 = vmul.f32 1.442695, %v940_v11 }
 0x32d   :  { %7916 = vpow2.f32 %v950_v10 }
 0x32e   :  { %7918 = vpow2.f32 %v948_v12 }
 0x337   :  { %v8533_v13 = vpop.eup %7916 }
 0x338   :  { %v967_v14 = vsel %vm309_vm2, %v8533_v13, 0.0  ;;  %v8537_v16 = vpop.eup %7918 }
 0x339   :  { %v964_v17 = vsel %vm309_vm2, %v8537_v16, 0.0 }
 0x347   :  { %968 = vadd.xlane.f32.xlu0 %v967_v14 }
 0x34b   :  { %965 = vadd.xlane.f32.xlu1 %v964_v17 }
 0x38f   :  { %v924_v19 = vpop.xlane.xlu0 %923 }
 0x390   :  { %v942_v22 = vsub.f32 %v532_v53, %v924_v19 }
 0x392   :  { %v952_v27 = vmul.f32 1.442695, %v942_v22 }
 0x393   :  { %v930_v28 = vpop.xlane.xlu1 %929  ;;  %v927_v30 = vpop.xlane.xlu0 %926 }
 0x394   :  { %7920 = vpow2.f32 %v952_v27  ;;  %v944_v31 = vsub.f32 %v684_v57, %v930_v28  ;;  %v943_v32 = vsub.f32 %v608_v56, %v927_v30 }
 0x396   :  { %v956_v33 = vmul.f32 1.442695, %v944_v31  ;;  %v954_v34 = vmul.f32 1.442695, %v943_v32 }
 0x397   :  { %v936_v35 = vpop.xlane.xlu1 %935  ;;  %v933_v36 = vpop.xlane.xlu0 %932 }
 0x398   :  { %7922 = vpow2.f32 %v956_v33  ;;  %v946_v39 = vsub.f32 %v836_v63, %v936_v35  ;;  %v945_v40 = vsub.f32 %v760_v62, %v933_v36  ;;  %v1644_v33 = vld [vmem:[%s9401_s7] sm:$0xff] }
 0x399   :  { %7924 = vpow2.f32 %v954_v34  ;;  %v1645_v34 = vld [vmem:[%s9401_s7 + $0x8] sm:$0xff] }
 0x39a   :  { %v960_v41 = vmul.f32 1.442695, %v946_v39  ;;  %v958_v42 = vmul.f32 1.442695, %v945_v40  ;;  %v7794_v35 = vpack.c.bf16 %v1645_v34, %v1644_v33  ;;  %v1784_v33 = vld [vmem:[#allocation7 + $0x10] sm:$0xff]  ;;  %v1785_v34 = vld [vmem:[#allocation7 + $0x18] sm:$0xff] }
 0x39b   :  { %v1005_v43 = vpop.permute.xlu1 %1004  ;;  %v939_v44 = vpop.xlane.xlu0 %938 }
 0x39c   :  { %7926 = vpow2.f32 %v960_v41  ;;  %v947_v45 = vsub.f32 %v912_v4, %v939_v44  ;;  %7362 = vmatpush3.msra.mxu0 %v1005_v43  ;;  %v1647_v43 = vld [vmem:[%s9401_s7 + $0x18] sm:$0xff] }
 0x39d   :  { %7928 = vpow2.f32 %v958_v42  ;;  %7371 = vmatprep.subr.mxu0 %v8217_v29  ;;  %v1646_v42 = vld [vmem:[%s9401_s7 + $0x10] sm:$0xff] }
 0x39e   :  { %v7921_v46 = vpop.eup %7920  ;;  %v962_v47 = vmul.f32 1.442695, %v947_v45  ;;  %v7798_v44 = vpack.c.bf16 %v1647_v43, %v1646_v42 }
 0x39f   :  { %v1081_v48 = vpop.permute.xlu0 %1080  ;;  %v970_v49 = vsel %vm309_vm2, %v7921_v46, 0.0  ;;  %v1157_v60 = vpop.permute.xlu1 %1156 }
 0x3a0   :  { %7930 = vpow2.f32 %v962_v47  ;;  %971 = vadd.xlane.f32.xlu1 %v970_v49  ;;  %7367 = vmatpush3.msra.mxu1 %v1081_v48 }
 0x3a1   :  { %7376 = vmatprep.subr.mxu1 %v8217_v29 }
 0x3a2   :  { %v7923_v50 = vpop.eup %7922 }
 0x3a3   :  { %v7925_v51 = vpop.eup %7924  ;;  %v976_v52 = vsel %vm309_vm2, %v7923_v50, 0.0  ;;  %v1233_v61 = vpop.permute.xlu1 %1232 }
 0x3a4   :  { %977 = vadd.xlane.f32.xlu1 %v976_v52  ;;  %v973_v53 = vsel %vm309_vm2, %v7925_v51, 0.0  ;;  %v1309_v62 = vpop.permute.xlu0 %1308 }
 0x3a5   :  { %974 = vadd.xlane.f32.xlu0 %v973_v53 }
 0x3a6   :  { %v7927_v54 = vpop.eup %7926 }
 0x3a7   :  { %v8546_v55 = vpop.eup %7928  ;;  %v982_v56 = vsel %vm309_vm2, %v7927_v54, 0.0  ;;  %v1385_v63 = vpop.permute.xlu1 %1384 }
 0x3a8   :  { %983 = vadd.xlane.f32.xlu1 %v982_v56  ;;  %v979_v57 = vsel %vm309_vm2, %v8546_v55, 0.0 }
 0x3a9   :  { %980 = vadd.xlane.f32.xlu0 %v979_v57 }
 0x3aa   :  { %v8551_v58 = vpop.eup %7930 }
 0x3ab   :  { %v985_v59 = vsel %vm309_vm2, %v8551_v58, 0.0 }
 0x3ad   :  { %986 = vadd.xlane.f32.xlu0 %v985_v59 }
 0x3b9   :  { %1536 = vrot.lane.b32.xlu1 %v8455_v37, %s8223_s18 }
 0x3c3   :  { %1460 = vrot.lane.b32.xlu0 %v8457_v38, %s8223_s18 }
 0x3d4   :  { %v969_v0 = vpop.xlane.xlu0 %968 }
 0x3d5   :  { %7932 = vrcp.f32 %v969_v0 }
 0x3d8   :  { %v966_v1 = vpop.xlane.xlu1 %965 }
 0x3d9   :  { %7934 = vrcp.f32 %v966_v1 }
 0x3df   :  { %v7933_v2 = vpop.eup %7932 }
 0x3e0   :  { %v997_v3 = vmul.f32 %v7933_v2, %v8533_v13 }
 0x3e2   :  { %7369 = vmatmul.mubr.msk.f32.vlgmr.msra.gmra.mrb[12].mxu1 %vm309_vm2, %v997_v3 }
 0x3e3   :  { %v7935_v4 = vpop.eup %7934  ;;  %7377 = vmatpush3.msra.mxu1 %v1233_v61  ;;  %7378 = vmatprep.mubr.msk.f32.mxu1 %vm8220_vm1, %v8217_v29 }
 0x3e4   :  { %v996_v37 = vmul.f32 %v7935_v4, %v8537_v16  ;;  %7386 = vmatprep.subr.mxu1 %v8217_v29 }
 0x3e6   :  { %7364 = vmatmul.mubr.msk.f32.vlgmr.msra.gmra.mrb[8].mxu0 %vm309_vm2, %v996_v37 }
 0x3e7   :  { %7372 = vmatpush3.msra.mxu0 %v1157_v60  ;;  %7373 = vmatprep.mubr.msk.f32.mxu0 %vm8220_vm1, %v8217_v29 }
 0x3e8   :  { %7381 = vmatprep.subr.mxu0 %v8217_v29 }
 0x42d   :  { %v972_v38 = vpop.xlane.xlu1 %971 }
 0x42e   :  { %7936 = vrcp.f32 %v972_v38  ;;  %v8622_v38 = vadd.f32 %v8397_v20, %v8404_v24 }
 0x431   :  { %v978_v5 = vpop.xlane.xlu1 %977 }
 0x432   :  { %7938 = vrcp.f32 %v978_v5  ;;  %v975_v6 = vpop.xlane.xlu0 %974 }
 0x433   :  { %7940 = vrcp.f32 %v975_v6 }
 0x435   :  { %v984_v7 = vpop.xlane.xlu1 %983 }
 0x436   :  { %7942 = vrcp.f32 %v984_v7  ;;  %v981_v8 = vpop.xlane.xlu0 %980 }
 0x437   :  { %7944 = vrcp.f32 %v981_v8 }
 0x438   :  { %v7937_v9 = vpop.eup %7936 }
 0x439   :  { %v998_v10 = vmul.f32 %v7937_v9, %v7921_v46  ;;  %v1537_v30 = vpop.permute.xlu1 %1536 }
 0x43a   :  { %v987_v11 = vpop.xlane.xlu0 %986 }
 0x43b   :  { %7946 = vrcp.f32 %v987_v11  ;;  %7374 = vmatmul.mubr.msk.f32.vlgmr.msra.gmra.mrb[10].mxu0 %vm309_vm2, %v998_v10 }
 0x43c   :  { %v7939_v12 = vpop.eup %7938  ;;  %7382 = vmatpush3.msra.mxu0 %v1309_v62  ;;  %7383 = vmatprep.mubr.msk.f32.mxu0 %vm8220_vm1, %v8217_v29 }
 0x43d   :  { %v7941_v13 = vpop.eup %7940  ;;  %7391 = vmatprep.subr.mxu0 %v8217_v29  ;;  %v1000_v14 = vmul.f32 %v7939_v12, %v7923_v50  ;;  %v1654_v50 = vsub.s32 1, %v8399_v21 }
 0x43e   :  { %v1461_v16 = vpop.permute.xlu0 %1460  ;;  %v999_v17 = vmul.f32 %v7941_v13, %v7925_v51 }
 0x43f   :  { %7384 = vmatmul.mubr.msk.f32.vlgmr.msra.gmra.mrb[12].mxu0 %vm309_vm2, %v1000_v14 }
 0x440   :  { %v7943_v19 = vpop.eup %7942  ;;  %7379 = vmatmul.mubr.msk.f32.vlgmr.msra.gmra.mrb[14].mxu1 %vm309_vm2, %v999_v17  ;;  %7392 = vmatpush3.msra.mxu0 %v1461_v16 }
 0x441   :  { %v7945_v22 = vpop.eup %7944  ;;  %7387 = vmatpush3.msra.mxu1 %v1385_v63  ;;  %7388 = vmatprep.mubr.msk.f32.mxu1 %vm8220_vm1, %v8217_v29  ;;  %v1002_v27 = vmul.f32 %v7943_v19, %v7927_v54 }
 0x442   :  { %7393 = vmatprep.mubr.msk.f32.mxu0 %vm8220_vm1, %v8217_v29  ;;  %7396 = vmatprep.subr.mxu1 %v8217_v29  ;;  %v1001_v28 = vmul.f32 %v7945_v22, %v8546_v55  ;;  %v8608_v55 = vrot.slane %v8410_v26, %v1654_v50 }
 0x443   :  { %7394 = vmatmul.mubr.msk.f32.vlgmr.msra.gmra.mrb[14].mxu0 %vm309_vm2, %v1002_v27  ;;  %7795 = vmatprep.subr.bf16.mxu0 %v7794_v35 }
 0x444   :  { %7389 = vmatmul.mubr.msk.f32.vlgmr.msra.gmra.mrb[16].mxu1 %vm309_vm2, %v1001_v28  ;;  %7797 = vmatpush3.bf16.msra.mxu0 %v7794_v35  ;;  %v7806_v35 = vpack.c.bf16 %v1785_v34, %v1784_v33 }
 0x445   :  { %v7947_v31 = vpop.eup %7946  ;;  %7397 = vmatpush3.msra.mxu1 %v1537_v30  ;;  %7398 = vmatprep.mubr.msk.f32.mxu1 %vm8220_vm1, %v8217_v29 }
 0x446   :  { %v1003_v32 = vmul.f32 %v7947_v31, %v8551_v58  ;;  %7799 = vmatprep.subr.bf16.mxu0 %v7798_v44  ;;  %v1783_v31 = vld [vmem:[#allocation7 + $0x8] sm:$0xff] }
 0x448   :  { %7399 = vmatmul.mubr.msk.f32.vlgmr.msra.gmra.mrb[18].mxu1 %vm309_vm2, %v1003_v32  ;;  %7801 = vmatpush3.bf16.msra.mxu0 %v7798_v44  ;;  %v1772_v44 = vsub.s32 3, %v8399_v21 }
 0x449   :  { %7423 = vmatprep.subr.mxu0 %v8217_v29 }
 0x4b5   :  { %v1152_v36 = vpop.f32.mrb[12].mxu1 }
 0x4b6   :  { %v7370_v39 = vpop.f32.mrb[13].mxu1 }
 0x4b9   :  { %v1076_v40 = vpop.f32.mrb[8].mxu0 }
 0x4ba   :  { %v7365_v41 = vpop.f32.mrb[9].mxu0 }
 0x50e   :  { %v1228_v45 = vpop.f32.mrb[10].mxu0 }
 0x50f   :  { %v7375_v46 = vpop.f32.mrb[11].mxu0  ;;  %1614 = vrot.lane.b32.xlu0 %v1228_v45, %s8214_s20  ;;  %v1778_v45 = vsub.s32 4, %v8399_v21 }
 0x510   :  { %v8655_v46 = vrot.slane %v8410_v26, %v1772_v44 }
 0x512   :  { %v1380_v47 = vpop.f32.mrb[12].mxu0 }
 0x513   :  { %v1304_v48 = vpop.f32.mrb[14].mxu1  ;;  %1622 = vrot.lane.b32.xlu0 %v1380_v47, %s8224_s28  ;;  %v7385_v49 = vpop.f32.mrb[13].mxu0 }
 0x514   :  { %1616 = vrot.lane.b32.xlu1 %v1304_v48, %s8214_s20  ;;  %v7380_v51 = vpop.f32.mrb[15].mxu1 }
 0x515   :  { %v8660_v51 = vrot.slane %v8410_v26, %v1778_v45 }
 0x516   :  { %v1532_v52 = vpop.f32.mrb[14].mxu0 }
 0x517   :  { %v1456_v53 = vpop.f32.mrb[16].mxu1  ;;  %1630 = vrot.lane.b32.xlu0 %v1532_v52, %s8225_s29  ;;  %v7395_v54 = vpop.f32.mrb[15].mxu0 }
 0x518   :  { %1624 = vrot.lane.b32.xlu1 %v1456_v53, %s8224_s28  ;;  %v7390_v56 = vpop.f32.mrb[17].mxu1 }
 0x51b   :  { %v1608_v57 = vpop.f32.mrb[18].mxu1  ;;  %1657 = vrot.lane.b32.xlu0 %v8608_v55, %s8222_s2 }
 0x51c   :  { %1632 = vrot.lane.b32.xlu1 %v1608_v57, %s8225_s29  ;;  %v7400_v58 = vpop.f32.mrb[19].mxu1 }
 0x581   :  { %v1615_v59 = vpop.permute.xlu0 %1614 }
 0x582   :  { %v1636_v62 = vsel %vm309_vm2, %v1076_v40, %v1615_v59 }
 0x585   :  { %v1623_v60 = vpop.permute.xlu0 %1622 }
 0x586   :  { %v1617_v61 = vpop.permute.xlu1 %1616  ;;  %v1639_v63 = vsel %vm1638_vm3, %v1636_v62, %v1623_v60 }
 0x587   :  { %v1637_v3 = vsel %vm309_vm2, %v1152_v36, %v1617_v61 }
 0x589   :  { %v1631_v0 = vpop.permute.xlu0 %1630 }
 0x58a   :  { %v1625_v1 = vpop.permute.xlu1 %1624  ;;  %v1642_v2 = vsel %vm1641_vm4, %v1639_v63, %v1631_v0 }
 0x58b   :  { %7409 = vmatprep.mubr.msk.f32.mxu0 %vm121_vm0, %v1642_v2  ;;  %v1640_v4 = vsel %vm1638_vm3, %v1637_v3, %v1625_v1 }
 0x58d   :  { %v1658_v6 = vpop.permute.xlu0 %1657 }
 0x58e   :  { %v1633_v37 = vpop.permute.xlu1 %1632 }
 0x58f   :  { %v1643_v5 = vsel %vm1641_vm4, %v1640_v4, %v1633_v37 }
 0x590   :  { %7410 = vmatmul.mubr.msk.f32.vlgmr.msra.gmra.mrb[16].mxu0 %vm121_vm0, %v1643_v5 }
 0x591   :  { %7424 = vmatpush3.xpose.msk.msra.mxu0 %vm309_vm2, %v8622_v38  ;;  %7425 = vmatprep.mubr.msk.f32.mxu0 %vm8220_vm1, %v8217_v29 }
 0x592   :  { %7433 = vmatprep.subr.mxu0 %v8217_v29 }
 0x663   :  { %v7411_v7 = vpop.f32.mrb[16].mxu0 }
 0x664   :  { %v1738_v8 = vadd.f32 %v7411_v7, %v1658_v6  ;;  %v1732_v9 = vpop.f32.mrb[17].mxu0 }
 0x665   :  { %v1733_v10 = vadd.f32 %v1732_v9, %v1658_v6 }
 0x666   :  { %v1742_v20 = vadd.f32 %v1738_v8, %v8393_v18 }
 0x667   :  { %v1741_v24 = vadd.f32 %v1733_v10, %v8385_v15  ;;  %v1782_v15 = vld [vmem:[#allocation7] sm:$0xff] }
 0x668   :  { %v1746_v11 = vsel %vm121_vm0, %v1742_v20, 0.0  ;;  %v7802_v32 = vpack.c.bf16 %v1783_v31, %v1782_v15 }
 0x669   :  { %1747 = vadd.xlane.f32.xlu0 %v1746_v11  ;;  %v1743_v12 = vsel %vm121_vm0, %v1741_v24, 0.0 }
 0x66a   :  { %1744 = vadd.xlane.f32.xlu1 %v1743_v12  ;;  %7803 = vmatprep.subr.bf16.mxu1 %v7802_v32 }
 0x66b   :  { %7805 = vmatpush3.bf16.msra.mxu1 %v7802_v32 }
 0x66c   :  { %7807 = vmatprep.subr.bf16.mxu1 %v7806_v35 }
 0x66f   :  { %7809 = vmatpush3.bf16.msra.mxu1 %v7806_v35 }
 0x670   :  { %7428 = vmatprep.subr.mxu1 %v8217_v29 }
 0x6f6   :  { %v1748_v13 = vpop.xlane.xlu0 %1747 }
 0x6f7   :  { %v1751_v14 = vmul.f32 0.03125, %v1748_v13  ;;  %v1745_v16 = vpop.xlane.xlu1 %1744 }
 0x6f8   :  { %v1750_v17 = vmul.f32 0.03125, %v1745_v16 }
 0x6f9   :  { %v1753_v19 = vsub.f32 %v1742_v20, %v1751_v14 }
 0x6fa   :  { %v1752_v22 = vsub.f32 %v1741_v24, %v1750_v17 }
 0x6fb   :  { %v1755_v27 = vmul.f32 %v1753_v19, %v1753_v19 }
 0x6fc   :  { %v1754_v28 = vmul.f32 %v1752_v22, %v1752_v22 }
 0x6fd   :  { %v1759_v30 = vsel %vm121_vm0, %v1755_v27, 0.0 }
 0x6fe   :  { %1760 = vadd.xlane.f32.xlu1 %v1759_v30  ;;  %v1756_v18 = vsel %vm121_vm0, %v1754_v28, 0.0 }
 0x6ff   :  { %1757 = vadd.xlane.f32.xlu0 %v1756_v18 }
 0x70f   :  { %1885 = vrot.lane.b32.xlu1 %v8402_v23, %s8219_s17 }
 0x713   :  { %1887 = vrot.lane.b32.xlu1 %v8622_v38, %s8218_s4 }
 0x715   :  { %1883 = vrot.lane.b32.xlu0 %v8622_v38, %s8219_s17 }
 0x717   :  { %1891 = vrot.lane.b32.xlu1 %v8622_v38, %s8221_s22 }
 0x719   :  { %1889 = vrot.lane.b32.xlu0 %v8402_v23, %s8218_s4 }
 0x71d   :  { %1893 = vrot.lane.b32.xlu0 %v8402_v23, %s8221_s22 }
 0x78b   :  { %v1761_v36 = vpop.xlane.xlu1 %1760 }
 0x78c   :  { %v1763_v39 = vmul.f32 0.03125, %v1761_v36  ;;  %v1758_v40 = vpop.xlane.xlu0 %1757 }
 0x78d   :  { %v1762_v41 = vmul.f32 0.03125, %v1758_v40 }
 0x78e   :  { %v1765_v42 = vadd.f32 1e-05, %v1763_v39 }
 0x78f   :  { %v1764_v43 = vadd.f32 1e-05, %v1762_v41  ;;  %v8681_v61 = vpop.permute.xlu1 %1885 }
 0x790   :  { %7948 = vrsqrt.f32 %v1765_v42  ;;  %v8688_v62 = vpop.permute.xlu0 %1883 }
 0x791   :  { %7950 = vrsqrt.f32 %v1764_v43 }
 0x793   :  { %v8705_v0 = vpop.permute.xlu1 %1887 }
 0x794   :  { %v8703_v63 = vpop.permute.xlu0 %1889 }
 0x797   :  { %v8709_v2 = vpop.permute.xlu1 %1891 }
 0x798   :  { %v8707_v1 = vpop.permute.xlu0 %1893 }
 0x79a   :  { %v7949_v47 = vpop.eup %7948 }
 0x79b   :  { %v7951_v48 = vpop.eup %7950  ;;  %v1769_v49 = vmul.f32 %v7949_v47, %v1753_v19 }
 0x79c   :  { %v1768_v52 = vmul.f32 %v7951_v48, %v1752_v22 }
 0x79d   :  { %v1775_v53 = vmul.f32 %v8655_v46, %v1769_v49 }
 0x79e   :  { %v1774_v54 = vmul.f32 %v8655_v46, %v1768_v52 }
 0x79f   :  { %v8668_v57 = vadd.f32 %v8660_v51, %v1775_v53 }
 0x7a0   :  { %v8665_v56 = vadd.f32 %v8660_v51, %v1774_v54 }
 0x7a2   :  { %7420 = vmatprep.mubr.msk.f32.mxu1 %vm121_vm0, %v8665_v56 }
 0x7a3   :  { %7421 = vmatmul.mubr.msk.f32.vlgmr.msra.gmra.mrb[20].mxu1 %vm121_vm0, %v8668_v57 }
 0x7a4   :  { %7429 = vmatpush3.xpose.msk.msra.mxu1 %vm309_vm2, %v8402_v23  ;;  %7430 = vmatprep.mubr.msk.f32.mxu1 %vm8220_vm1, %v8217_v29 }
 0x7a5   :  { %7438 = vmatprep.subr.mxu1 %v8217_v29 }
 0x876   :  { %v7422_v26 = vpop.f32.mrb[20].mxu1 }
 0x877   :  { %v1864_v58 = vadd.f32 %v7422_v26, %v8608_v55  ;;  %v1858_v59 = vpop.f32.mrb[21].mxu1 }
 0x878   :  { %v1859_v60 = vadd.f32 %v1858_v59, %v8608_v55 }
 0x879   :  { %1871 = vrot.lane.b32.xlu0 %v1864_v58, %s8219_s17  ;;  %7431 = vmatmul.mubr.msk.f32.vlgmr.msra.gmra.mrb[22].mxu1 %vm309_vm2, %v1864_v58 }
 0x87a   :  { %7439 = vmatpush3.xpose.msk.msra.mxu1 %vm309_vm2, %v8681_v61  ;;  %1869 = vrot.lane.b32.xlu1 %v1859_v60, %s8219_s17 }
 0x87b   :  { %7426 = vmatmul.mubr.msk.f32.vlgmr.msra.gmra.mrb[18].mxu0 %vm309_vm2, %v1859_v60  ;;  %7440 = vmatprep.mubr.msk.f32.mxu1 %vm8220_vm1, %v8217_v29 }
 0x87c   :  { %7434 = vmatpush3.xpose.msk.msra.mxu0 %vm309_vm2, %v8688_v62  ;;  %7448 = vmatprep.subr.mxu1 %v8217_v29 }
 0x87d   :  { %1875 = vrot.lane.b32.xlu0 %v1864_v58, %s8218_s4  ;;  %7435 = vmatprep.mubr.msk.f32.mxu0 %vm8220_vm1, %v8217_v29 }
 0x87e   :  { %1873 = vrot.lane.b32.xlu1 %v1859_v60, %s8218_s4  ;;  %7443 = vmatprep.subr.mxu0 %v8217_v29 }
 0x881   :  { %1879 = vrot.lane.b32.xlu0 %v1864_v58, %s8221_s22 }
 0x882   :  { %1877 = vrot.lane.b32.xlu1 %v1859_v60, %s8221_s22 }
 0x8eb   :  { %v1872_v3 = vpop.permute.xlu0 %1871 }
 0x8ec   :  { %7441 = vmatmul.mubr.msk.f32.vlgmr.msra.gmra.mrb[24].mxu1 %vm309_vm2, %v1872_v3  ;;  %v1870_v4 = vpop.permute.xlu1 %1869 }
 0x8ed   :  { %7449 = vmatpush3.xpose.msk.msra.mxu1 %vm309_vm2, %v8703_v63  ;;  %7436 = vmatmul.mubr.msk.f32.vlgmr.msra.gmra.mrb[20].mxu0 %vm309_vm2, %v1870_v4 }
 0x8ee   :  { %7444 = vmatpush3.xpose.msk.msra.mxu0 %vm309_vm2, %v8705_v0  ;;  %7450 = vmatprep.mubr.msk.f32.mxu1 %vm8220_vm1, %v8217_v29 }
 0x8ef   :  { %v1876_v37 = vpop.permute.xlu0 %1875  ;;  %7458 = vmatprep.subr.mxu1 %v8217_v29  ;;  %7445 = vmatprep.mubr.msk.f32.mxu0 %vm8220_vm1, %v8217_v29 }
 0x8f0   :  { %7451 = vmatmul.mubr.msk.f32.vlgmr.msra.gmra.mrb[26].mxu1 %vm309_vm2, %v1876_v37  ;;  %7453 = vmatprep.subr.mxu0 %v8217_v29  ;;  %v1874_v5 = vpop.permute.xlu1 %1873 }
 0x8f1   :  { %7459 = vmatpush3.xpose.msk.msra.mxu1 %vm309_vm2, %v8707_v1  ;;  %7446 = vmatmul.mubr.msk.f32.vlgmr.msra.gmra.mrb[22].mxu0 %vm309_vm2, %v1874_v5 }
 0x8f2   :  { %7454 = vmatpush3.xpose.msk.msra.mxu0 %vm309_vm2, %v8709_v2  ;;  %7460 = vmatprep.mubr.msk.f32.mxu1 %vm8220_vm1, %v8217_v29 }
 0x8f3   :  { %v1880_v6 = vpop.permute.xlu0 %1879  ;;  %7455 = vmatprep.mubr.msk.f32.mxu0 %vm8220_vm1, %v8217_v29  ;;  %7468 = vmatprep.subr.mxu1 %v8217_v29 }
 0x8f4   :  { %7461 = vmatmul.mubr.msk.f32.vlgmr.msra.gmra.mrb[28].mxu1 %vm309_vm2, %v1880_v6  ;;  %v1878_v7 = vpop.permute.xlu1 %1877  ;;  %7463 = vmatprep.subr.mxu0 %v8217_v29 }
 0x8f5   :  { %7456 = vmatmul.mubr.msk.f32.vlgmr.msra.gmra.mrb[24].mxu0 %vm309_vm2, %v1878_v7  ;;  %7470 = vmatprep.mubr.msk.f32.mxu1 %vm8220_vm1, %v8217_v29 }
 0x8f6   :  { %7465 = vmatprep.mubr.msk.f32.mxu0 %vm8220_vm1, %v8217_v29 }
 0x94c   :  { %v2039_v8 = vpop.f32.mrb[22].mxu1 }
 0x94d   :  { %v7432_v9 = vpop.f32.mrb[23].mxu1  ;;  %v2490_v10 = vsel %vm309_vm2, %v2039_v8, -inf }
 0x94e   :  { %v1965_v20 = vpop.f32.mrb[18].mxu0  ;;  %2491 = vmax.xlane.f32.xlu0 %v2490_v10 }
 0x94f   :  { %v7427_v24 = vpop.f32.mrb[19].mxu0  ;;  %v2487_v11 = vsel %vm309_vm2, %v1965_v20, -inf }
 0x950   :  { %2488 = vmax.xlane.f32.xlu1 %v2487_v11 }
 0x9bf   :  { %v2187_v12 = vpop.f32.mrb[24].mxu1 }
 0x9c0   :  { %v2113_v13 = vpop.f32.mrb[20].mxu0  ;;  %v7442_v14 = vpop.f32.mrb[25].mxu1  ;;  %v2496_v16 = vsel %vm309_vm2, %v2187_v12, -inf }
 0x9c1   :  { %2497 = vmax.xlane.f32.xlu1 %v2496_v16  ;;  %v7437_v17 = vpop.f32.mrb[21].mxu0  ;;  %v2493_v19 = vsel %vm309_vm2, %v2113_v13, -inf }
 0x9c2   :  { %2494 = vmax.xlane.f32.xlu0 %v2493_v19 }
 0x9c3   :  { %v2335_v22 = vpop.f32.mrb[26].mxu1 }
 0x9c4   :  { %v2261_v27 = vpop.f32.mrb[22].mxu0  ;;  %v7452_v28 = vpop.f32.mrb[27].mxu1  ;;  %v2502_v30 = vsel %vm309_vm2, %v2335_v22, -inf }
 0x9c5   :  { %2503 = vmax.xlane.f32.xlu1 %v2502_v30  ;;  %v7447_v18 = vpop.f32.mrb[23].mxu0  ;;  %v2499_v15 = vsel %vm309_vm2, %v2261_v27, -inf }
 0x9c6   :  { %2500 = vmax.xlane.f32.xlu0 %v2499_v15 }
 0x9c7   :  { %v2483_v31 = vpop.f32.mrb[28].mxu1 }
 0x9c8   :  { %v2409_v32 = vpop.f32.mrb[24].mxu0  ;;  %v7462_v33 = vpop.f32.mrb[29].mxu1  ;;  %v2508_v34 = vsel %vm309_vm2, %v2483_v31, -inf }
 0x9c9   :  { %2509 = vmax.xlane.f32.xlu1 %v2508_v34  ;;  %v7457_v35 = vpop.f32.mrb[25].mxu0  ;;  %v2505_v36 = vsel %vm309_vm2, %v2409_v32, -inf }
 0x9ca   :  { %2506 = vmax.xlane.f32.xlu0 %v2505_v36 }
 0x9da   :  { %2651 = vrot.lane.b32.xlu1 %v8402_v23, %s8222_s2 }
 0x9db   :  { %v2492_v39 = vpop.xlane.xlu0 %2491 }
 0x9dc   :  { %v2512_v41 = vsub.f32 %v2039_v8, %v2492_v39 }
 0x9dd   :  { %v2489_v40 = vpop.xlane.xlu1 %2488 }
 0x9de   :  { %2727 = vrot.lane.b32.xlu1 %v8688_v62, %s8222_s2  ;;  %v2511_v42 = vsub.f32 %v1965_v20, %v2489_v40  ;;  %v2521_v43 = vmul.f32 1.442695, %v2512_v41 }
 0x9e0   :  { %2575 = vrot.lane.b32.xlu0 %v8622_v38, %s8222_s2  ;;  %v2519_v47 = vmul.f32 1.442695, %v2511_v42  ;;  %7952 = vpow2.f32 %v2521_v43 }
 0x9e2   :  { %2879 = vrot.lane.b32.xlu1 %v8705_v0, %s8222_s2  ;;  %7954 = vpow2.f32 %v2519_v47 }
 0x9e4   :  { %2803 = vrot.lane.b32.xlu0 %v8681_v61, %s8222_s2 }
 0x9e8   :  { %2955 = vrot.lane.b32.xlu0 %v8703_v63, %s8222_s2 }
 0x9ea   :  { %v8761_v48 = vpop.eup %7952 }
 0x9eb   :  { %v2538_v52 = vsel %vm309_vm2, %v8761_v48, 0.0 }
 0x9ec   :  { %v8763_v49 = vpop.eup %7954 }
 0x9ed   :  { %v2535_v53 = vsel %vm309_vm2, %v8763_v49, 0.0 }
 0xa06   :  { %2539 = vadd.xlane.f32.xlu1 %v2538_v52 }
 0xa07   :  { %2536 = vadd.xlane.f32.xlu0 %v2535_v53 }
 0xa4e   :  { %v2498_v54 = vpop.xlane.xlu1 %2497 }
 0xa4f   :  { %v2514_v26 = vsub.f32 %v2187_v12, %v2498_v54  ;;  %v2495_v58 = vpop.xlane.xlu0 %2494 }
 0xa50   :  { %v2513_v59 = vsub.f32 %v2113_v13, %v2495_v58 }
 0xa51   :  { %v2525_v60 = vmul.f32 1.442695, %v2514_v26 }
 0xa52   :  { %v2523_v3 = vmul.f32 1.442695, %v2513_v59  ;;  %v2504_v4 = vpop.xlane.xlu1 %2503 }
 0xa53   :  { %7956 = vpow2.f32 %v2525_v60  ;;  %v2516_v37 = vsub.f32 %v2335_v22, %v2504_v4  ;;  %v2501_v5 = vpop.xlane.xlu0 %2500 }
 0xa54   :  { %7958 = vpow2.f32 %v2523_v3  ;;  %v2515_v6 = vsub.f32 %v2261_v27, %v2501_v5 }
 0xa55   :  { %v2529_v7 = vmul.f32 1.442695, %v2516_v37 }
 0xa56   :  { %v2527_v8 = vmul.f32 1.442695, %v2515_v6  ;;  %v2510_v9 = vpop.xlane.xlu1 %2509 }
 0xa57   :  { %7960 = vpow2.f32 %v2529_v7  ;;  %v2518_v10 = vsub.f32 %v2483_v31, %v2510_v9  ;;  %v2507_v20 = vpop.xlane.xlu0 %2506 }
 0xa58   :  { %7962 = vpow2.f32 %v2527_v8  ;;  %v2517_v24 = vsub.f32 %v2409_v32, %v2507_v20 }
 0xa59   :  { %v2533_v11 = vmul.f32 1.442695, %v2518_v10 }
 0xa5a   :  { %v2531_v12 = vmul.f32 1.442695, %v2517_v24  ;;  %v2652_v14 = vpop.permute.xlu1 %2651 }
 0xa5b   :  { %7964 = vpow2.f32 %v2533_v11  ;;  %v2576_v13 = vpop.permute.xlu0 %2575  ;;  %7469 = vmatpush3.msra.mxu1 %v2652_v14 }
 0xa5c   :  { %7966 = vpow2.f32 %v2531_v12  ;;  %7464 = vmatpush3.msra.mxu0 %v2576_v13  ;;  %7478 = vmatprep.subr.mxu1 %v8217_v29 }
 0xa5d   :  { %v7957_v16 = vpop.eup %7956  ;;  %7473 = vmatprep.subr.mxu0 %v8217_v29 }
 0xa5e   :  { %v7959_v17 = vpop.eup %7958  ;;  %v2544_v19 = vsel %vm309_vm2, %v7957_v16, 0.0  ;;  %v2728_v34 = vpop.permute.xlu1 %2727 }
 0xa5f   :  { %2545 = vadd.xlane.f32.xlu1 %v2544_v19  ;;  %v2541_v22 = vsel %vm309_vm2, %v7959_v17, 0.0  ;;  %v2804_v35 = vpop.permute.xlu0 %2803  ;;  %v1649_v19 = vld [vmem:[%s9401_s7 + $0x28] sm:$0xff] }
 0xa60   :  { %2542 = vadd.xlane.f32.xlu0 %v2541_v22 }
 0xa61   :  { %v7961_v27 = vpop.eup %7960 }
 0xa62   :  { %v7963_v28 = vpop.eup %7962  ;;  %v2550_v30 = vsel %vm309_vm2, %v7961_v27, 0.0  ;;  %v2880_v36 = vpop.permute.xlu1 %2879 }
 0xa63   :  { %2551 = vadd.xlane.f32.xlu1 %v2550_v30  ;;  %v2547_v18 = vsel %vm309_vm2, %v7963_v28, 0.0  ;;  %v2956_v39 = vpop.permute.xlu0 %2955 }
 0xa64   :  { %2548 = vadd.xlane.f32.xlu0 %v2547_v18 }
 0xa65   :  { %v8775_v15 = vpop.eup %7964 }
 0xa66   :  { %v8777_v31 = vpop.eup %7966  ;;  %v2556_v32 = vsel %vm309_vm2, %v8775_v15, 0.0 }
 0xa67   :  { %2557 = vadd.xlane.f32.xlu1 %v2556_v32  ;;  %v2553_v33 = vsel %vm309_vm2, %v8777_v31, 0.0 }
 0xa68   :  { %2554 = vadd.xlane.f32.xlu0 %v2553_v33 }
 0xa78   :  { %3031 = vrot.lane.b32.xlu1 %v8709_v2, %s8222_s2 }
 0xa7e   :  { %3107 = vrot.lane.b32.xlu0 %v8707_v1, %s8222_s2 }
 0xa93   :  { %v2540_v40 = vpop.xlane.xlu1 %2539 }
 0xa94   :  { %7968 = vrcp.f32 %v2540_v40  ;;  %v2537_v41 = vpop.xlane.xlu0 %2536 }
 0xa95   :  { %7970 = vrcp.f32 %v2537_v41 }
 0xa9e   :  { %v7969_v42 = vpop.eup %7968 }
 0xa9f   :  { %v7971_v43 = vpop.eup %7970  ;;  %v2568_v47 = vmul.f32 %v7969_v42, %v8761_v48 }
 0xaa0   :  { %v2567_v52 = vmul.f32 %v7971_v43, %v8763_v49 }
 0xaa1   :  { %7471 = vmatmul.mubr.msk.f32.vlgmr.msra.gmra.mrb[30].mxu1 %vm309_vm2, %v2568_v47 }
 0xaa2   :  { %7479 = vmatpush3.msra.mxu1 %v2804_v35  ;;  %7466 = vmatmul.mubr.msk.f32.vlgmr.msra.gmra.mrb[26].mxu0 %vm309_vm2, %v2567_v52 }
 0xaa3   :  { %7474 = vmatpush3.msra.mxu0 %v2728_v34  ;;  %7480 = vmatprep.mubr.msk.f32.mxu1 %vm8220_vm1, %v8217_v29 }
 0xaa4   :  { %7488 = vmatprep.subr.mxu1 %v8217_v29  ;;  %7475 = vmatprep.mubr.msk.f32.mxu0 %vm8220_vm1, %v8217_v29 }
 0xaa5   :  { %7483 = vmatprep.subr.mxu0 %v8217_v29 }
 0xaec   :  { %v2546_v53 = vpop.xlane.xlu1 %2545 }
 0xaed   :  { %7972 = vrcp.f32 %v2546_v53  ;;  %v2543_v48 = vpop.xlane.xlu0 %2542 }
 0xaee   :  { %7974 = vrcp.f32 %v2543_v48 }
 0xaf0   :  { %v2552_v49 = vpop.xlane.xlu1 %2551 }
 0xaf1   :  { %7976 = vrcp.f32 %v2552_v49  ;;  %v2549_v54 = vpop.xlane.xlu0 %2548 }
 0xaf2   :  { %7978 = vrcp.f32 %v2549_v54 }
 0xaf4   :  { %v2558_v26 = vpop.xlane.xlu1 %2557 }
 0xaf5   :  { %7980 = vrcp.f32 %v2558_v26  ;;  %v2555_v58 = vpop.xlane.xlu0 %2554 }
 0xaf6   :  { %7982 = vrcp.f32 %v2555_v58 }
 0xaf7   :  { %v7973_v59 = vpop.eup %7972 }
 0xaf8   :  { %v7975_v60 = vpop.eup %7974  ;;  %v2570_v3 = vmul.f32 %v7973_v59, %v7957_v16  ;;  %v3032_v10 = vpop.permute.xlu1 %3031 }
 0xaf9   :  { %v2569_v4 = vmul.f32 %v7975_v60, %v7959_v17  ;;  %v3108_v8 = vpop.permute.xlu0 %3107  ;;  %v1648_v17 = vld [vmem:[%s9401_s7 + $0x20] sm:$0xff] }
 0xafa   :  { %7481 = vmatmul.mubr.msk.f32.vlgmr.msra.gmra.mrb[32].mxu1 %vm309_vm2, %v2570_v3  ;;  %v7810_v22 = vpack.c.bf16 %v1649_v19, %v1648_v17  ;;  %v3337_v19 = vld [vmem:[#allocation10] sm:$0xff] }
 0xafb   :  { %v7977_v37 = vpop.eup %7976  ;;  %7489 = vmatpush3.msra.mxu1 %v2956_v39  ;;  %7476 = vmatmul.mubr.msk.f32.vlgmr.msra.gmra.mrb[28].mxu0 %vm309_vm2, %v2569_v4 }
 0xafc   :  { %v7979_v5 = vpop.eup %7978  ;;  %7484 = vmatpush3.msra.mxu0 %v2880_v36  ;;  %7490 = vmatprep.mubr.msk.f32.mxu1 %vm8220_vm1, %v8217_v29  ;;  %v2572_v6 = vmul.f32 %v7977_v37, %v7961_v27  ;;  %v1650_v27 = vld [vmem:[%s9401_s7 + $0x30] sm:$0xff] }
 0xafd   :  { %7498 = vmatprep.subr.mxu1 %v8217_v29  ;;  %7485 = vmatprep.mubr.msk.f32.mxu0 %vm8220_vm1, %v8217_v29  ;;  %v2571_v7 = vmul.f32 %v7979_v5, %v7963_v28  ;;  %v1651_v28 = vld [vmem:[%s9401_s7 + $0x38] sm:$0xff] }
 0xafe   :  { %7491 = vmatmul.mubr.msk.f32.vlgmr.msra.gmra.mrb[34].mxu1 %vm309_vm2, %v2572_v6  ;;  %7493 = vmatprep.subr.mxu0 %v8217_v29  ;;  %v7814_v30 = vpack.c.bf16 %v1651_v28, %v1650_v27  ;;  %v3339_v28 = vld [vmem:[#allocation10 + $0x10] sm:$0xff] }
 0xaff   :  { %v7981_v9 = vpop.eup %7980  ;;  %7499 = vmatpush3.msra.mxu1 %v3108_v8  ;;  %7486 = vmatmul.mubr.msk.f32.vlgmr.msra.gmra.mrb[30].mxu0 %vm309_vm2, %v2571_v7 }
 0xb00   :  { %v7983_v20 = vpop.eup %7982  ;;  %7494 = vmatpush3.msra.mxu0 %v3032_v10  ;;  %7500 = vmatprep.mubr.msk.f32.mxu1 %vm8220_vm1, %v8217_v29  ;;  %v2574_v24 = vmul.f32 %v7981_v9, %v8775_v15 }
 0xb01   :  { %7495 = vmatprep.mubr.msk.f32.mxu0 %vm8220_vm1, %v8217_v29  ;;  %v2573_v11 = vmul.f32 %v7983_v20, %v8777_v31  ;;  %7811 = vmatprep.subr.bf16.mxu0 %v7810_v22 }
 0xb02   :  { %7501 = vmatmul.mubr.msk.f32.vlgmr.msra.gmra.mrb[36].mxu1 %vm309_vm2, %v2574_v24 }
 0xb03   :  { %7496 = vmatmul.mubr.msk.f32.vlgmr.msra.gmra.mrb[32].mxu0 %vm309_vm2, %v2573_v11 }
 0xb04   :  { %7813 = vmatpush3.bf16.msra.mxu0 %v7810_v22  ;;  %v3338_v22 = vld [vmem:[#allocation10 + $0x8] sm:$0xff] }
 0xb05   :  { %7815 = vmatprep.subr.bf16.mxu0 %v7814_v30  ;;  %v7818_v27 = vpack.c.bf16 %v3338_v22, %v3337_v19 }
 0xb07   :  { %7819 = vmatprep.subr.bf16.mxu1 %v7818_v27 }
 0xb08   :  { %7817 = vmatpush3.bf16.msra.mxu0 %v7814_v30  ;;  %7821 = vmatpush3.bf16.msra.mxu1 %v7818_v27  ;;  %v3340_v30 = vld [vmem:[#allocation10 + $0x18] sm:$0xff] }
 0xb74   :  { %v2723_v12 = vpop.f32.mrb[30].mxu1 }
 0xb75   :  { %v2647_v14 = vpop.f32.mrb[26].mxu0  ;;  %v7472_v13 = vpop.f32.mrb[31].mxu1 }
 0xb76   :  { %v7467_v16 = vpop.f32.mrb[27].mxu0 }
 0xbcd   :  { %v2875_v18 = vpop.f32.mrb[32].mxu1 }
 0xbce   :  { %v2799_v15 = vpop.f32.mrb[28].mxu0  ;;  %3187 = vrot.lane.b32.xlu0 %v2875_v18, %s8214_s20  ;;  %v7482_v31 = vpop.f32.mrb[33].mxu1  ;;  %v7822_v18 = vpack.c.bf16 %v3340_v30, %v3339_v28 }
 0xbcf   :  { %3185 = vrot.lane.b32.xlu1 %v2799_v15, %s8214_s20  ;;  %v7477_v32 = vpop.f32.mrb[29].mxu0  ;;  %v3428_v15 = vld [vmem:[%s9403_s9] sm:$0xff]  ;;  %v3429_v31 = vld [vmem:[%s9403_s9 + $0x8] sm:$0xff] }
 0xbd0   :  { %7823 = vmatprep.subr.bf16.mxu1 %v7822_v18  ;;  %v3430_v32 = vld [vmem:[%s9403_s9 + $0x10] sm:$0xff] }
 0xbd1   :  { %v3027_v33 = vpop.f32.mrb[34].mxu1  ;;  %7825 = vmatpush3.bf16.msra.mxu1 %v7822_v18 }
 0xbd2   :  { %v2951_v34 = vpop.f32.mrb[30].mxu0  ;;  %3195 = vrot.lane.b32.xlu0 %v3027_v33, %s8224_s28  ;;  %v7492_v35 = vpop.f32.mrb[35].mxu1  ;;  %v3343_v33 = vsub.s32 2, %v8399_v21 }
 0xbd3   :  { %3193 = vrot.lane.b32.xlu1 %v2951_v34, %s8224_s28  ;;  %v7487_v36 = vpop.f32.mrb[31].mxu0  ;;  %v7826_v34 = vpack.c.bf16 %v3429_v31, %v3428_v15  ;;  %v3431_v35 = vld [vmem:[%s9403_s9 + $0x18] sm:$0xff] }
 0xbd4   :  { %v7830_v36 = vpack.c.bf16 %v3431_v35, %v3430_v32 }
 0xbd5   :  { %v3179_v39 = vpop.f32.mrb[36].mxu1  ;;  %7827 = vmatprep.subr.bf16.mxu0 %v7826_v34 }
 0xbd6   :  { %3203 = vrot.lane.b32.xlu0 %v3179_v39, %s8225_s29  ;;  %v3103_v40 = vpop.f32.mrb[32].mxu0  ;;  %v7502_v41 = vpop.f32.mrb[37].mxu1  ;;  %v3432_v39 = vld [vmem:[%s9403_s9 + $0x20] sm:$0xff] }
 0xbd7   :  { %3201 = vrot.lane.b32.xlu1 %v3103_v40, %s8225_s29  ;;  %v7497_v42 = vpop.f32.mrb[33].mxu0  ;;  %v3433_v40 = vld [vmem:[%s9403_s9 + $0x28] sm:$0xff]  ;;  %v8068_v41 = vld [vmem:[%s9404_s10] sm:$0x1f] }
 0xbd8   :  { %v3344_v42 = vrot.slane %v8068_v41, %v3343_v33  ;;  %v7005_v41 = vld [vmem:[%s9397_s3 + $0x20] sm:$0xff] }
 0xbdb   :  { %3213 = vrot.lane.b32.xlu1 %v8608_v55, %s8223_s18 }
 0xc40   :  { %v3188_v43 = vpop.permute.xlu0 %3187 }
 0xc41   :  { %v3186_v47 = vpop.permute.xlu1 %3185  ;;  %v3208_v54 = vsel %vm309_vm2, %v2723_v12, %v3188_v43  ;;  %v7834_v43 = vpack.c.bf16 %v3433_v40, %v3432_v39 }
 0xc42   :  { %v3207_v48 = vsel %vm309_vm2, %v2647_v14, %v3186_v47 }
 0xc44   :  { %v3196_v52 = vpop.permute.xlu0 %3195 }
 0xc45   :  { %v3194_v53 = vpop.permute.xlu1 %3193  ;;  %v3210_v59 = vsel %vm1638_vm3, %v3208_v54, %v3196_v52 }
 0xc46   :  { %v3209_v26 = vsel %vm1638_vm3, %v3207_v48, %v3194_v53 }
 0xc48   :  { %v3204_v49 = vpop.permute.xlu0 %3203 }
 0xc49   :  { %v3202_v58 = vpop.permute.xlu1 %3201  ;;  %v3212_v3 = vsel %vm1641_vm4, %v3210_v59, %v3204_v49 }
 0xc4a   :  { %v3211_v60 = vsel %vm1641_vm4, %v3209_v26, %v3202_v58 }
 0xc4b   :  { %7511 = vmatprep.mubr.msk.f32.mxu0 %vm121_vm0, %v3211_v60 }
 0xc4c   :  { %7512 = vmatmul.mubr.msk.f32.vlgmr.msra.gmra.mrb[34].mxu0 %vm121_vm0, %v3212_v3 }
 0xc4d   :  { %v3214_v55 = vpop.permute.xlu1 %3213  ;;  %7829 = vmatpush3.bf16.msra.mxu0 %v7826_v34 }
 0xc4e   :  { %7831 = vmatprep.subr.bf16.mxu0 %v7830_v36 }
 0xc51   :  { %7833 = vmatpush3.bf16.msra.mxu0 %v7830_v36 }
 0xc52   :  { %7835 = vmatprep.subr.bf16.mxu0 %v7834_v43 }
 0xc55   :  { %7837 = vmatpush3.bf16.msra.mxu0 %v7834_v43 }
 0xd1f   :  { %v7513_v4 = vpop.f32.mrb[34].mxu0 }
 0xd20   :  { %v3294_v37 = vadd.f32 %v7513_v4, %v3214_v55  ;;  %v3288_v5 = vpop.f32.mrb[35].mxu0 }
 0xd21   :  { %v3289_v6 = vadd.f32 %v3288_v5, %v3214_v55 }
 0xd22   :  { %v3298_v7 = vadd.f32 %v3294_v37, %v8668_v57 }
 0xd23   :  { %v3297_v8 = vadd.f32 %v3289_v6, %v8665_v56 }
 0xd24   :  { %v3302_v9 = vsel %vm121_vm0, %v3298_v7, 0.0 }
 0xd25   :  { %3303 = vadd.xlane.f32.xlu1 %v3302_v9  ;;  %v3299_v10 = vsel %vm121_vm0, %v3297_v8, 0.0 }
 0xd26   :  { %3300 = vadd.xlane.f32.xlu0 %v3299_v10 }
 0xd36   :  { %3326 = vrot.lane.b32.xlu1 %v8655_v46, %s8222_s2 }
 0xd3a   :  { %3437 = vrot.lane.b32.xlu1 %v3344_v42, %s8223_s18 }
 0xdb2   :  { %v3304_v20 = vpop.xlane.xlu1 %3303 }
 0xdb3   :  { %v3306_v24 = vmul.f32 0.03125, %v3304_v20  ;;  %v3301_v11 = vpop.xlane.xlu0 %3300 }
 0xdb4   :  { %v3305_v12 = vmul.f32 0.03125, %v3301_v11 }
 0xdb5   :  { %v3308_v14 = vsub.f32 %v3298_v7, %v3306_v24  ;;  %v3434_v7 = vld [vmem:[%s9403_s9 + $0x30] sm:$0xff] }
 0xdb6   :  { %v3307_v13 = vsub.f32 %v3297_v8, %v3305_v12  ;;  %v3327_v58 = vpop.permute.xlu1 %3326  ;;  %v3435_v8 = vld [vmem:[%s9403_s9 + $0x38] sm:$0xff] }
 0xdb7   :  { %v3310_v17 = vmul.f32 %v3308_v14, %v3308_v14  ;;  %v7838_v9 = vpack.c.bf16 %v3435_v8, %v3434_v7  ;;  %v8925_v8 = vld [vmem:[%s9404_s10 + $0x8] sm:$0x1f] }
 0xdb8   :  { %v3309_v16 = vmul.f32 %v3307_v13, %v3307_v13 }
 0xdb9   :  { %v3314_v56 = vsel %vm121_vm0, %v3310_v17, 0.0  ;;  %7839 = vmatprep.subr.bf16.mxu0 %v7838_v9 }
 0xdba   :  { %v3311_v57 = vsel %vm121_vm0, %v3309_v16, 0.0  ;;  %7841 = vmatpush3.bf16.msra.mxu0 %v7838_v9  ;;  %v3570_v9 = vrot.slane %v8925_v8, %v210_v25 }
 0xdbb   :  { %3312 = vadd.xlane.f32.xlu0 %v3311_v57  ;;  %7565 = vmatprep.subr.mxu0 %v8217_v29 }
 0xdbf   :  { %3315 = vadd.xlane.f32.xlu0 %v3314_v56 }
 0xdd5   :  { %3332 = vrot.lane.b32.xlu0 %v8660_v51, %s8222_s2 }
 0xe48   :  { %v3313_v47 = vpop.xlane.xlu0 %3312 }
 0xe49   :  { %v3317_v52 = vmul.f32 0.03125, %v3313_v47  ;;  %v7007_v47 = vld [vmem:[%s9397_s3 + $0x30] sm:$0xff] }
 0xe4b   :  { %v3319_v53 = vadd.f32 1e-05, %v3317_v52 }
 0xe4c   :  { %v3316_v48 = vpop.xlane.xlu0 %3315 }
 0xe4d   :  { %7984 = vrsqrt.f32 %v3319_v53  ;;  %v3318_v49 = vmul.f32 0.03125, %v3316_v48 }
 0xe4f   :  { %v3320_v54 = vadd.f32 1e-05, %v3318_v49 }
 0xe50   :  { %v3333_v60 = vpop.permute.xlu0 %3332 }
 0xe51   :  { %7986 = vrsqrt.f32 %v3320_v54 }
 0xe57   :  { %v7985_v26 = vpop.eup %7984 }
 0xe58   :  { %v3323_v59 = vmul.f32 %v7985_v26, %v3307_v13  ;;  %v3438_v13 = vpop.permute.xlu1 %3437 }
 0xe5a   :  { %v3329_v3 = vmul.f32 %v3327_v58, %v3323_v59 }
 0xe5b   :  { %v7987_v55 = vpop.eup %7986 }
 0xe5c   :  { %v3324_v4 = vmul.f32 %v7987_v55, %v3308_v14  ;;  %v3335_v37 = vadd.f32 %v3333_v60, %v3329_v3 }
 0xe5e   :  { %v3330_v5 = vmul.f32 %v3327_v58, %v3324_v4  ;;  %7522 = vmatprep.mubr.msk.f32.mxu1 %vm121_vm0, %v3335_v37 }
 0xe60   :  { %v3336_v6 = vadd.f32 %v3333_v60, %v3330_v5 }
 0xe62   :  { %7523 = vmatmul.mubr.msk.f32.vlgmr.msra.gmra.mrb[38].mxu1 %vm121_vm0, %v3336_v6 }
 0xf35   :  { %v7524_v10 = vpop.f32.mrb[38].mxu1 }
 0xf36   :  { %v3423_v20 = vadd.f32 %v7524_v10, %v3344_v42  ;;  %v3417_v24 = vpop.f32.mrb[39].mxu1 }
 0xf37   :  { %v3418_v11 = vadd.f32 %v3417_v24, %v3344_v42  ;;  %v7006_v42 = vld [vmem:[%s9397_s3 + $0x28] sm:$0xff] }
 0xf38   :  { %v3427_v14 = vmax.f32 %v3423_v20, 0.0  ;;  %v7842_v43 = vpack.c.bf16 %v7006_v42, %v7005_v41 }
 0xf39   :  { %v3426_v12 = vmax.f32 %v3418_v11, 0.0 }
 0xf3a   :  { %7843 = vmatprep.subr.bf16.mxu1 %v7842_v43 }
 0xf3b   :  { %7541 = vmatprep.mubr.msk.f32.mxu0 %vm3440_vm5, %v3426_v12  ;;  %7845 = vmatpush3.bf16.msra.mxu1 %v7842_v43 }
 0xf3c   :  { %7542 = vmatmul.mubr.msk.f32.vlgmr.msra.gmra.mrb[36].mxu0 %vm3440_vm5, %v3427_v14 }
 0xf3d   :  { %7567 = vmatprep.mubr.msk.f32.mxu0 %vm8220_vm1, %v8217_v29 }
0x100f   :  { %v7543_v16 = vpop.f32.mrb[36].mxu0 }
0x1010   :  { %v3519_v57 = vadd.f32 %v7543_v16, %v3438_v13  ;;  %v3513_v17 = vpop.f32.mrb[37].mxu0 }
0x1011   :  { %v3514_v56 = vadd.f32 %v3513_v17, %v3438_v13 }
0x1012   :  { %v3523_v19 = vadd.f32 %v3519_v57, %v3336_v6 }
0x1013   :  { %v3522_v22 = vadd.f32 %v3514_v56, %v3335_v37 }
0x1014   :  { %v3527_v27 = vsel %vm121_vm0, %v3523_v19, 0.0 }
0x1015   :  { %3528 = vadd.xlane.f32.xlu0 %v3527_v27  ;;  %v3524_v28 = vsel %vm121_vm0, %v3522_v22, 0.0 }
0x1016   :  { %3525 = vadd.xlane.f32.xlu1 %v3524_v28 }
0x10a2   :  { %v3529_v30 = vpop.xlane.xlu0 %3528 }
0x10a3   :  { %v3531_v18 = vmul.f32 0.03125, %v3529_v30  ;;  %v3526_v15 = vpop.xlane.xlu1 %3525 }
0x10a4   :  { %v3530_v31 = vmul.f32 0.03125, %v3526_v15 }
0x10a5   :  { %v3533_v32 = vsub.f32 %v3523_v19, %v3531_v18 }
0x10a6   :  { %v3532_v34 = vsub.f32 %v3522_v22, %v3530_v31 }
0x10a7   :  { %v3535_v35 = vmul.f32 %v3533_v32, %v3533_v32 }
0x10a8   :  { %v3534_v36 = vmul.f32 %v3532_v34, %v3532_v34 }
0x10a9   :  { %v3539_v39 = vsel %vm121_vm0, %v3535_v35, 0.0 }
0x10aa   :  { %3540 = vadd.xlane.f32.xlu1 %v3539_v39  ;;  %v3536_v40 = vsel %vm121_vm0, %v3534_v36, 0.0 }
0x10ab   :  { %3537 = vadd.xlane.f32.xlu0 %v3536_v40 }
0x10bb   :  { %3555 = vrot.lane.b32.xlu1 %v8660_v51, %s8223_s18  ;;  %v7008_v51 = vld [vmem:[%s9397_s3 + $0x38] sm:$0xff] }
0x10bc   :  { %v7846_v52 = vpack.c.bf16 %v7008_v51, %v7007_v47 }
0x10be   :  { %7847 = vmatprep.subr.bf16.mxu1 %v7846_v52 }
0x10bf   :  { %7849 = vmatpush3.bf16.msra.mxu1 %v7846_v52 }
0x10c0   :  { %7555 = vmatprep.subr.mxu1 %v8217_v29 }
0x10c1   :  { %3550 = vrot.lane.b32.xlu0 %v8655_v46, %s8223_s18 }
0x1137   :  { %v3541_v53 = vpop.xlane.xlu1 %3540 }
0x1138   :  { %v3543_v48 = vmul.f32 0.03125, %v3541_v53  ;;  %v3538_v49 = vpop.xlane.xlu0 %3537 }
0x1139   :  { %v3542_v54 = vmul.f32 0.03125, %v3538_v49 }
0x113a   :  { %v3545_v26 = vadd.f32 1e-05, %v3543_v48 }
0x113b   :  { %v3544_v46 = vadd.f32 1e-05, %v3542_v54  ;;  %v3556_v37 = vpop.permute.xlu1 %3555 }
0x113c   :  { %7988 = vrsqrt.f32 %v3545_v26  ;;  %v3551_v59 = vpop.permute.xlu0 %3550 }
0x113d   :  { %7990 = vrsqrt.f32 %v3544_v46 }
0x1146   :  { %v7989_v58 = vpop.eup %7988 }
0x1147   :  { %v7991_v60 = vpop.eup %7990  ;;  %v3549_v3 = vmul.f32 %v7989_v58, %v3533_v32 }
0x1148   :  { %v3548_v55 = vmul.f32 %v7991_v60, %v3532_v34 }
0x1149   :  { %v3554_v4 = vmul.f32 %v3551_v59, %v3549_v3 }
0x114a   :  { %v3553_v5 = vmul.f32 %v3551_v59, %v3548_v55 }
0x114b   :  { %v8914_v7 = vadd.f32 %v3556_v37, %v3554_v4 }
0x114c   :  { %v8912_v6 = vadd.f32 %v3556_v37, %v3553_v5 }
0x114e   :  { %7552 = vmatprep.mubr.msk.f32.mxu1 %vm121_vm0, %v8912_v6 }
0x114f   :  { %7553 = vmatmul.mubr.msk.f32.vlgmr.msra.gmra.mrb[40].mxu1 %vm121_vm0, %v8914_v7 }
0x1150   :  { %7557 = vmatprep.mubr.msk.f32.mxu1 %vm8220_vm1, %v8217_v29 }
0x1222   :  { %v7554_v10 = vpop.f32.mrb[40].mxu1 }
0x1223   :  { %v8930_v20 = vadd.f32 %v7554_v10, %v3570_v9  ;;  %v3643_v24 = vpop.f32.mrb[41].mxu1 }
0x1224   :  { %v8932_v11 = vadd.f32 %v3643_v24, %v3570_v9 }
0x1225   :  { %3656 = vrot.lane.b32.xlu0 %v8930_v20, %s8219_s17 }
0x1226   :  { %3654 = vrot.lane.b32.xlu1 %v8932_v11, %s8219_s17 }
0x1229   :  { %3660 = vrot.lane.b32.xlu0 %v8930_v20, %s8218_s4 }
0x122a   :  { %3658 = vrot.lane.b32.xlu1 %v8932_v11, %s8218_s4 }
0x122d   :  { %3664 = vrot.lane.b32.xlu0 %v8930_v20, %s8221_s22 }
0x122e   :  { %3662 = vrot.lane.b32.xlu1 %v8932_v11, %s8221_s22 }
0x1231   :  { %3742 = vrot.lane.b32.xlu0 %v8930_v20, %s8222_s2 }
0x1232   :  { %3666 = vrot.lane.b32.xlu1 %v8932_v11, %s8222_s2 }
0x1297   :  { %v8950_v25 = vpop.permute.xlu0 %3656 }
0x1298   :  { %3894 = vrot.lane.b32.xlu0 %v8950_v25, %s8222_s2  ;;  %v8954_v12 = vpop.permute.xlu1 %3654 }
0x1299   :  { %3818 = vrot.lane.b32.xlu1 %v8954_v12, %s8222_s2 }
0x129b   :  { %v8958_v14 = vpop.permute.xlu0 %3660 }
0x129c   :  { %4046 = vrot.lane.b32.xlu0 %v8958_v14, %s8222_s2  ;;  %v8962_v13 = vpop.permute.xlu1 %3658 }
0x129d   :  { %3970 = vrot.lane.b32.xlu1 %v8962_v13, %s8222_s2 }
0x129f   :  { %v8966_v16 = vpop.permute.xlu0 %3664 }
0x12a0   :  { %4198 = vrot.lane.b32.xlu0 %v8966_v16, %s8222_s2  ;;  %v8970_v57 = vpop.permute.xlu1 %3662 }
0x12a1   :  { %4122 = vrot.lane.b32.xlu1 %v8970_v57, %s8222_s2 }
0x12a3   :  { %v3743_v56 = vpop.permute.xlu0 %3742 }
0x12a4   :  { %v3667_v17 = vpop.permute.xlu1 %3666 }
0x12a5   :  { %7556 = vmatpush3.xpose.msk.msra.mxu1 %vm309_vm2, %v3667_v17 }
0x12a6   :  { %7560 = vmatprep.subr.mxu1 %v8217_v29 }
0x12a8   :  { %7558 = vmatmul.mubr.msk.f32.vlgmr.msra.gmra.mrb[42].mxu1 %vm309_vm2, %v8932_v11 }
0x12a9   :  { %7561 = vmatpush3.xpose.msk.msra.mxu1 %vm309_vm2, %v3743_v56  ;;  %7562 = vmatprep.mubr.msk.f32.mxu1 %vm8220_vm1, %v8217_v29 }
0x12aa   :  { %7570 = vmatprep.subr.mxu1 %v8217_v29 }
0x12ac   :  { %7563 = vmatmul.mubr.msk.f32.vlgmr.msra.gmra.mrb[44].mxu1 %vm309_vm2, %v8930_v20 }
0x12ad   :  { %7572 = vmatprep.mubr.msk.f32.mxu1 %vm8220_vm1, %v8217_v29 }
0x130a   :  { %v3895_v19 = vpop.permute.xlu0 %3894 }
0x130b   :  { %7571 = vmatpush3.xpose.msk.msra.mxu1 %vm309_vm2, %v3895_v19  ;;  %v3819_v22 = vpop.permute.xlu1 %3818 }
0x130c   :  { %7566 = vmatpush3.xpose.msk.msra.mxu0 %vm309_vm2, %v3819_v22  ;;  %7580 = vmatprep.subr.mxu1 %v8217_v29 }
0x130d   :  { %7575 = vmatprep.subr.mxu0 %v8217_v29 }
0x130e   :  { %v4047_v27 = vpop.permute.xlu0 %4046  ;;  %7573 = vmatmul.mubr.msk.f32.vlgmr.msra.gmra.mrb[46].mxu1 %vm309_vm2, %v8950_v25 }
0x130f   :  { %7568 = vmatmul.mubr.msk.f32.vlgmr.msra.gmra.mrb[38].mxu0 %vm309_vm2, %v8954_v12  ;;  %7581 = vmatpush3.xpose.msk.msra.mxu1 %vm309_vm2, %v4047_v27  ;;  %v3971_v28 = vpop.permute.xlu1 %3970 }
0x1310   :  { %7576 = vmatpush3.xpose.msk.msra.mxu0 %vm309_vm2, %v3971_v28  ;;  %7582 = vmatprep.mubr.msk.f32.mxu1 %vm8220_vm1, %v8217_v29 }
0x1311   :  { %7577 = vmatprep.mubr.msk.f32.mxu0 %vm8220_vm1, %v8217_v29  ;;  %7590 = vmatprep.subr.mxu1 %v8217_v29 }
0x1312   :  { %v4199_v30 = vpop.permute.xlu0 %4198  ;;  %7583 = vmatmul.mubr.msk.f32.vlgmr.msra.gmra.mrb[48].mxu1 %vm309_vm2, %v8958_v14  ;;  %7585 = vmatprep.subr.mxu0 %v8217_v29 }
0x1313   :  { %7578 = vmatmul.mubr.msk.f32.vlgmr.msra.gmra.mrb[40].mxu0 %vm309_vm2, %v8962_v13  ;;  %7591 = vmatpush3.xpose.msk.msra.mxu1 %vm309_vm2, %v4199_v30  ;;  %v4123_v18 = vpop.permute.xlu1 %4122 }
0x1314   :  { %7586 = vmatpush3.xpose.msk.msra.mxu0 %vm309_vm2, %v4123_v18  ;;  %7592 = vmatprep.mubr.msk.f32.mxu1 %vm8220_vm1, %v8217_v29 }
0x1315   :  { %7587 = vmatprep.mubr.msk.f32.mxu0 %vm8220_vm1, %v8217_v29  ;;  %7600 = vmatprep.subr.mxu1 %v8217_v29 }
0x1316   :  { %7593 = vmatmul.mubr.msk.f32.vlgmr.msra.gmra.mrb[50].mxu1 %vm309_vm2, %v8966_v16  ;;  %7595 = vmatprep.subr.mxu0 %v8217_v29 }
0x1317   :  { %7588 = vmatmul.mubr.msk.f32.vlgmr.msra.gmra.mrb[42].mxu0 %vm309_vm2, %v8970_v57  ;;  %7602 = vmatprep.mubr.msk.f32.mxu1 %vm8220_vm1, %v8217_v29 }
0x1318   :  { %7597 = vmatprep.mubr.msk.f32.mxu0 %vm8220_vm1, %v8217_v29 }
0x137b   :  { %v3738_v15 = vpop.f32.mrb[42].mxu1 }
0x137c   :  { %v7559_v31 = vpop.f32.mrb[43].mxu1  ;;  %v4274_v32 = vsel %vm309_vm2, %v3738_v15, -inf }
0x137d   :  { %4275 = vmax.xlane.f32.xlu1 %v4274_v32 }
0x137f   :  { %v3814_v34 = vpop.f32.mrb[44].mxu1 }
0x1380   :  { %v7564_v35 = vpop.f32.mrb[45].mxu1  ;;  %v4277_v36 = vsel %vm309_vm2, %v3814_v34, -inf }
0x1381   :  { %4278 = vmax.xlane.f32.xlu0 %v4277_v36 }
0x13e1   :  { %v3966_v39 = vpop.f32.mrb[46].mxu1 }
0x13e2   :  { %v3890_v40 = vpop.f32.mrb[38].mxu0  ;;  %v7574_v41 = vpop.f32.mrb[47].mxu1  ;;  %v4283_v42 = vsel %vm309_vm2, %v3966_v39, -inf }
0x13e3   :  { %4284 = vmax.xlane.f32.xlu1 %v4283_v42  ;;  %v7569_v43 = vpop.f32.mrb[39].mxu0  ;;  %v4280_v47 = vsel %vm309_vm2, %v3890_v40, -inf }
0x13e4   :  { %4281 = vmax.xlane.f32.xlu0 %v4280_v47 }
0x13e5   :  { %v4118_v51 = vpop.f32.mrb[48].mxu1 }
0x13e6   :  { %v4042_v52 = vpop.f32.mrb[40].mxu0  ;;  %v7584_v53 = vpop.f32.mrb[49].mxu1  ;;  %v4289_v48 = vsel %vm309_vm2, %v4118_v51, -inf }
0x13e7   :  { %4290 = vmax.xlane.f32.xlu1 %v4289_v48  ;;  %v7579_v49 = vpop.f32.mrb[41].mxu0  ;;  %v4286_v54 = vsel %vm309_vm2, %v4042_v52, -inf }
0x13e8   :  { %4287 = vmax.xlane.f32.xlu0 %v4286_v54 }
0x13e9   :  { %v4270_v26 = vpop.f32.mrb[50].mxu1 }
0x13ea   :  { %v4194_v46 = vpop.f32.mrb[42].mxu0  ;;  %v7594_v58 = vpop.f32.mrb[51].mxu1  ;;  %v4295_v59 = vsel %vm309_vm2, %v4270_v26, -inf }
0x13eb   :  { %4296 = vmax.xlane.f32.xlu1 %v4295_v59  ;;  %v7589_v60 = vpop.f32.mrb[43].mxu0  ;;  %v4292_v3 = vsel %vm309_vm2, %v4194_v46, -inf }
0x13ec   :  { %4293 = vmax.xlane.f32.xlu0 %v4292_v3 }
0x13fc   :  { %4438 = vrot.lane.b32.xlu1 %v8930_v20, %s8223_s18 }
0x1400   :  { %4514 = vrot.lane.b32.xlu1 %v8954_v12, %s8223_s18 }
0x1402   :  { %4362 = vrot.lane.b32.xlu0 %v8932_v11, %s8223_s18 }
0x1404   :  { %4666 = vrot.lane.b32.xlu1 %v8962_v13, %s8223_s18 }
0x1406   :  { %4590 = vrot.lane.b32.xlu0 %v8950_v25, %s8223_s18 }
0x140a   :  { %4742 = vrot.lane.b32.xlu0 %v8958_v14, %s8223_s18  ;;  %v4276_v4 = vpop.xlane.xlu1 %4275 }
0x140b   :  { %v4298_v5 = vsub.f32 %v3738_v15, %v4276_v4 }
0x140d   :  { %v4306_v10 = vmul.f32 1.442695, %v4298_v5 }
0x140e   :  { %v4279_v55 = vpop.xlane.xlu0 %4278 }
0x140f   :  { %v4299_v37 = vsub.f32 %v3814_v34, %v4279_v55 }
0x1411   :  { %v4308_v9 = vmul.f32 1.442695, %v4299_v37 }
0x1413   :  { %7992 = vpow2.f32 %v4308_v9 }
0x1414   :  { %7994 = vpow2.f32 %v4306_v10 }
0x141d   :  { %v9042_v20 = vpop.eup %7992 }
0x141e   :  { %v9044_v24 = vpop.eup %7994  ;;  %v4325_v11 = vsel %vm309_vm2, %v9042_v20, 0.0 }
0x141f   :  { %v4322_v25 = vsel %vm309_vm2, %v9044_v24, 0.0 }
0x1428   :  { %4326 = vadd.xlane.f32.xlu1 %v4325_v11 }
0x1429   :  { %4323 = vadd.xlane.f32.xlu0 %v4322_v25 }
0x1470   :  { %v4285_v12 = vpop.xlane.xlu1 %4284 }
0x1471   :  { %v4301_v14 = vsub.f32 %v3966_v39, %v4285_v12  ;;  %v4282_v13 = vpop.xlane.xlu0 %4281 }
0x1472   :  { %v4300_v17 = vsub.f32 %v3890_v40, %v4282_v13 }
0x1473   :  { %v4312_v56 = vmul.f32 1.442695, %v4301_v14 }
0x1474   :  { %v4310_v19 = vmul.f32 1.442695, %v4300_v17  ;;  %v4291_v22 = vpop.xlane.xlu1 %4290 }
0x1475   :  { %7996 = vpow2.f32 %v4312_v56  ;;  %v4303_v27 = vsub.f32 %v4118_v51, %v4291_v22  ;;  %v4288_v28 = vpop.xlane.xlu0 %4287 }
0x1476   :  { %7998 = vpow2.f32 %v4310_v19  ;;  %v4302_v30 = vsub.f32 %v4042_v52, %v4288_v28 }
0x1477   :  { %v4316_v18 = vmul.f32 1.442695, %v4303_v27 }
0x1478   :  { %v4314_v15 = vmul.f32 1.442695, %v4302_v30  ;;  %v4297_v31 = vpop.xlane.xlu1 %4296 }
0x1479   :  { %8000 = vpow2.f32 %v4316_v18  ;;  %v4305_v32 = vsub.f32 %v4270_v26, %v4297_v31  ;;  %v4294_v34 = vpop.xlane.xlu0 %4293 }
0x147a   :  { %8002 = vpow2.f32 %v4314_v15  ;;  %v4304_v35 = vsub.f32 %v4194_v46, %v4294_v34 }
0x147b   :  { %v4320_v36 = vmul.f32 1.442695, %v4305_v32 }
0x147c   :  { %v4318_v39 = vmul.f32 1.442695, %v4304_v35  ;;  %v4439_v41 = vpop.permute.xlu1 %4438 }
0x147d   :  { %8004 = vpow2.f32 %v4320_v36  ;;  %v4363_v40 = vpop.permute.xlu0 %4362  ;;  %7601 = vmatpush3.msra.mxu1 %v4439_v41 }
0x147e   :  { %8006 = vpow2.f32 %v4318_v39  ;;  %7596 = vmatpush3.msra.mxu0 %v4363_v40  ;;  %7610 = vmatprep.subr.mxu1 %v8217_v29  ;;  %v7035_v40 = vld [vmem:[%s9401_s7 + $0x40] sm:$0xff] }
0x147f   :  { %v7997_v42 = vpop.eup %7996  ;;  %7605 = vmatprep.subr.mxu0 %v8217_v29 }
0x1480   :  { %v7999_v43 = vpop.eup %7998  ;;  %v4331_v47 = vsel %vm309_vm2, %v7997_v42, 0.0  ;;  %v4515_v59 = vpop.permute.xlu1 %4514 }
0x1481   :  { %4332 = vadd.xlane.f32.xlu1 %v4331_v47  ;;  %v4328_v51 = vsel %vm309_vm2, %v7999_v43, 0.0  ;;  %v4591_v60 = vpop.permute.xlu0 %4590  ;;  %v7037_v47 = vld [vmem:[%s9401_s7 + $0x50] sm:$0xff] }
0x1482   :  { %4329 = vadd.xlane.f32.xlu0 %v4328_v51  ;;  %v7038_v51 = vld [vmem:[%s9401_s7 + $0x58] sm:$0xff] }
0x1483   :  { %v8001_v52 = vpop.eup %8000 }
0x1484   :  { %v8003_v53 = vpop.eup %8002  ;;  %v4337_v48 = vsel %vm309_vm2, %v8001_v52, 0.0  ;;  %v4667_v3 = vpop.permute.xlu1 %4666 }
0x1485   :  { %4338 = vadd.xlane.f32.xlu1 %v4337_v48  ;;  %v4334_v49 = vsel %vm309_vm2, %v8003_v53, 0.0  ;;  %v4743_v55 = vpop.permute.xlu0 %4742 }
0x1486   :  { %4335 = vadd.xlane.f32.xlu0 %v4334_v49 }
0x1487   :  { %v9056_v54 = vpop.eup %8004 }
0x1488   :  { %v9058_v26 = vpop.eup %8006  ;;  %v4343_v46 = vsel %vm309_vm2, %v9056_v54, 0.0 }
0x1489   :  { %4344 = vadd.xlane.f32.xlu1 %v4343_v46  ;;  %v4340_v58 = vsel %vm309_vm2, %v9058_v26, 0.0 }
0x148a   :  { %4341 = vadd.xlane.f32.xlu0 %v4340_v58 }
0x149a   :  { %4818 = vrot.lane.b32.xlu1 %v8970_v57, %s8223_s18 }
0x14a0   :  { %4894 = vrot.lane.b32.xlu0 %v8966_v16, %s8223_s18 }
0x14b5   :  { %v4327_v4 = vpop.xlane.xlu1 %4326 }
0x14b6   :  { %8008 = vrcp.f32 %v4327_v4  ;;  %v4324_v37 = vpop.xlane.xlu0 %4323 }
0x14b7   :  { %8010 = vrcp.f32 %v4324_v37  ;;  %v9118_v37 = vrot.slane %v8925_v8, %v1654_v50 }
0x14c0   :  { %v8009_v5 = vpop.eup %8008 }
0x14c1   :  { %v8011_v9 = vpop.eup %8010  ;;  %v4355_v10 = vmul.f32 %v8009_v5, %v9042_v20 }
0x14c2   :  { %v4354_v11 = vmul.f32 %v8011_v9, %v9044_v24 }
0x14c3   :  { %7603 = vmatmul.mubr.msk.f32.vlgmr.msra.gmra.mrb[52].mxu1 %vm309_vm2, %v4355_v10 }
0x14c4   :  { %7611 = vmatpush3.msra.mxu1 %v4591_v60  ;;  %7598 = vmatmul.mubr.msk.f32.vlgmr.msra.gmra.mrb[44].mxu0 %vm309_vm2, %v4354_v11 }
0x14c5   :  { %7606 = vmatpush3.msra.mxu0 %v4515_v59  ;;  %7612 = vmatprep.mubr.msk.f32.mxu1 %vm8220_vm1, %v8217_v29 }
0x14c6   :  { %7620 = vmatprep.subr.mxu1 %v8217_v29  ;;  %7607 = vmatprep.mubr.msk.f32.mxu0 %vm8220_vm1, %v8217_v29 }
0x14c7   :  { %7615 = vmatprep.subr.mxu0 %v8217_v29 }
0x150e   :  { %v4333_v16 = vpop.xlane.xlu1 %4332 }
0x150f   :  { %8012 = vrcp.f32 %v4333_v16  ;;  %v4330_v57 = vpop.xlane.xlu0 %4329 }
0x1510   :  { %8014 = vrcp.f32 %v4330_v57 }
0x1512   :  { %v4339_v20 = vpop.xlane.xlu1 %4338 }
0x1513   :  { %8016 = vrcp.f32 %v4339_v20  ;;  %v4336_v24 = vpop.xlane.xlu0 %4335 }
0x1514   :  { %8018 = vrcp.f32 %v4336_v24 }
0x1516   :  { %v4345_v25 = vpop.xlane.xlu1 %4344 }
0x1517   :  { %8020 = vrcp.f32 %v4345_v25  ;;  %v4342_v12 = vpop.xlane.xlu0 %4341 }
0x1518   :  { %8022 = vrcp.f32 %v4342_v12 }
0x1519   :  { %v8013_v14 = vpop.eup %8012 }
0x151a   :  { %v8015_v13 = vpop.eup %8014  ;;  %v4357_v17 = vmul.f32 %v8013_v14, %v7997_v42  ;;  %v4819_v15 = vpop.permute.xlu1 %4818  ;;  %v7036_v42 = vld [vmem:[%s9401_s7 + $0x48] sm:$0xff] }
0x151b   :  { %v4356_v56 = vmul.f32 %v8015_v13, %v7999_v43  ;;  %v4895_v30 = vpop.permute.xlu0 %4894  ;;  %v7850_v43 = vpack.c.bf16 %v7036_v42, %v7035_v40  ;;  %v5139_v42 = vld [vmem:[#allocation7 + $0x20] sm:$0xff] }
0x151c   :  { %7613 = vmatmul.mubr.msk.f32.vlgmr.msra.gmra.mrb[54].mxu1 %vm309_vm2, %v4357_v17 }
0x151d   :  { %v8017_v19 = vpop.eup %8016  ;;  %7621 = vmatpush3.msra.mxu1 %v4743_v55  ;;  %7608 = vmatmul.mubr.msk.f32.vlgmr.msra.gmra.mrb[46].mxu0 %vm309_vm2, %v4356_v56 }
0x151e   :  { %v8019_v22 = vpop.eup %8018  ;;  %v4359_v27 = vmul.f32 %v8017_v19, %v8001_v52  ;;  %7616 = vmatpush3.msra.mxu0 %v4667_v3  ;;  %7622 = vmatprep.mubr.msk.f32.mxu1 %vm8220_vm1, %v8217_v29  ;;  %v7854_v52 = vpack.c.bf16 %v7038_v51, %v7037_v47  ;;  %v5141_v51 = vld [vmem:[#allocation7 + $0x30] sm:$0xff] }
0x151f   :  { %v4358_v28 = vmul.f32 %v8019_v22, %v8003_v53  ;;  %7630 = vmatprep.subr.mxu1 %v8217_v29  ;;  %7617 = vmatprep.mubr.msk.f32.mxu0 %vm8220_vm1, %v8217_v29 }
0x1520   :  { %7623 = vmatmul.mubr.msk.f32.vlgmr.msra.gmra.mrb[56].mxu1 %vm309_vm2, %v4359_v27  ;;  %7625 = vmatprep.subr.mxu0 %v8217_v29 }
0x1521   :  { %v8021_v18 = vpop.eup %8020  ;;  %7631 = vmatpush3.msra.mxu1 %v4895_v30  ;;  %7618 = vmatmul.mubr.msk.f32.vlgmr.msra.gmra.mrb[48].mxu0 %vm309_vm2, %v4358_v28 }
0x1522   :  { %v8023_v31 = vpop.eup %8022  ;;  %v4361_v32 = vmul.f32 %v8021_v18, %v9056_v54  ;;  %7626 = vmatpush3.msra.mxu0 %v4819_v15  ;;  %7632 = vmatprep.mubr.msk.f32.mxu1 %vm8220_vm1, %v8217_v29 }
0x1523   :  { %v4360_v34 = vmul.f32 %v8023_v31, %v9058_v26  ;;  %7627 = vmatprep.mubr.msk.f32.mxu0 %vm8220_vm1, %v8217_v29  ;;  %7851 = vmatprep.subr.bf16.mxu0 %v7850_v43 }
0x1524   :  { %7633 = vmatmul.mubr.msk.f32.vlgmr.msra.gmra.mrb[58].mxu1 %vm309_vm2, %v4361_v32 }
0x1525   :  { %7628 = vmatmul.mubr.msk.f32.vlgmr.msra.gmra.mrb[50].mxu0 %vm309_vm2, %v4360_v34 }
0x1526   :  { %7853 = vmatpush3.bf16.msra.mxu0 %v7850_v43  ;;  %v5140_v43 = vld [vmem:[#allocation7 + $0x28] sm:$0xff] }
0x1527   :  { %7855 = vmatprep.subr.bf16.mxu0 %v7854_v52  ;;  %v7858_v47 = vpack.c.bf16 %v5140_v43, %v5139_v42 }
0x1529   :  { %7859 = vmatprep.subr.bf16.mxu1 %v7858_v47 }
0x152a   :  { %7857 = vmatpush3.bf16.msra.mxu0 %v7854_v52  ;;  %7861 = vmatpush3.bf16.msra.mxu1 %v7858_v47  ;;  %v5142_v52 = vld [vmem:[#allocation7 + $0x38] sm:$0xff] }
0x152b   :  { %7657 = vmatprep.subr.mxu0 %v8217_v29 }
0x1596   :  { %v4510_v35 = vpop.f32.mrb[52].mxu1 }
0x1597   :  { %v4434_v36 = vpop.f32.mrb[44].mxu0  ;;  %v7604_v39 = vpop.f32.mrb[53].mxu1 }
0x1598   :  { %v7599_v41 = vpop.f32.mrb[45].mxu0 }
0x15ef   :  { %v4662_v53 = vpop.f32.mrb[54].mxu1 }
0x15f0   :  { %v4586_v48 = vpop.f32.mrb[46].mxu0  ;;  %4974 = vrot.lane.b32.xlu0 %v4662_v53, %s8214_s20  ;;  %v7614_v49 = vpop.f32.mrb[55].mxu1  ;;  %v7862_v53 = vpack.c.bf16 %v5142_v52, %v5141_v51 }
0x15f1   :  { %4972 = vrot.lane.b32.xlu1 %v4586_v48, %s8214_s20  ;;  %v7609_v54 = vpop.f32.mrb[47].mxu0 }
0x15f2   :  { %7863 = vmatprep.subr.bf16.mxu1 %v7862_v53 }
0x15f3   :  { %v4814_v26 = vpop.f32.mrb[56].mxu1  ;;  %7865 = vmatpush3.bf16.msra.mxu1 %v7862_v53 }
0x15f4   :  { %v4738_v46 = vpop.f32.mrb[48].mxu0  ;;  %4982 = vrot.lane.b32.xlu0 %v4814_v26, %s8224_s28  ;;  %v7624_v58 = vpop.f32.mrb[57].mxu1  ;;  %7662 = vmatprep.subr.mxu1 %v8217_v29 }
0x15f5   :  { %4980 = vrot.lane.b32.xlu1 %v4738_v46, %s8224_s28  ;;  %v7619_v59 = vpop.f32.mrb[49].mxu0 }
0x15f6   :  { %v9160_v59 = vrot.slane %v8925_v8, %v1772_v44 }
0x15f7   :  { %v4966_v60 = vpop.f32.mrb[58].mxu1 }
0x15f8   :  { %4990 = vrot.lane.b32.xlu0 %v4966_v60, %s8225_s29  ;;  %v4890_v3 = vpop.f32.mrb[50].mxu0  ;;  %v7634_v55 = vpop.f32.mrb[59].mxu1 }
0x15f9   :  { %4988 = vrot.lane.b32.xlu1 %v4890_v3, %s8225_s29  ;;  %v7629_v4 = vpop.f32.mrb[51].mxu0  ;;  %v9165_v3 = vrot.slane %v8925_v8, %v1778_v45 }
0x15fd   :  { %5014 = vrot.lane.b32.xlu1 %v9118_v37, %s8222_s2 }
0x1662   :  { %v4975_v5 = vpop.permute.xlu0 %4974 }
0x1663   :  { %v4973_v9 = vpop.permute.xlu1 %4972  ;;  %v4995_v20 = vsel %vm309_vm2, %v4510_v35, %v4975_v5 }
0x1664   :  { %v4994_v16 = vsel %vm309_vm2, %v4434_v36, %v4973_v9 }
0x1666   :  { %v4983_v10 = vpop.permute.xlu0 %4982 }
0x1667   :  { %v4981_v11 = vpop.permute.xlu1 %4980  ;;  %v4997_v12 = vsel %vm1638_vm3, %v4995_v20, %v4983_v10 }
0x1668   :  { %v4996_v24 = vsel %vm1638_vm3, %v4994_v16, %v4981_v11 }
0x166a   :  { %v4991_v57 = vpop.permute.xlu0 %4990 }
0x166b   :  { %v4989_v25 = vpop.permute.xlu1 %4988  ;;  %v4999_v14 = vsel %vm1641_vm4, %v4997_v12, %v4991_v57 }
0x166c   :  { %v4998_v50 = vsel %vm1641_vm4, %v4996_v24, %v4989_v25 }
0x166d   :  { %7643 = vmatprep.mubr.msk.f32.mxu0 %vm121_vm0, %v4998_v50 }
0x166e   :  { %7644 = vmatmul.mubr.msk.f32.vlgmr.msra.gmra.mrb[52].mxu0 %vm121_vm0, %v4999_v14 }
0x166f   :  { %7659 = vmatprep.mubr.msk.f32.mxu0 %vm8220_vm1, %v8217_v29  ;;  %v5015_v13 = vpop.permute.xlu1 %5014 }
0x1741   :  { %v7645_v17 = vpop.f32.mrb[52].mxu0 }
0x1742   :  { %v5095_v56 = vadd.f32 %v7645_v17, %v5015_v13  ;;  %v5089_v19 = vpop.f32.mrb[53].mxu0 }
0x1743   :  { %v5090_v22 = vadd.f32 %v5089_v19, %v5015_v13 }
0x1744   :  { %v5099_v27 = vadd.f32 %v5095_v56, %v8914_v7 }
0x1745   :  { %v5098_v28 = vadd.f32 %v5090_v22, %v8912_v6 }
0x1746   :  { %v5103_v30 = vsel %vm121_vm0, %v5099_v27, 0.0 }
0x1747   :  { %5104 = vadd.xlane.f32.xlu1 %v5103_v30  ;;  %v5100_v18 = vsel %vm121_vm0, %v5098_v28, 0.0 }
0x1748   :  { %5101 = vadd.xlane.f32.xlu0 %v5100_v18 }
0x1758   :  { %5238 = vrot.lane.b32.xlu1 %v8622_v38, %s8223_s18 }
0x175c   :  { %5390 = vrot.lane.b32.xlu1 %v8688_v62, %s8223_s18 }
0x1760   :  { %5466 = vrot.lane.b32.xlu1 %v8681_v61, %s8223_s18 }
0x1764   :  { %5618 = vrot.lane.b32.xlu1 %v8703_v63, %s8223_s18 }
0x1768   :  { %5770 = vrot.lane.b32.xlu1 %v8707_v1, %s8223_s18 }
0x17d4   :  { %v5105_v6 = vpop.xlane.xlu1 %5104 }
0x17d5   :  { %v5107_v7 = vmul.f32 0.03125, %v5105_v6  ;;  %v5102_v15 = vpop.xlane.xlu0 %5101 }
0x17d6   :  { %v5106_v31 = vmul.f32 0.03125, %v5102_v15 }
0x17d7   :  { %v5109_v32 = vsub.f32 %v5099_v27, %v5107_v7 }
0x17d8   :  { %v5108_v34 = vsub.f32 %v5098_v28, %v5106_v31  ;;  %v5239_v35 = vpop.permute.xlu1 %5238 }
0x17d9   :  { %7658 = vmatpush3.xpose.msk.msra.mxu0 %vm309_vm2, %v5239_v35  ;;  %v5111_v41 = vmul.f32 %v5109_v32, %v5109_v32 }
0x17da   :  { %v5110_v36 = vmul.f32 %v5108_v34, %v5108_v34  ;;  %7667 = vmatprep.subr.mxu0 %v8217_v29 }
0x17db   :  { %v5115_v40 = vsel %vm121_vm0, %v5111_v41, 0.0 }
0x17dc   :  { %v5112_v39 = vsel %vm121_vm0, %v5110_v36, 0.0  ;;  %v5391_v45 = vpop.permute.xlu1 %5390 }
0x17dd   :  { %5113 = vadd.xlane.f32.xlu0 %v5112_v39 }
0x17e0   :  { %v5467_v25 = vpop.permute.xlu1 %5466 }
0x17e1   :  { %5116 = vadd.xlane.f32.xlu0 %v5115_v40 }
0x17e4   :  { %v5619_v12 = vpop.permute.xlu1 %5618 }
0x17e8   :  { %v5771_v14 = vpop.permute.xlu1 %5770 }
0x17f7   :  { %5314 = vrot.lane.b32.xlu0 %v8402_v23, %s8223_s18 }
0x17fb   :  { %5542 = vrot.lane.b32.xlu0 %v8705_v0, %s8223_s18 }
0x17ff   :  { %5694 = vrot.lane.b32.xlu0 %v8709_v2, %s8223_s18 }
0x186a   :  { %v5114_v48 = vpop.xlane.xlu0 %5113 }
0x186b   :  { %v5118_v49 = vmul.f32 0.03125, %v5114_v48 }
0x186d   :  { %v5120_v54 = vadd.f32 1e-05, %v5118_v49 }
0x186e   :  { %v5117_v26 = vpop.xlane.xlu0 %5116 }
0x186f   :  { %8024 = vrsqrt.f32 %v5120_v54  ;;  %v5119_v46 = vmul.f32 0.03125, %v5117_v26 }
0x1871   :  { %v5121_v58 = vadd.f32 1e-05, %v5119_v46 }
0x1872   :  { %v5315_v16 = vpop.permute.xlu0 %5314 }
0x1873   :  { %8026 = vrsqrt.f32 %v5121_v58 }
0x1876   :  { %v5543_v50 = vpop.permute.xlu0 %5542 }
0x1879   :  { %v8025_v60 = vpop.eup %8024 }
0x187a   :  { %v5124_v55 = vmul.f32 %v8025_v60, %v5108_v34  ;;  %v5695_v13 = vpop.permute.xlu0 %5694 }
0x187c   :  { %v5130_v4 = vmul.f32 %v9160_v59, %v5124_v55 }
0x187d   :  { %v8027_v5 = vpop.eup %8026 }
0x187e   :  { %v5125_v9 = vmul.f32 %v8027_v5, %v5109_v32  ;;  %v9169_v10 = vadd.f32 %v9165_v3, %v5130_v4 }
0x1880   :  { %7654 = vmatprep.mubr.msk.f32.mxu1 %vm121_vm0, %v9169_v10  ;;  %v5131_v44 = vmul.f32 %v9160_v59, %v5125_v9 }
0x1882   :  { %v9175_v11 = vadd.f32 %v9165_v3, %v5131_v44 }
0x1884   :  { %7655 = vmatmul.mubr.msk.f32.vlgmr.msra.gmra.mrb[60].mxu1 %vm121_vm0, %v9175_v11 }
0x1885   :  { %7663 = vmatpush3.xpose.msk.msra.mxu1 %vm309_vm2, %v5315_v16  ;;  %7664 = vmatprep.mubr.msk.f32.mxu1 %vm8220_vm1, %v8217_v29 }
0x1886   :  { %7672 = vmatprep.subr.mxu1 %v8217_v29 }
0x1957   :  { %v7656_v8 = vpop.f32.mrb[60].mxu1 }
0x1958   :  { %v5221_v57 = vadd.f32 %v7656_v8, %v9118_v37  ;;  %v5215_v20 = vpop.f32.mrb[61].mxu1 }
0x1959   :  { %v5216_v24 = vadd.f32 %v5215_v20, %v9118_v37 }
0x195a   :  { %5228 = vrot.lane.b32.xlu1 %v5221_v57, %s8219_s17  ;;  %7665 = vmatmul.mubr.msk.f32.vlgmr.msra.gmra.mrb[62].mxu1 %vm309_vm2, %v5221_v57 }
0x195b   :  { %7673 = vmatpush3.xpose.msk.msra.mxu1 %vm309_vm2, %v5467_v25  ;;  %5226 = vrot.lane.b32.xlu0 %v5216_v24, %s8219_s17 }
0x195c   :  { %7660 = vmatmul.mubr.msk.f32.vlgmr.msra.gmra.mrb[54].mxu0 %vm309_vm2, %v5216_v24  ;;  %7674 = vmatprep.mubr.msk.f32.mxu1 %vm8220_vm1, %v8217_v29 }
0x195d   :  { %7668 = vmatpush3.xpose.msk.msra.mxu0 %vm309_vm2, %v5391_v45  ;;  %7682 = vmatprep.subr.mxu1 %v8217_v29 }
0x195e   :  { %5232 = vrot.lane.b32.xlu1 %v5221_v57, %s8218_s4  ;;  %7669 = vmatprep.mubr.msk.f32.mxu0 %vm8220_vm1, %v8217_v29 }
0x195f   :  { %5230 = vrot.lane.b32.xlu0 %v5216_v24, %s8218_s4  ;;  %7677 = vmatprep.subr.mxu0 %v8217_v29  ;;  %s8226_s4 = smov 32  }
0x1962   :  { %5236 = vrot.lane.b32.xlu1 %v5221_v57, %s8221_s22 }
0x1963   :  { %5234 = vrot.lane.b32.xlu0 %v5216_v24, %s8221_s22 }
0x19cc   :  { %v5229_v17 = vpop.permute.xlu1 %5228 }
0x19cd   :  { %7675 = vmatmul.mubr.msk.f32.vlgmr.msra.gmra.mrb[64].mxu1 %vm309_vm2, %v5229_v17  ;;  %v5227_v56 = vpop.permute.xlu0 %5226 }
0x19ce   :  { %7683 = vmatpush3.xpose.msk.msra.mxu1 %vm309_vm2, %v5619_v12  ;;  %7670 = vmatmul.mubr.msk.f32.vlgmr.msra.gmra.mrb[56].mxu0 %vm309_vm2, %v5227_v56 }
0x19cf   :  { %7678 = vmatpush3.xpose.msk.msra.mxu0 %vm309_vm2, %v5543_v50  ;;  %7684 = vmatprep.mubr.msk.f32.mxu1 %vm8220_vm1, %v8217_v29 }
0x19d0   :  { %v5233_v19 = vpop.permute.xlu1 %5232  ;;  %7692 = vmatprep.subr.mxu1 %v8217_v29  ;;  %7679 = vmatprep.mubr.msk.f32.mxu0 %vm8220_vm1, %v8217_v29 }
0x19d1   :  { %7685 = vmatmul.mubr.msk.f32.vlgmr.msra.gmra.mrb[66].mxu1 %vm309_vm2, %v5233_v19  ;;  %7687 = vmatprep.subr.mxu0 %v8217_v29  ;;  %v5231_v22 = vpop.permute.xlu0 %5230 }
0x19d2   :  { %7693 = vmatpush3.xpose.msk.msra.mxu1 %vm309_vm2, %v5771_v14  ;;  %7680 = vmatmul.mubr.msk.f32.vlgmr.msra.gmra.mrb[58].mxu0 %vm309_vm2, %v5231_v22 }
0x19d3   :  { %7688 = vmatpush3.xpose.msk.msra.mxu0 %vm309_vm2, %v5695_v13  ;;  %7694 = vmatprep.mubr.msk.f32.mxu1 %vm8220_vm1, %v8217_v29 }
0x19d4   :  { %v5237_v27 = vpop.permute.xlu1 %5236  ;;  %7689 = vmatprep.mubr.msk.f32.mxu0 %vm8220_vm1, %v8217_v29  ;;  %7697 = vmatprep.subr.mxu0 %v8217_v29 }
0x19d5   :  { %7695 = vmatmul.mubr.msk.f32.vlgmr.msra.gmra.mrb[68].mxu1 %vm309_vm2, %v5237_v27  ;;  %v5235_v28 = vpop.permute.xlu0 %5234  ;;  %7702 = vmatprep.subr.mxu1 %v8217_v29 }
0x19d6   :  { %7690 = vmatmul.mubr.msk.f32.vlgmr.msra.gmra.mrb[60].mxu0 %vm309_vm2, %v5235_v28  ;;  %7704 = vmatprep.mubr.msk.f32.mxu1 %vm8220_vm1, %v8217_v29 }
0x19d7   :  { %7699 = vmatprep.mubr.msk.f32.mxu0 %vm8220_vm1, %v8217_v29 }
0x1a2d   :  { %v5386_v30 = vpop.f32.mrb[62].mxu1 }
0x1a2e   :  { %v7666_v18 = vpop.f32.mrb[63].mxu1  ;;  %v5849_v6 = vsel %vm309_vm2, %v5386_v30, -inf }
0x1a2f   :  { %v5310_v7 = vpop.f32.mrb[54].mxu0  ;;  %5850 = vmax.xlane.f32.xlu1 %v5849_v6 }
0x1a30   :  { %v7661_v15 = vpop.f32.mrb[55].mxu0  ;;  %v5846_v31 = vsel %vm309_vm2, %v5310_v7, -inf }
0x1a31   :  { %5847 = vmax.xlane.f32.xlu0 %v5846_v31 }
0x1aa0   :  { %v5538_v32 = vpop.f32.mrb[64].mxu1 }
0x1aa1   :  { %v5462_v34 = vpop.f32.mrb[56].mxu0  ;;  %v7676_v35 = vpop.f32.mrb[65].mxu1  ;;  %v5855_v47 = vsel %vm309_vm2, %v5538_v32, -inf }
0x1aa2   :  { %v7671_v36 = vpop.f32.mrb[57].mxu0  ;;  %v5852_v39 = vsel %vm309_vm2, %v5462_v34, -inf }
0x1aa3   :  { %5853 = vmax.xlane.f32.xlu0 %v5852_v39 }
0x1aa4   :  { %v5690_v41 = vpop.f32.mrb[66].mxu1 }
0x1aa5   :  { %v5614_v40 = vpop.f32.mrb[58].mxu0  ;;  %v7686_v42 = vpop.f32.mrb[67].mxu1  ;;  %v5861_v54 = vsel %vm309_vm2, %v5690_v41, -inf }
0x1aa6   :  { %v7681_v43 = vpop.f32.mrb[59].mxu0  ;;  %v5858_v51 = vsel %vm309_vm2, %v5614_v40, -inf }
0x1aa7   :  { %5856 = vmax.xlane.f32.xlu0 %v5855_v47  ;;  %5859 = vmax.xlane.f32.xlu1 %v5858_v51 }
0x1aa8   :  { %v5842_v52 = vpop.f32.mrb[68].mxu1 }
0x1aa9   :  { %v5766_v53 = vpop.f32.mrb[60].mxu0  ;;  %v7696_v48 = vpop.f32.mrb[69].mxu1  ;;  %v5867_v46 = vsel %vm309_vm2, %v5842_v52, -inf }
0x1aaa   :  { %v7691_v49 = vpop.f32.mrb[61].mxu0  ;;  %v5864_v26 = vsel %vm309_vm2, %v5766_v53, -inf }
0x1aab   :  { %5862 = vmax.xlane.f32.xlu0 %v5861_v54  ;;  %5865 = vmax.xlane.f32.xlu1 %v5864_v26 }
0x1aaf   :  { %5868 = vmax.xlane.f32.xlu0 %v5867_v46 }
0x1abc   :  { %5934 = vrot.lane.b32.xlu1 %v8622_v38, %s8226_s4  ;;  %v5851_v58 = vpop.xlane.xlu1 %5850 }
0x1abd   :  { %v5871_v60 = vsub.f32 %v5386_v30, %v5851_v58 }
0x1abe   :  { %v5848_v55 = vpop.xlane.xlu0 %5847 }
0x1abf   :  { %v5880_v4 = vmul.f32 1.442695, %v5871_v60  ;;  %v5870_v38 = vsub.f32 %v5310_v7, %v5848_v55 }
0x1ac0   :  { %6086 = vrot.lane.b32.xlu1 %v8688_v62, %s8226_s4 }
0x1ac1   :  { %8028 = vpow2.f32 %v5880_v4  ;;  %v5878_v5 = vmul.f32 1.442695, %v5870_v38 }
0x1ac3   :  { %8030 = vpow2.f32 %v5878_v5 }
0x1ac4   :  { %6162 = vrot.lane.b32.xlu1 %v8681_v61, %s8226_s4 }
0x1ac5   :  { %6010 = vrot.lane.b32.xlu0 %v8402_v23, %s8226_s4 }
0x1ac8   :  { %6314 = vrot.lane.b32.xlu1 %v8703_v63, %s8226_s4 }
0x1ac9   :  { %6238 = vrot.lane.b32.xlu0 %v8705_v0, %s8226_s4 }
0x1acb   :  { %v9247_v62 = vpop.eup %8028 }
0x1acc   :  { %v5897_v61 = vsel %vm309_vm2, %v9247_v62, 0.0 }
0x1acd   :  { %v9251_v23 = vpop.eup %8030 }
0x1ace   :  { %v5894_v63 = vsel %vm309_vm2, %v9251_v23, 0.0 }
0x1ae8   :  { %5898 = vadd.xlane.f32.xlu0 %v5897_v61 }
0x1aec   :  { %5895 = vadd.xlane.f32.xlu1 %v5894_v63 }
0x1b30   :  { %v5854_v0 = vpop.xlane.xlu0 %5853 }
0x1b31   :  { %v5872_v9 = vsub.f32 %v5462_v34, %v5854_v0 }
0x1b33   :  { %v5882_v44 = vmul.f32 1.442695, %v5872_v9 }
0x1b34   :  { %v5860_v16 = vpop.xlane.xlu1 %5859  ;;  %v5857_v45 = vpop.xlane.xlu0 %5856 }
0x1b35   :  { %8032 = vpow2.f32 %v5882_v44  ;;  %v5874_v8 = vsub.f32 %v5614_v40, %v5860_v16  ;;  %v5873_v57 = vsub.f32 %v5538_v32, %v5857_v45 }
0x1b37   :  { %v5886_v20 = vmul.f32 1.442695, %v5874_v8  ;;  %v5884_v24 = vmul.f32 1.442695, %v5873_v57 }
0x1b38   :  { %v5866_v25 = vpop.xlane.xlu1 %5865  ;;  %v5863_v12 = vpop.xlane.xlu0 %5862 }
0x1b39   :  { %8034 = vpow2.f32 %v5886_v20  ;;  %v5876_v50 = vsub.f32 %v5766_v53, %v5866_v25  ;;  %v5875_v14 = vsub.f32 %v5690_v41, %v5863_v12  ;;  %v7039_v12 = vld [vmem:[%s9401_s7 + $0x60] sm:$0xff] }
0x1b3a   :  { %8036 = vpow2.f32 %v5884_v24 }
0x1b3b   :  { %v5890_v13 = vmul.f32 1.442695, %v5876_v50  ;;  %v5888_v17 = vmul.f32 1.442695, %v5875_v14  ;;  %v7040_v50 = vld [vmem:[%s9401_s7 + $0x68] sm:$0xff] }
0x1b3c   :  { %v5935_v56 = vpop.permute.xlu1 %5934  ;;  %v5869_v19 = vpop.xlane.xlu0 %5868  ;;  %v7866_v14 = vpack.c.bf16 %v7040_v50, %v7039_v12  ;;  %v7078_v50 = vld [vmem:[%s9403_s9 + $0x58] sm:$0xff] }
0x1b3d   :  { %8038 = vpow2.f32 %v5890_v13  ;;  %v5877_v22 = vsub.f32 %v5842_v52, %v5869_v19  ;;  %7698 = vmatpush3.msra.mxu0 %v5935_v56  ;;  %v7042_v13 = vld [vmem:[%s9401_s7 + $0x78] sm:$0xff] }
0x1b3e   :  { %8040 = vpow2.f32 %v5888_v17  ;;  %7707 = vmatprep.subr.mxu0 %v8217_v29 }
0x1b3f   :  { %v8033_v27 = vpop.eup %8032  ;;  %v5892_v28 = vmul.f32 1.442695, %v5877_v22 }
0x1b40   :  { %v6011_v30 = vpop.permute.xlu0 %6010  ;;  %v5900_v18 = vsel %vm309_vm2, %v8033_v27, 0.0  ;;  %v6087_v40 = vpop.permute.xlu1 %6086 }
0x1b41   :  { %8042 = vpow2.f32 %v5892_v28  ;;  %5901 = vadd.xlane.f32.xlu1 %v5900_v18  ;;  %7703 = vmatpush3.msra.mxu1 %v6011_v30 }
0x1b42   :  { %7712 = vmatprep.subr.mxu1 %v8217_v29 }
0x1b43   :  { %v8035_v6 = vpop.eup %8034 }
0x1b44   :  { %v8037_v7 = vpop.eup %8036  ;;  %v5906_v15 = vsel %vm309_vm2, %v8035_v6, 0.0  ;;  %v6163_v42 = vpop.permute.xlu1 %6162 }
0x1b45   :  { %5907 = vadd.xlane.f32.xlu1 %v5906_v15  ;;  %v5903_v31 = vsel %vm309_vm2, %v8037_v7, 0.0  ;;  %v6239_v43 = vpop.permute.xlu0 %6238 }
0x1b46   :  { %5904 = vadd.xlane.f32.xlu0 %v5903_v31 }
0x1b47   :  { %v8039_v32 = vpop.eup %8038 }
0x1b48   :  { %v8041_v34 = vpop.eup %8040  ;;  %v5912_v35 = vsel %vm309_vm2, %v8039_v32, 0.0  ;;  %v6315_v47 = vpop.permute.xlu1 %6314 }
0x1b49   :  { %5913 = vadd.xlane.f32.xlu1 %v5912_v35  ;;  %v5909_v36 = vsel %vm309_vm2, %v8041_v34, 0.0 }
0x1b4a   :  { %5910 = vadd.xlane.f32.xlu0 %v5909_v36 }
0x1b4b   :  { %v9262_v39 = vpop.eup %8042 }
0x1b4c   :  { %v5915_v41 = vsel %vm309_vm2, %v9262_v39, 0.0 }
0x1b4e   :  { %5916 = vadd.xlane.f32.xlu0 %v5915_v41 }
0x1b5a   :  { %6466 = vrot.lane.b32.xlu1 %v8707_v1, %s8226_s4 }
0x1b64   :  { %6390 = vrot.lane.b32.xlu0 %v8709_v2, %s8226_s4 }
0x1b75   :  { %v5899_v51 = vpop.xlane.xlu0 %5898 }
0x1b76   :  { %8044 = vrcp.f32 %v5899_v51 }
0x1b79   :  { %v5896_v52 = vpop.xlane.xlu1 %5895 }
0x1b7a   :  { %8046 = vrcp.f32 %v5896_v52 }
0x1b80   :  { %v8045_v53 = vpop.eup %8044 }
0x1b81   :  { %v5927_v48 = vmul.f32 %v8045_v53, %v9247_v62 }
0x1b83   :  { %7705 = vmatmul.mubr.msk.f32.vlgmr.msra.gmra.mrb[70].mxu1 %vm309_vm2, %v5927_v48 }
0x1b84   :  { %v8047_v49 = vpop.eup %8046  ;;  %7713 = vmatpush3.msra.mxu1 %v6163_v42  ;;  %7714 = vmatprep.mubr.msk.f32.mxu1 %vm8220_vm1, %v8217_v29 }
0x1b85   :  { %v5926_v1 = vmul.f32 %v8047_v49, %v9251_v23  ;;  %7722 = vmatprep.subr.mxu1 %v8217_v29 }
0x1b87   :  { %7700 = vmatmul.mubr.msk.f32.vlgmr.msra.gmra.mrb[62].mxu0 %vm309_vm2, %v5926_v1 }
0x1b88   :  { %7708 = vmatpush3.msra.mxu0 %v6087_v40  ;;  %7709 = vmatprep.mubr.msk.f32.mxu0 %vm8220_vm1, %v8217_v29 }
0x1b89   :  { %7717 = vmatprep.subr.mxu0 %v8217_v29 }
0x1bce   :  { %v5902_v2 = vpop.xlane.xlu1 %5901 }
0x1bcf   :  { %8048 = vrcp.f32 %v5902_v2 }
0x1bd2   :  { %v5908_v54 = vpop.xlane.xlu1 %5907 }
0x1bd3   :  { %8050 = vrcp.f32 %v5908_v54  ;;  %v5905_v26 = vpop.xlane.xlu0 %5904 }
0x1bd4   :  { %8052 = vrcp.f32 %v5905_v26 }
0x1bd6   :  { %v5914_v46 = vpop.xlane.xlu1 %5913 }
0x1bd7   :  { %8054 = vrcp.f32 %v5914_v46  ;;  %v5911_v58 = vpop.xlane.xlu0 %5910 }
0x1bd8   :  { %8056 = vrcp.f32 %v5911_v58 }
0x1bd9   :  { %v8049_v60 = vpop.eup %8048 }
0x1bda   :  { %v5928_v55 = vmul.f32 %v8049_v60, %v8033_v27  ;;  %v6467_v16 = vpop.permute.xlu1 %6466 }
0x1bdb   :  { %v5917_v4 = vpop.xlane.xlu0 %5916 }
0x1bdc   :  { %8058 = vrcp.f32 %v5917_v4  ;;  %7710 = vmatmul.mubr.msk.f32.vlgmr.msra.gmra.mrb[64].mxu0 %vm309_vm2, %v5928_v55 }
0x1bdd   :  { %v8051_v38 = vpop.eup %8050  ;;  %7718 = vmatpush3.msra.mxu0 %v6239_v43  ;;  %7719 = vmatprep.mubr.msk.f32.mxu0 %vm8220_vm1, %v8217_v29 }
0x1bde   :  { %v8053_v5 = vpop.eup %8052  ;;  %v5930_v62 = vmul.f32 %v8051_v38, %v8035_v6  ;;  %7727 = vmatprep.subr.mxu0 %v8217_v29 }
0x1bdf   :  { %v5929_v61 = vmul.f32 %v8053_v5, %v8037_v7  ;;  %v6391_v23 = vpop.permute.xlu0 %6390 }
0x1be0   :  { %7720 = vmatmul.mubr.msk.f32.vlgmr.msra.gmra.mrb[66].mxu0 %vm309_vm2, %v5930_v62 }
0x1be1   :  { %v8055_v63 = vpop.eup %8054  ;;  %7715 = vmatmul.mubr.msk.f32.vlgmr.msra.gmra.mrb[72].mxu1 %vm309_vm2, %v5929_v61  ;;  %7728 = vmatpush3.msra.mxu0 %v6391_v23 }
0x1be2   :  { %v8057_v0 = vpop.eup %8056  ;;  %v5932_v9 = vmul.f32 %v8055_v63, %v8039_v32  ;;  %7723 = vmatpush3.msra.mxu1 %v6315_v47  ;;  %7724 = vmatprep.mubr.msk.f32.mxu1 %vm8220_vm1, %v8217_v29 }
0x1be3   :  { %v5931_v44 = vmul.f32 %v8057_v0, %v8041_v34  ;;  %7729 = vmatprep.mubr.msk.f32.mxu0 %vm8220_vm1, %v8217_v29  ;;  %7732 = vmatprep.subr.mxu1 %v8217_v29  ;;  %v6698_v0 = vld [vmem:[#allocation10 + $0x28] sm:$0xff] }
0x1be4   :  { %7730 = vmatmul.mubr.msk.f32.vlgmr.msra.gmra.mrb[68].mxu0 %vm309_vm2, %v5932_v9  ;;  %7867 = vmatprep.subr.bf16.mxu0 %v7866_v14 }
0x1be5   :  { %7725 = vmatmul.mubr.msk.f32.vlgmr.msra.gmra.mrb[74].mxu1 %vm309_vm2, %v5931_v44  ;;  %7869 = vmatpush3.bf16.msra.mxu0 %v7866_v14  ;;  %v6699_v44 = vld [vmem:[#allocation10 + $0x30] sm:$0xff] }
0x1be6   :  { %v8059_v45 = vpop.eup %8058  ;;  %7733 = vmatpush3.msra.mxu1 %v6467_v16  ;;  %7734 = vmatprep.mubr.msk.f32.mxu1 %vm8220_vm1, %v8217_v29  ;;  %v7041_v29 = vld [vmem:[%s9401_s7 + $0x70] sm:$0xff] }
0x1be7   :  { %v5933_v8 = vmul.f32 %v8059_v45, %v9262_v39  ;;  %v7870_v17 = vpack.c.bf16 %v7042_v13, %v7041_v29  ;;  %v6700_v16 = vld [vmem:[#allocation10 + $0x38] sm:$0xff]  ;;  %v7079_v29 = vld [vmem:[%s9403_s9 + $0x60] sm:$0xff]  ;;  %v7080_v13 = vld [vmem:[%s9403_s9 + $0x68] sm:$0xff] }
0x1be8   :  { %v7878_v45 = vpack.c.bf16 %v6700_v16, %v6699_v44  ;;  %v7890_v21 = vpack.c.bf16 %v7080_v13, %v7079_v29 }
0x1be9   :  { %7735 = vmatmul.mubr.msk.f32.vlgmr.msra.gmra.mrb[76].mxu1 %vm309_vm2, %v5933_v8  ;;  %7871 = vmatprep.subr.bf16.mxu0 %v7870_v17  ;;  %v7075_v8 = vld [vmem:[%s9403_s9 + $0x40] sm:$0xff] }
0x1bea   :  { %7873 = vmatpush3.bf16.msra.mxu0 %v7870_v17 }
0x1c56   :  { %v6082_v57 = vpop.f32.mrb[70].mxu1 }
0x1c57   :  { %v7706_v20 = vpop.f32.mrb[71].mxu1 }
0x1c58   :  { %v7077_v20 = vld [vmem:[%s9403_s9 + $0x50] sm:$0xff] }
0x1c59   :  { %v7886_v14 = vpack.c.bf16 %v7078_v50, %v7077_v20 }
0x1c5a   :  { %v6006_v24 = vpop.f32.mrb[62].mxu0 }
0x1c5b   :  { %v7701_v25 = vpop.f32.mrb[63].mxu0 }
0x1caf   :  { %v6158_v56 = vpop.f32.mrb[64].mxu0 }
0x1cb0   :  { %v7711_v19 = vpop.f32.mrb[65].mxu0  ;;  %6544 = vrot.lane.b32.xlu0 %v6158_v56, %s8214_s20 }
0x1cb3   :  { %v6310_v22 = vpop.f32.mrb[66].mxu0 }
0x1cb4   :  { %v6234_v27 = vpop.f32.mrb[72].mxu1  ;;  %6552 = vrot.lane.b32.xlu0 %v6310_v22, %s8224_s28  ;;  %v7721_v28 = vpop.f32.mrb[67].mxu0 }
0x1cb5   :  { %6546 = vrot.lane.b32.xlu1 %v6234_v27, %s8214_s20  ;;  %v7716_v30 = vpop.f32.mrb[73].mxu1 }
0x1cb7   :  { %v6462_v18 = vpop.f32.mrb[68].mxu0 }
0x1cb8   :  { %v6386_v6 = vpop.f32.mrb[74].mxu1  ;;  %6560 = vrot.lane.b32.xlu0 %v6462_v18, %s8225_s29  ;;  %v7731_v7 = vpop.f32.mrb[69].mxu0 }
0x1cb9   :  { %6554 = vrot.lane.b32.xlu1 %v6386_v6, %s8224_s28  ;;  %v7726_v15 = vpop.f32.mrb[75].mxu1 }
0x1cbc   :  { %v6538_v31 = vpop.f32.mrb[76].mxu1  ;;  %6572 = vrot.lane.b32.xlu0 %v9118_v37, %s8223_s18 }
0x1cbd   :  { %6562 = vrot.lane.b32.xlu1 %v6538_v31, %s8225_s29  ;;  %v7736_v32 = vpop.f32.mrb[77].mxu1 }
0x1d22   :  { %v6545_v34 = vpop.permute.xlu0 %6544 }
0x1d23   :  { %v6566_v39 = vsel %vm309_vm2, %v6006_v24, %v6545_v34  ;;  %v8069_v24 = vld [vmem:[%s9404_s10 + $0x8] sm:$0x1f] }
0x1d24   :  { %v6704_v25 = vrot.slane %v8069_v24, %v3343_v33 }
0x1d26   :  { %v6553_v35 = vpop.permute.xlu0 %6552 }
0x1d27   :  { %v6547_v36 = vpop.permute.xlu1 %6546  ;;  %v6568_v41 = vsel %vm1638_vm3, %v6566_v39, %v6553_v35  ;;  %v7082_v39 = vld [vmem:[%s9403_s9 + $0x78] sm:$0xff] }
0x1d28   :  { %v6567_v47 = vsel %vm309_vm2, %v6082_v57, %v6547_v36  ;;  %v7076_v57 = vld [vmem:[%s9403_s9 + $0x48] sm:$0xff]  ;;  %v7081_v36 = vld [vmem:[%s9403_s9 + $0x70] sm:$0xff]  ;;  %s8227_s9 = smov [#allocation11]  }
0x1d29   :  { %v7882_v12 = vpack.c.bf16 %v7076_v57, %v7075_v8  ;;  %s6927_s17 = sshll.u32 %s8227_s9, 4  ;;  %s6928_s17 = int_to_ptr.vmem [resolvable:$true] %s6927_s17 }
0x1d2a   :  { %v6561_v40 = vpop.permute.xlu0 %6560  ;;  %p8185_p13 = scmp.lt.s32.totalorder %s6928_s17, %s6928_s17 }
0x1d2b   :  { %v6555_v42 = vpop.permute.xlu1 %6554  ;;  %v6570_v43 = vsel %vm1641_vm4, %v6568_v41, %v6561_v40  ;;  %7883 = vmatprep.subr.bf16.mxu0 %v7882_v12  ;;  %v7894_v41 = vpack.c.bf16 %v7082_v39, %v7081_v36 }
0x1d2c   :  { %7745 = vmatprep.mubr.msk.f32.mxu0 %vm121_vm0, %v6570_v43  ;;  %v6569_v37 = vsel %vm1638_vm3, %v6567_v47, %v6555_v42 }
0x1d2e   :  { %v6573_v53 = vpop.permute.xlu0 %6572 }
0x1d2f   :  { %v6563_v51 = vpop.permute.xlu1 %6562 }
0x1d30   :  { %v6571_v52 = vsel %vm1641_vm4, %v6569_v37, %v6563_v51 }
0x1d31   :  { %7746 = vmatmul.mubr.msk.f32.vlgmr.msra.gmra.mrb[70].mxu0 %vm121_vm0, %v6571_v52 }
0x1d32   :  { %7885 = vmatpush3.bf16.msra.mxu0 %v7882_v12 }
0x1d33   :  { %7887 = vmatprep.subr.bf16.mxu0 %v7886_v14 }
0x1d36   :  { %7889 = vmatpush3.bf16.msra.mxu0 %v7886_v14 }
0x1d37   :  { %7891 = vmatprep.subr.bf16.mxu0 %v7890_v21 }
0x1d3a   :  { %7893 = vmatpush3.bf16.msra.mxu0 %v7890_v21 }
0x1d3b   :  { %7895 = vmatprep.subr.bf16.mxu0 %v7894_v41 }
0x1d3e   :  { %7897 = vmatpush3.bf16.msra.mxu0 %v7894_v41 }
0x1e04   :  { %v7747_v48 = vpop.f32.mrb[70].mxu0 }
0x1e05   :  { %v6653_v49 = vadd.f32 %v7747_v48, %v6573_v53  ;;  %v6647_v1 = vpop.f32.mrb[71].mxu0 }
0x1e06   :  { %v6648_v2 = vadd.f32 %v6647_v1, %v6573_v53 }
0x1e07   :  { %v6657_v54 = vadd.f32 %v6653_v49, %v9175_v11 }
0x1e08   :  { %v6656_v26 = vadd.f32 %v6648_v2, %v9169_v10  ;;  %v6697_v10 = vld [vmem:[#allocation10 + $0x20] sm:$0xff] }
0x1e09   :  { %v6661_v46 = vsel %vm121_vm0, %v6657_v54, 0.0  ;;  %v7874_v9 = vpack.c.bf16 %v6698_v0, %v6697_v10 }
0x1e0a   :  { %6662 = vadd.xlane.f32.xlu0 %v6661_v46  ;;  %v6658_v58 = vsel %vm121_vm0, %v6656_v26, 0.0 }
0x1e0b   :  { %6659 = vadd.xlane.f32.xlu1 %v6658_v58  ;;  %7875 = vmatprep.subr.bf16.mxu1 %v7874_v9 }
0x1e0c   :  { %7877 = vmatpush3.bf16.msra.mxu1 %v7874_v9 }
0x1e0d   :  { %7879 = vmatprep.subr.bf16.mxu1 %v7878_v45 }
0x1e10   :  { %7881 = vmatpush3.bf16.msra.mxu1 %v7878_v45 }
0x1e97   :  { %v6663_v60 = vpop.xlane.xlu0 %6662 }
0x1e98   :  { %v6665_v55 = vmul.f32 0.03125, %v6663_v60  ;;  %v6660_v4 = vpop.xlane.xlu1 %6659 }
0x1e99   :  { %v6664_v38 = vmul.f32 0.03125, %v6660_v4 }
0x1e9a   :  { %v6667_v5 = vsub.f32 %v6657_v54, %v6665_v55 }
0x1e9b   :  { %v6666_v62 = vsub.f32 %v6656_v26, %v6664_v38 }
0x1e9c   :  { %v6669_v61 = vmul.f32 %v6667_v5, %v6667_v5 }
0x1e9d   :  { %v6668_v23 = vmul.f32 %v6666_v62, %v6666_v62 }
0x1e9e   :  { %v6673_v63 = vsel %vm121_vm0, %v6669_v61, 0.0 }
0x1e9f   :  { %6674 = vadd.xlane.f32.xlu1 %v6673_v63  ;;  %v6670_v11 = vsel %vm121_vm0, %v6668_v23, 0.0 }
0x1ea0   :  { %6671 = vadd.xlane.f32.xlu0 %v6670_v11 }
0x1eb0   :  { %6691 = vrot.lane.b32.xlu1 %v9165_v3, %s8222_s2 }
0x1eb4   :  { %6798 = vrot.lane.b32.xlu1 %v6704_v25, %s8223_s18 }
0x1eb6   :  { %6685 = vrot.lane.b32.xlu0 %v9160_v59, %s8222_s2 }
0x1f2c   :  { %v6675_v33 = vpop.xlane.xlu1 %6674 }
0x1f2d   :  { %v6677_v17 = vmul.f32 0.03125, %v6675_v33  ;;  %v6672_v56 = vpop.xlane.xlu0 %6671 }
0x1f2e   :  { %v6676_v19 = vmul.f32 0.03125, %v6672_v56 }
0x1f2f   :  { %v6679_v22 = vadd.f32 1e-05, %v6677_v17 }
0x1f30   :  { %v6678_v27 = vadd.f32 1e-05, %v6676_v19  ;;  %v6692_v31 = vpop.permute.xlu1 %6691 }
0x1f31   :  { %8060 = vrsqrt.f32 %v6679_v22  ;;  %v6686_v30 = vpop.permute.xlu0 %6685 }
0x1f32   :  { %8062 = vrsqrt.f32 %v6678_v27 }
0x1f34   :  { %v6799_v52 = vpop.permute.xlu1 %6798 }
0x1f3b   :  { %v8061_v28 = vpop.eup %8060 }
0x1f3c   :  { %v8063_v18 = vpop.eup %8062  ;;  %v6683_v6 = vmul.f32 %v8061_v28, %v6667_v5 }
0x1f3d   :  { %v6682_v7 = vmul.f32 %v8063_v18, %v6666_v62 }
0x1f3e   :  { %v6689_v15 = vmul.f32 %v6686_v30, %v6683_v6 }
0x1f3f   :  { %v6688_v32 = vmul.f32 %v6686_v30, %v6682_v7 }
0x1f40   :  { %v6695_v35 = vadd.f32 %v6692_v31, %v6689_v15 }
0x1f41   :  { %v6694_v34 = vadd.f32 %v6692_v31, %v6688_v32 }
0x1f43   :  { %7756 = vmatprep.mubr.msk.f32.mxu1 %vm121_vm0, %v6694_v34 }
0x1f44   :  { %7757 = vmatmul.mubr.msk.f32.vlgmr.msra.gmra.mrb[78].mxu1 %vm121_vm0, %v6695_v35 }
0x2017   :  { %v7758_v40 = vpop.f32.mrb[78].mxu1 }
0x2018   :  { %v6783_v42 = vadd.f32 %v7758_v40, %v6704_v25  ;;  %v6777_v43 = vpop.f32.mrb[79].mxu1 }
0x2019   :  { %v6778_v47 = vadd.f32 %v6777_v43, %v6704_v25 }
0x201a   :  { %v6787_v51 = vmax.f32 %v6783_v42, 0.0 }
0x201b   :  { %v6786_v37 = vmax.f32 %v6778_v47, 0.0 }
0x201d   :  { %7775 = vmatprep.mubr.msk.f32.mxu0 %vm3440_vm5, %v6786_v37 }
0x201e   :  { %7776 = vmatmul.mubr.msk.f32.vlgmr.msra.gmra.mrb[72].mxu0 %vm3440_vm5, %v6787_v51 }
0x20f1   :  { %v7777_v53 = vpop.f32.mrb[72].mxu0 }
0x20f2   :  { %v6879_v48 = vadd.f32 %v7777_v53, %v6799_v52  ;;  %v6873_v49 = vpop.f32.mrb[73].mxu0 }
0x20f3   :  { %v6874_v1 = vadd.f32 %v6873_v49, %v6799_v52 }
0x20f4   :  { %v6883_v2 = vadd.f32 %v6879_v48, %v6695_v35 }
0x20f5   :  { %v6882_v54 = vadd.f32 %v6874_v1, %v6694_v34 }
0x20f6   :  { %v6887_v26 = vsel %vm121_vm0, %v6883_v2, 0.0 }
0x20f7   :  { %6888 = vadd.xlane.f32.xlu1 %v6887_v26  ;;  %v6884_v46 = vsel %vm121_vm0, %v6882_v54, 0.0 }
0x20f8   :  { %6885 = vadd.xlane.f32.xlu0 %v6884_v46 }
0x2108   :  { %6910 = vrot.lane.b32.xlu1 %v9160_v59, %s8223_s18 }
0x2184   :  { %v6889_v58 = vpop.xlane.xlu1 %6888 }
0x2185   :  { %v6891_v60 = vmul.f32 0.03125, %v6889_v58  ;;  %v6886_v55 = vpop.xlane.xlu0 %6885 }
0x2186   :  { %v6890_v4 = vmul.f32 0.03125, %v6886_v55 }
0x2187   :  { %v6893_v38 = vsub.f32 %v6883_v2, %v6891_v60 }
0x2188   :  { %v6892_v5 = vsub.f32 %v6882_v54, %v6890_v4  ;;  %v6911_v45 = vpop.permute.xlu1 %6910 }
0x2189   :  { %v6895_v23 = vmul.f32 %v6893_v38, %v6893_v38 }
0x218a   :  { %v6894_v62 = vmul.f32 %v6892_v5, %v6892_v5 }
0x218b   :  { %v6899_v63 = vsel %vm121_vm0, %v6895_v23, 0.0 }
0x218c   :  { %v6896_v61 = vsel %vm121_vm0, %v6894_v62, 0.0 }
0x218d   :  { %6897 = vadd.xlane.f32.xlu0 %v6896_v61 }
0x2191   :  { %6900 = vadd.xlane.f32.xlu0 %v6899_v63 }
0x21a7   :  { %6915 = vrot.lane.b32.xlu0 %v9165_v3, %s8223_s18  ;;  %s8180_s18 = scalar_lea.vmem %s6928_s17, 256 }
0x21a8   :  { %p8181_p12 = scmp.ne.s32.totalorder %s6928_s17, %s8180_s18  ;;  %p8186_p0 = scmp.lt.s32.totalorder %s8180_s18, %s8180_s18 }
0x21aa   :  { %p8187_p1 = por %p8186_p0, %p8185_p13 }
0x21ac   :  { %p8188_p2 = pnand %p8187_p1, %p8181_p12 }
0x221a   :  { %v6898_v11 = vpop.xlane.xlu0 %6897 }
0x221b   :  { %v6902_v10 = vmul.f32 0.03125, %v6898_v11 }
0x221d   :  { %v6904_v59 = vadd.f32 1e-05, %v6902_v10 }
0x221e   :  { %v6901_v0 = vpop.xlane.xlu0 %6900 }
0x221f   :  { %8064 = vrsqrt.f32 %v6904_v59  ;;  %v6903_v9 = vmul.f32 0.03125, %v6901_v0 }
0x2221   :  { %v6905_v44 = vadd.f32 1e-05, %v6903_v9 }
0x2222   :  { %v6916_v57 = vpop.permute.xlu0 %6915 }
0x2223   :  { %8066 = vrsqrt.f32 %v6905_v44 }
0x2229   :  { %v8065_v16 = vpop.eup %8064 }
0x222a   :  { %v6908_v8 = vmul.f32 %v8065_v16, %v6892_v5 }
0x222c   :  { %v6913_v20 = vmul.f32 %v6911_v45, %v6908_v8 }
0x222d   :  { %v8067_v24 = vpop.eup %8066 }
0x222e   :  { %v6909_v25 = vmul.f32 %v8067_v24, %v6893_v38  ;;  %v6918_v12 = vadd.f32 %v6916_v57, %v6913_v20 }
0x2230   :  { %v6914_v50 = vmul.f32 %v6911_v45, %v6909_v25  ;;  %6920 = vst.msk [vmem:[#allocation11] sm:$0xff] %vm121_vm0, %v6918_v12 }
0x2232   :  { %v6919_v3 = vadd.f32 %v6916_v57, %v6914_v50 }
0x2234   :  { %6921 = vst.msk [vmem:[#allocation11 + $0x8] sm:$0xff] %vm121_vm0, %v6919_v3 }
0x2235   :  { %8191 = shalt.err (!%p8188_p2)
}
0x2236   :  { %s8192_s25 = scalar_lea.hbm %s9405_s11, 256 }
0x2237   :  { %p8193_p3 = scmp.ne.s32.totalorder %s9405_s11, %s8192_s25  ;;  %p8196_p4 = scmp.lt.u32.totalorder %s8192_s25, %s9405_s11 }
0x2239   :  { %p8198_p5 = pnand %p8196_p4, %p8193_p3 }
0x223b   :  { %8201 = shalt.err (!%p8198_p5)
}
0x223c   :  { %6933 = dma.vmem_to_hbm [thread:$0]  %s6928_s17, 256, %s9405_s11, [#allocation4], %s8213_s6, %s8213_s6, %s8214_s20  }
0x223d   :  { %8208 = dma.done.wait [#allocation4], 256  }
0x223e   :  { %8209 = vsyncadd [#allocation4], 4294967040 }
0x223f   :  { %6937 = vsyncpa [#allocation3], 1 }
0x2240   :  { %6938 = vsyncpa [#allocation6], 1 }
0x2241   :  { %6939 = vsyncpa [#allocation9], 1 }
0x2242   :  { %6940 = vsyncpa [#allocation4], 1 }

</bundles_post_ra>
